<compile_context>
chip_gen: v7x
topology: tpu7x:2x2x1
jax: 0.10.0
libtpu: 0.0.40
codegen_flags: <defaults>
</compile_context>

<pallas_src>
import functools
import math

import jax
import jax.numpy as jnp
from jax import lax
from jax.experimental import pallas as pl
from jax.experimental.pallas import tpu as pltpu


# ---------------------------------------------------------------------------
# Fused kernel: QKV projections + per-head attention + output projection,
# one batch element per grid step.
# ---------------------------------------------------------------------------
def mha_kernel(xq_ref, xk_ref, xv_ref, bias_ref,
               wq_ref, bq_ref, wk_ref, bk_ref, wv_ref, bv_ref, wo_ref, bo_ref,
               o_ref,
               qT_ref, kT_ref, vT_ref,
               *, num_heads, att, compute_dtype):
    # ---- full-width Q/K/V projections, stored transposed (H, S) in VMEM ----
    # x: (S, H_in), w: (H_out, H_in) [nn.Linear layout]; both pre-cast to
    # compute_dtype at the host, scale already folded into wq/bq.
    def proj_t(x_ref, w_ref, b_ref):
        pt = lax.dot_general(w_ref[...], x_ref[...],
                             (((1,), (1,)), ((), ())),       # contract H_in
                             preferred_element_type=jnp.float32)  # (H_out, S)
        return (pt + b_ref[...]).astype(compute_dtype)       # bias (H_out, 1)

    qT_ref[...] = proj_t(xq_ref, wq_ref, bq_ref)
    kT_ref[...] = proj_t(xk_ref, wk_ref, bk_ref)
    vT_ref[...] = proj_t(xv_ref, wv_ref, bv_ref)

    # ---- per-head attention (static unroll over heads) ----------------------
    # Head slabs are aligned sublane ranges of the (H, S) scratch -> free split.
    ctx_parts = []
    for h in range(num_heads):
        qh = qT_ref[h * att:(h + 1) * att, :]                 # (att, S)
        kh = kT_ref[h * att:(h + 1) * att, :]                 # (att, S)
        vh = vT_ref[h * att:(h + 1) * att, :]                 # (att, S)

        # scores (S_q, S_k): contract the head dim (dim 0) of both operands;
        # no explicit q transpose, f32 accumulation, per-head bias added in f32.
        s = lax.dot_general(qh, kh, (((0,), (0,)), ((), ())),
                            preferred_element_type=jnp.float32)
        s = s + bias_ref[h]

        # Softmax over keys: f32 max-subtract, exp in compute_dtype (bf16 EUP
        # on v6e/v7x), denominator accumulated in f32.
        m = jnp.max(s, axis=-1, keepdims=True)
        p = jnp.exp((s - m).astype(compute_dtype))            # (S_q, S_k)
        l = jnp.sum(p.astype(jnp.float32), axis=-1, keepdims=True)

        # ctx (S_q, att): contract the key dim (last) of both operands
        # (v consumed in its stored (att, S_k) layout).
        ctx = lax.dot_general(p, vh, (((1,), (1,)), ((), ())),
                              preferred_element_type=jnp.float32)
        # Post-PV normalization on the small (S, att) context via EUP recip.
        ctx = ctx * pl.reciprocal(l, approx=True)
        ctx_parts.append(ctx.astype(compute_dtype))

    # ---- single full-contraction output projection ---------------------------
    ctx_all = jnp.concatenate(ctx_parts, axis=-1)             # (S, H)
    out = jnp.dot(ctx_all, wo_ref[...], preferred_element_type=jnp.float32)
    o_ref[...] = (out + bo_ref[...]).astype(o_ref.dtype)


# ---------------------------------------------------------------------------
# Wrapper
# ---------------------------------------------------------------------------
def multi_head_attention(q, k, v, attn_bias, params, *, num_heads,
                         compute_dtype=jnp.bfloat16):
    """Forward pass of graphormer MultiHeadAttention.

    q, k, v:    (B, S, H)
    attn_bias:  (B, NH, S, S)
    params:     (wq, bq, wk, bk, wv, bv, wo, bo) with
                wq/wk/wv: (H, H) in (out, in) layout, bq/bk/bv: (H, 1),
                wo: (H, H) in (in, out) layout, bo: (1, H).
    compute_dtype: MXU operand dtype (bf16 for speed, f32 for bit-accuracy).
    """
    B, S, H = q.shape
    assert H % num_heads == 0
    att = H // num_heads
    # Head slabs are sublane ranges of the (H, S) scratch: the slab height must
    # be a multiple of the sublane tile (16 for bf16 packing, 8 for f32).
    min_sub = 16 if compute_dtype == jnp.bfloat16 else 8
    assert att % min_sub == 0, f"head dim {att} must be a multiple of {min_sub}"
    scale = att ** (-0.5)
    wq, bq, wk, bk, wv, bv, wo, bo = params

    cd = compute_dtype
    # Host-side pre-cast of weights/activations/bias to the MXU operand dtype;
    # fold the att**-0.5 scale into the q projection (weights AND bias).
    wq_c = (wq * scale).astype(cd)
    bq_c = (bq * scale).astype(cd)
    wk_c, bk_c = wk.astype(cd), bk.astype(cd)
    wv_c, bv_c = wv.astype(cd), bv.astype(cd)
    wo_c = wo.astype(cd)
    bo_f32 = bo.astype(jnp.float32)          # tiny; added to the f32 accum
    qc, kc, vc = q.astype(cd), k.astype(cd), v.astype(cd)
    bias_c = attn_bias.astype(cd)            # halves the dominant HBM stream

    kern = functools.partial(mha_kernel, num_heads=num_heads, att=att,
                             compute_dtype=cd)

    x_spec = pl.BlockSpec((None, S, H), lambda b: (b, 0, 0))
    bias_spec = pl.BlockSpec((None, num_heads, S, S), lambda b: (b, 0, 0, 0))
    w_spec = pl.BlockSpec((H, H), lambda b: (0, 0))      # constant -> one fetch
    pb_spec = pl.BlockSpec((H, 1), lambda b: (0, 0))
    bo_spec = pl.BlockSpec((1, H), lambda b: (0, 0))
    out_spec = pl.BlockSpec((None, S, H), lambda b: (b, 0, 0))

    return pl.pallas_call(
        kern,
        out_shape=jax.ShapeDtypeStruct((B, S, H), q.dtype),
        grid_spec=pltpu.PrefetchScalarGridSpec(
            num_scalar_prefetch=0,
            grid=(B,),
            in_specs=[x_spec, x_spec, x_spec, bias_spec,
                      w_spec, pb_spec, w_spec, pb_spec, w_spec, pb_spec,
                      w_spec, bo_spec],
            out_specs=out_spec,
            # Transposed projection activations stay resident in VMEM.
            scratch_shapes=[pltpu.VMEM((H, S), cd),
                            pltpu.VMEM((H, S), cd),
                            pltpu.VMEM((H, S), cd)],
        ),
        # Batch axis parallel -> shards across both v7x TensorCores when B>=2.
        # No vmem_limit override: per-step footprint is tiny vs. every
        # generation's default scoped VMEM (incl. v7x's 64 MiB part).
        compiler_params=pltpu.CompilerParams(
            dimension_semantics=("parallel",)),
    )(qc, kc, vc, bias_c,
      wq_c, bq_c, wk_c, bk_c, wv_c, bv_c, wo_c, bo_f32)


# ---------------------------------------------------------------------------
# Pure-JAX reference (mirrors the PyTorch forward, eval mode)
# ---------------------------------------------------------------------------
def reference_mha(q, k, v, attn_bias, params, *, num_heads):
    wq, bq, wk, bk, wv, bv, wo, bo = params
    B, S, H = q.shape
    dk = H // num_heads
    scale = dk ** (-0.5)

    def proj(x, w, b):                       # w: (out, in), b: (out, 1)
        y = jnp.einsum('bsi,oi->bso', x, w) + b[:, 0]
        return y.reshape(B, S, num_heads, dk).transpose(0, 2, 1, 3)

    qh = proj(q, wq, bq) * scale             # (B, NH, S, dk)
    kh = proj(k, wk, bk)
    vh = proj(v, wv, bv)
    s = jnp.einsum('bhqd,bhkd->bhqk', qh, kh) + attn_bias
    p = jax.nn.softmax(s, axis=-1)
    ctx = jnp.einsum('bhqk,bhkd->bhqd', p, vh)
    ctx = ctx.transpose(0, 2, 1, 3).reshape(B, S, H)
    return ctx @ wo + bo                     # wo: (in, out), bo: (1, out)


def init_params(key, hidden_size):
    """Deterministic nn.Linear-style init in the layouts the kernels expect."""
    bound = 1.0 / math.sqrt(hidden_size)
    ks = jax.random.split(key, 8)
    u = lambda kk, shape: jax.random.uniform(kk, shape, jnp.float32, -bound, bound)
    return (u(ks[0], (hidden_size, hidden_size)), u(ks[1], (hidden_size, 1)),   # q
            u(ks[2], (hidden_size, hidden_size)), u(ks[3], (hidden_size, 1)),   # k
            u(ks[4], (hidden_size, hidden_size)), u(ks[5], (hidden_size, 1)),   # v
            u(ks[6], (hidden_size, hidden_size)), u(ks[7], (1, hidden_size)))   # out


if __name__ == "__main__":
    # Small but lane/sublane-aligned shapes: H, S multiples of 128, dk = 32.
    B, S, H, NH = 2, 128, 128, 4

    key = jax.random.PRNGKey(0)
    kq, kk, kv, kb, kp = jax.random.split(key, 5)

    q = jax.random.normal(kq, (B, S, H), jnp.float32)
    k = jax.random.normal(kk, (B, S, H), jnp.float32)
    v = jax.random.normal(kv, (B, S, H), jnp.float32)
    attn_bias = 0.1 * jax.random.normal(kb, (B, NH, S, S), jnp.float32)
    params = init_params(kp, H)

    ref = reference_mha(q, k, v, attn_bias, params, num_heads=NH)

    # f32 MXU path: validates layouts / head split / bias / softmax tightly.
    out_f32 = jax.block_until_ready(
        multi_head_attention(q, k, v, attn_bias, params, num_heads=NH,
                             compute_dtype=jnp.float32))
    assert out_f32.shape == (B, S, H)
    err32 = float(jnp.max(jnp.abs(out_f32 - ref)))
    assert err32 < 1e-2, f"f32 path mismatch vs reference: max abs err {err32}"

    # bf16-operand MXU path (performance configuration): looser tolerance.
    out_bf16 = jax.block_until_ready(
        multi_head_attention(q, k, v, attn_bias, params, num_heads=NH,
                             compute_dtype=jnp.bfloat16))
    err16 = float(jnp.max(jnp.abs(out_bf16 - ref)))
    assert err16 < 7.5e-2, f"bf16 path mismatch vs reference: max abs err {err16}"

    print("KERNEL_OK")
</pallas_src>

<mosaic_0001>
module attributes {stable_mosaic.version = 11 : i64} {
  func.func @mha_kernel(%arg0: i32, %arg1: memref<1x128x128xf32, #tpu.memory_space<vmem>>, %arg2: memref<1x128x128xf32, #tpu.memory_space<vmem>>, %arg3: memref<1x128x128xf32, #tpu.memory_space<vmem>>, %arg4: memref<1x4x128x128xf32, #tpu.memory_space<vmem>>, %arg5: memref<128x128xf32, #tpu.memory_space<vmem>>, %arg6: memref<128x1xf32, #tpu.memory_space<vmem>>, %arg7: memref<128x128xf32, #tpu.memory_space<vmem>>, %arg8: memref<128x1xf32, #tpu.memory_space<vmem>>, %arg9: memref<128x128xf32, #tpu.memory_space<vmem>>, %arg10: memref<128x1xf32, #tpu.memory_space<vmem>>, %arg11: memref<128x128xf32, #tpu.memory_space<vmem>>, %arg12: memref<1x128xf32, #tpu.memory_space<vmem>>, %arg13: memref<1x128x128xf32, #tpu.memory_space<vmem>>, %arg14: memref<128x128xf32, #tpu.memory_space<vmem>>, %arg15: memref<128x128xf32, #tpu.memory_space<vmem>>, %arg16: memref<128x128xf32, #tpu.memory_space<vmem>>) attributes {dimension_semantics = [#tpu.dimension_semantics<parallel>], iteration_bounds = array<i64: 2>, scalar_prefetch = 0 : i64, scratch_operands = 3 : i64, tpu.core_type = #tpu.core_type<tc>, window_params = [{transform_indices = @transform_0, window_bounds = array<i64: 1, 128, 128>}, {transform_indices = @transform_1, window_bounds = array<i64: 1, 128, 128>}, {transform_indices = @transform_2, window_bounds = array<i64: 1, 128, 128>}, {transform_indices = @transform_3, window_bounds = array<i64: 1, 4, 128, 128>}, {pipeline_mode = #tpu.pipeline_mode<synchronous>, transform_indices = @transform_4, window_bounds = array<i64: 128, 128>}, {pipeline_mode = #tpu.pipeline_mode<synchronous>, transform_indices = @transform_5, window_bounds = array<i64: 128, 1>}, {pipeline_mode = #tpu.pipeline_mode<synchronous>, transform_indices = @transform_6, window_bounds = array<i64: 128, 128>}, {pipeline_mode = #tpu.pipeline_mode<synchronous>, transform_indices = @transform_7, window_bounds = array<i64: 128, 1>}, {pipeline_mode = #tpu.pipeline_mode<synchronous>, transform_indices = @transform_8, window_bounds = array<i64: 128, 128>}, {pipeline_mode = #tpu.pipeline_mode<synchronous>, transform_indices = @transform_9, window_bounds = array<i64: 128, 1>}, {pipeline_mode = #tpu.pipeline_mode<synchronous>, transform_indices = @transform_10, window_bounds = array<i64: 128, 128>}, {pipeline_mode = #tpu.pipeline_mode<synchronous>, transform_indices = @transform_11, window_bounds = array<i64: 1, 128>}, {transform_indices = @transform_12, window_bounds = array<i64: 1, 128, 128>}]} {
    %c0 = arith.constant 0 : index
    %c0_0 = arith.constant 0 : index
    %0 = vector.load %arg5[%c0, %c0_0] : memref<128x128xf32, #tpu.memory_space<vmem>>, vector<128x128xf32>
    %c0_1 = arith.constant 0 : index
    %c0_2 = arith.constant 0 : index
    %c0_3 = arith.constant 0 : index
    %1 = vector.load %arg1[%c0_1, %c0_2, %c0_3] : memref<1x128x128xf32, #tpu.memory_space<vmem>>, vector<1x128x128xf32>
    %2 = vector.shape_cast %1 : vector<1x128x128xf32> to vector<128x128xf32>
    %cst = arith.constant dense<0.000000e+00> : vector<128x128xf32>
    %3 = tpu.matmul %0, %2, %cst {dimension_numbers = #tpu.dot_dimension_numbers<[1], [1], [0], [0], [0, 0, 1, 0], [], []>} : vector<128x128xf32>, vector<128x128xf32>, vector<128x128xf32> -> vector<128x128xf32>
    %c0_4 = arith.constant 0 : index
    %c0_5 = arith.constant 0 : index
    %4 = vector.load %arg6[%c0_4, %c0_5] : memref<128x1xf32, #tpu.memory_space<vmem>>, vector<128x1xf32>
    %5 = vector.broadcast %4 : vector<128x1xf32> to vector<128x128xf32>
    %6 = arith.addf %3, %5 : vector<128x128xf32>
    %c0_6 = arith.constant 0 : index
    %c0_7 = arith.constant 0 : index
    %7 = vector.load %arg14[%c0_6, %c0_7] : memref<128x128xf32, #tpu.memory_space<vmem>>, vector<128x128xf32>
    tpu.vector_store %arg14[%c0_6, %c0_7], %6 {strides = array<i32>} : memref<128x128xf32, #tpu.memory_space<vmem>>, vector<128x128xf32>,
    %c0_8 = arith.constant 0 : index
    %c0_9 = arith.constant 0 : index
    %8 = vector.load %arg7[%c0_8, %c0_9] : memref<128x128xf32, #tpu.memory_space<vmem>>, vector<128x128xf32>
    %c0_10 = arith.constant 0 : index
    %c0_11 = arith.constant 0 : index
    %c0_12 = arith.constant 0 : index
    %9 = vector.load %arg2[%c0_10, %c0_11, %c0_12] : memref<1x128x128xf32, #tpu.memory_space<vmem>>, vector<1x128x128xf32>
    %10 = vector.shape_cast %9 : vector<1x128x128xf32> to vector<128x128xf32>
    %cst_13 = arith.constant dense<0.000000e+00> : vector<128x128xf32>
    %11 = tpu.matmul %8, %10, %cst_13 {dimension_numbers = #tpu.dot_dimension_numbers<[1], [1], [0], [0], [0, 0, 1, 0], [], []>} : vector<128x128xf32>, vector<128x128xf32>, vector<128x128xf32> -> vector<128x128xf32>
    %c0_14 = arith.constant 0 : index
    %c0_15 = arith.constant 0 : index
    %12 = vector.load %arg8[%c0_14, %c0_15] : memref<128x1xf32, #tpu.memory_space<vmem>>, vector<128x1xf32>
    %13 = vector.broadcast %12 : vector<128x1xf32> to vector<128x128xf32>
    %14 = arith.addf %11, %13 : vector<128x128xf32>
    %c0_16 = arith.constant 0 : index
    %c0_17 = arith.constant 0 : index
    %15 = vector.load %arg15[%c0_16, %c0_17] : memref<128x128xf32, #tpu.memory_space<vmem>>, vector<128x128xf32>
    tpu.vector_store %arg15[%c0_16, %c0_17], %14 {strides = array<i32>} : memref<128x128xf32, #tpu.memory_space<vmem>>, vector<128x128xf32>,
    %c0_18 = arith.constant 0 : index
    %c0_19 = arith.constant 0 : index
    %16 = vector.load %arg9[%c0_18, %c0_19] : memref<128x128xf32, #tpu.memory_space<vmem>>, vector<128x128xf32>
    %c0_20 = arith.constant 0 : index
    %c0_21 = arith.constant 0 : index
    %c0_22 = arith.constant 0 : index
    %17 = vector.load %arg3[%c0_20, %c0_21, %c0_22] : memref<1x128x128xf32, #tpu.memory_space<vmem>>, vector<1x128x128xf32>
    %18 = vector.shape_cast %17 : vector<1x128x128xf32> to vector<128x128xf32>
    %cst_23 = arith.constant dense<0.000000e+00> : vector<128x128xf32>
    %19 = tpu.matmul %16, %18, %cst_23 {dimension_numbers = #tpu.dot_dimension_numbers<[1], [1], [0], [0], [0, 0, 1, 0], [], []>} : vector<128x128xf32>, vector<128x128xf32>, vector<128x128xf32> -> vector<128x128xf32>
    %c0_24 = arith.constant 0 : index
    %c0_25 = arith.constant 0 : index
    %20 = vector.load %arg10[%c0_24, %c0_25] : memref<128x1xf32, #tpu.memory_space<vmem>>, vector<128x1xf32>
    %21 = vector.broadcast %20 : vector<128x1xf32> to vector<128x128xf32>
    %22 = arith.addf %19, %21 : vector<128x128xf32>
    %c0_26 = arith.constant 0 : index
    %c0_27 = arith.constant 0 : index
    %23 = vector.load %arg16[%c0_26, %c0_27] : memref<128x128xf32, #tpu.memory_space<vmem>>, vector<128x128xf32>
    tpu.vector_store %arg16[%c0_26, %c0_27], %22 {strides = array<i32>} : memref<128x128xf32, #tpu.memory_space<vmem>>, vector<128x128xf32>,
    %c0_28 = arith.constant 0 : index
    %c0_29 = arith.constant 0 : index
    %24 = vector.load %arg14[%c0_28, %c0_29] : memref<128x128xf32, #tpu.memory_space<vmem>>, vector<32x128xf32>
    %c0_30 = arith.constant 0 : index
    %c0_31 = arith.constant 0 : index
    %25 = vector.load %arg15[%c0_30, %c0_31] : memref<128x128xf32, #tpu.memory_space<vmem>>, vector<32x128xf32>
    %c0_32 = arith.constant 0 : index
    %c0_33 = arith.constant 0 : index
    %26 = vector.load %arg16[%c0_32, %c0_33] : memref<128x128xf32, #tpu.memory_space<vmem>>, vector<32x128xf32>
    %cst_34 = arith.constant dense<0.000000e+00> : vector<128x128xf32>
    %27 = tpu.matmul %24, %25, %cst_34 {dimension_numbers = #tpu.dot_dimension_numbers<[0], [0], [1], [1], [0, 1, 1, 1], [], []>} : vector<32x128xf32>, vector<32x128xf32>, vector<128x128xf32> -> vector<128x128xf32>
    %c0_35 = arith.constant 0 : index
    %c0_36 = arith.constant 0 : index
    %c0_37 = arith.constant 0 : index
    %c0_38 = arith.constant 0 : index
    %28 = vector.load %arg4[%c0_35, %c0_36, %c0_37, %c0_38] : memref<1x4x128x128xf32, #tpu.memory_space<vmem>>, vector<1x1x128x128xf32>
    %29 = vector.shape_cast %28 : vector<1x1x128x128xf32> to vector<128x128xf32>
    %30 = arith.addf %27, %29 : vector<128x128xf32>
    %cst_39 = arith.constant dense<0xFF800000> : vector<128xf32>
    %31 = vector.multi_reduction <maximumf>, %30, %cst_39 [1] : vector<128x128xf32> to vector<128xf32>
    %32 = vector.shape_cast %31 : vector<128xf32> to vector<128x1xf32>
    %33 = vector.broadcast %32 : vector<128x1xf32> to vector<128x128xf32>
    %34 = arith.subf %30, %33 : vector<128x128xf32>
    %35 = math.exp %34 : vector<128x128xf32>
    %cst_40 = arith.constant dense<0.000000e+00> : vector<128xf32>
    %36 = vector.multi_reduction <add>, %35, %cst_40 [1] : vector<128x128xf32> to vector<128xf32>
    %37 = vector.shape_cast %36 : vector<128xf32> to vector<128x1xf32>
    %cst_41 = arith.constant dense<0.000000e+00> : vector<128x32xf32>
    %38 = tpu.matmul %35, %26, %cst_41 {dimension_numbers = #tpu.dot_dimension_numbers<[1], [1], [0], [0], [0, 0, 1, 0], [], []>} : vector<128x128xf32>, vector<32x128xf32>, vector<128x32xf32> -> vector<128x32xf32>
    %39 = tpu.reciprocal %37 {approx = true} : vector<128x1xf32> -> vector<128x1xf32>
    %40 = vector.broadcast %39 : vector<128x1xf32> to vector<128x32xf32>
    %41 = arith.mulf %38, %40 : vector<128x32xf32>
    %c32 = arith.constant 32 : index
    %c0_42 = arith.constant 0 : index
    %42 = vector.load %arg14[%c32, %c0_42] : memref<128x128xf32, #tpu.memory_space<vmem>>, vector<32x128xf32>
    %c32_43 = arith.constant 32 : index
    %c0_44 = arith.constant 0 : index
    %43 = vector.load %arg15[%c32_43, %c0_44] : memref<128x128xf32, #tpu.memory_space<vmem>>, vector<32x128xf32>
    %c32_45 = arith.constant 32 : index
    %c0_46 = arith.constant 0 : index
    %44 = vector.load %arg16[%c32_45, %c0_46] : memref<128x128xf32, #tpu.memory_space<vmem>>, vector<32x128xf32>
    %cst_47 = arith.constant dense<0.000000e+00> : vector<128x128xf32>
    %45 = tpu.matmul %42, %43, %cst_47 {dimension_numbers = #tpu.dot_dimension_numbers<[0], [0], [1], [1], [0, 1, 1, 1], [], []>} : vector<32x128xf32>, vector<32x128xf32>, vector<128x128xf32> -> vector<128x128xf32>
    %c0_48 = arith.constant 0 : index
    %c1 = arith.constant 1 : index
    %c0_49 = arith.constant 0 : index
    %c0_50 = arith.constant 0 : index
    %46 = vector.load %arg4[%c0_48, %c1, %c0_49, %c0_50] : memref<1x4x128x128xf32, #tpu.memory_space<vmem>>, vector<1x1x128x128xf32>
    %47 = vector.shape_cast %46 : vector<1x1x128x128xf32> to vector<128x128xf32>
    %48 = arith.addf %45, %47 : vector<128x128xf32>
    %cst_51 = arith.constant dense<0xFF800000> : vector<128xf32>
    %49 = vector.multi_reduction <maximumf>, %48, %cst_51 [1] : vector<128x128xf32> to vector<128xf32>
    %50 = vector.shape_cast %49 : vector<128xf32> to vector<128x1xf32>
    %51 = vector.broadcast %50 : vector<128x1xf32> to vector<128x128xf32>
    %52 = arith.subf %48, %51 : vector<128x128xf32>
    %53 = math.exp %52 : vector<128x128xf32>
    %cst_52 = arith.constant dense<0.000000e+00> : vector<128xf32>
    %54 = vector.multi_reduction <add>, %53, %cst_52 [1] : vector<128x128xf32> to vector<128xf32>
    %55 = vector.shape_cast %54 : vector<128xf32> to vector<128x1xf32>
    %cst_53 = arith.constant dense<0.000000e+00> : vector<128x32xf32>
    %56 = tpu.matmul %53, %44, %cst_53 {dimension_numbers = #tpu.dot_dimension_numbers<[1], [1], [0], [0], [0, 0, 1, 0], [], []>} : vector<128x128xf32>, vector<32x128xf32>, vector<128x32xf32> -> vector<128x32xf32>
    %57 = tpu.reciprocal %55 {approx = true} : vector<128x1xf32> -> vector<128x1xf32>
    %58 = vector.broadcast %57 : vector<128x1xf32> to vector<128x32xf32>
    %59 = arith.mulf %56, %58 : vector<128x32xf32>
    %c64 = arith.constant 64 : index
    %c0_54 = arith.constant 0 : index
    %60 = vector.load %arg14[%c64, %c0_54] : memref<128x128xf32, #tpu.memory_space<vmem>>, vector<32x128xf32>
    %c64_55 = arith.constant 64 : index
    %c0_56 = arith.constant 0 : index
    %61 = vector.load %arg15[%c64_55, %c0_56] : memref<128x128xf32, #tpu.memory_space<vmem>>, vector<32x128xf32>
    %c64_57 = arith.constant 64 : index
    %c0_58 = arith.constant 0 : index
    %62 = vector.load %arg16[%c64_57, %c0_58] : memref<128x128xf32, #tpu.memory_space<vmem>>, vector<32x128xf32>
    %cst_59 = arith.constant dense<0.000000e+00> : vector<128x128xf32>
    %63 = tpu.matmul %60, %61, %cst_59 {dimension_numbers = #tpu.dot_dimension_numbers<[0], [0], [1], [1], [0, 1, 1, 1], [], []>} : vector<32x128xf32>, vector<32x128xf32>, vector<128x128xf32> -> vector<128x128xf32>
    %c0_60 = arith.constant 0 : index
    %c2 = arith.constant 2 : index
    %c0_61 = arith.constant 0 : index
    %c0_62 = arith.constant 0 : index
    %64 = vector.load %arg4[%c0_60, %c2, %c0_61, %c0_62] : memref<1x4x128x128xf32, #tpu.memory_space<vmem>>, vector<1x1x128x128xf32>
    %65 = vector.shape_cast %64 : vector<1x1x128x128xf32> to vector<128x128xf32>
    %66 = arith.addf %63, %65 : vector<128x128xf32>
    %cst_63 = arith.constant dense<0xFF800000> : vector<128xf32>
    %67 = vector.multi_reduction <maximumf>, %66, %cst_63 [1] : vector<128x128xf32> to vector<128xf32>
    %68 = vector.shape_cast %67 : vector<128xf32> to vector<128x1xf32>
    %69 = vector.broadcast %68 : vector<128x1xf32> to vector<128x128xf32>
    %70 = arith.subf %66, %69 : vector<128x128xf32>
    %71 = math.exp %70 : vector<128x128xf32>
    %cst_64 = arith.constant dense<0.000000e+00> : vector<128xf32>
    %72 = vector.multi_reduction <add>, %71, %cst_64 [1] : vector<128x128xf32> to vector<128xf32>
    %73 = vector.shape_cast %72 : vector<128xf32> to vector<128x1xf32>
    %cst_65 = arith.constant dense<0.000000e+00> : vector<128x32xf32>
    %74 = tpu.matmul %71, %62, %cst_65 {dimension_numbers = #tpu.dot_dimension_numbers<[1], [1], [0], [0], [0, 0, 1, 0], [], []>} : vector<128x128xf32>, vector<32x128xf32>, vector<128x32xf32> -> vector<128x32xf32>
    %75 = tpu.reciprocal %73 {approx = true} : vector<128x1xf32> -> vector<128x1xf32>
    %76 = vector.broadcast %75 : vector<128x1xf32> to vector<128x32xf32>
    %77 = arith.mulf %74, %76 : vector<128x32xf32>
    %c96 = arith.constant 96 : index
    %c0_66 = arith.constant 0 : index
    %78 = vector.load %arg14[%c96, %c0_66] : memref<128x128xf32, #tpu.memory_space<vmem>>, vector<32x128xf32>
    %c96_67 = arith.constant 96 : index
    %c0_68 = arith.constant 0 : index
    %79 = vector.load %arg15[%c96_67, %c0_68] : memref<128x128xf32, #tpu.memory_space<vmem>>, vector<32x128xf32>
    %c96_69 = arith.constant 96 : index
    %c0_70 = arith.constant 0 : index
    %80 = vector.load %arg16[%c96_69, %c0_70] : memref<128x128xf32, #tpu.memory_space<vmem>>, vector<32x128xf32>
    %cst_71 = arith.constant dense<0.000000e+00> : vector<128x128xf32>
    %81 = tpu.matmul %78, %79, %cst_71 {dimension_numbers = #tpu.dot_dimension_numbers<[0], [0], [1], [1], [0, 1, 1, 1], [], []>} : vector<32x128xf32>, vector<32x128xf32>, vector<128x128xf32> -> vector<128x128xf32>
    %c0_72 = arith.constant 0 : index
    %c3 = arith.constant 3 : index
    %c0_73 = arith.constant 0 : index
    %c0_74 = arith.constant 0 : index
    %82 = vector.load %arg4[%c0_72, %c3, %c0_73, %c0_74] : memref<1x4x128x128xf32, #tpu.memory_space<vmem>>, vector<1x1x128x128xf32>
    %83 = vector.shape_cast %82 : vector<1x1x128x128xf32> to vector<128x128xf32>
    %84 = arith.addf %81, %83 : vector<128x128xf32>
    %cst_75 = arith.constant dense<0xFF800000> : vector<128xf32>
    %85 = vector.multi_reduction <maximumf>, %84, %cst_75 [1] : vector<128x128xf32> to vector<128xf32>
    %86 = vector.shape_cast %85 : vector<128xf32> to vector<128x1xf32>
    %87 = vector.broadcast %86 : vector<128x1xf32> to vector<128x128xf32>
    %88 = arith.subf %84, %87 : vector<128x128xf32>
    %89 = math.exp %88 : vector<128x128xf32>
    %cst_76 = arith.constant dense<0.000000e+00> : vector<128xf32>
    %90 = vector.multi_reduction <add>, %89, %cst_76 [1] : vector<128x128xf32> to vector<128xf32>
    %91 = vector.shape_cast %90 : vector<128xf32> to vector<128x1xf32>
    %cst_77 = arith.constant dense<0.000000e+00> : vector<128x32xf32>
    %92 = tpu.matmul %89, %80, %cst_77 {dimension_numbers = #tpu.dot_dimension_numbers<[1], [1], [0], [0], [0, 0, 1, 0], [], []>} : vector<128x128xf32>, vector<32x128xf32>, vector<128x32xf32> -> vector<128x32xf32>
    %93 = tpu.reciprocal %91 {approx = true} : vector<128x1xf32> -> vector<128x1xf32>
    %94 = vector.broadcast %93 : vector<128x1xf32> to vector<128x32xf32>
    %95 = arith.mulf %92, %94 : vector<128x32xf32>
    %96 = tpu.concatenate %41, %59, %77, %95 in 1 : vector<128x32xf32>, vector<128x32xf32>, vector<128x32xf32>, vector<128x32xf32> -> vector<128x128xf32>
    %c0_78 = arith.constant 0 : index
    %c0_79 = arith.constant 0 : index
    %97 = vector.load %arg11[%c0_78, %c0_79] : memref<128x128xf32, #tpu.memory_space<vmem>>, vector<128x128xf32>
    %cst_80 = arith.constant dense<0.000000e+00> : vector<128x128xf32>
    %98 = tpu.matmul %96, %97, %cst_80 {dimension_numbers = #tpu.dot_dimension_numbers<[1], [0], [0], [1], [0, 0, 1, 1], [], []>} : vector<128x128xf32>, vector<128x128xf32>, vector<128x128xf32> -> vector<128x128xf32>
    %c0_81 = arith.constant 0 : index
    %c0_82 = arith.constant 0 : index
    %99 = vector.load %arg12[%c0_81, %c0_82] : memref<1x128xf32, #tpu.memory_space<vmem>>, vector<1x128xf32>
    %100 = vector.broadcast %99 : vector<1x128xf32> to vector<128x128xf32>
    %101 = arith.addf %98, %100 : vector<128x128xf32>
    %c0_83 = arith.constant 0 : index
    %c0_84 = arith.constant 0 : index
    %c0_85 = arith.constant 0 : index
    %102 = vector.load %arg13[%c0_83, %c0_84, %c0_85] : memref<1x128x128xf32, #tpu.memory_space<vmem>>, vector<1x128x128xf32>
    %103 = vector.shape_cast %102 : vector<1x128x128xf32> to vector<128x128xf32>
    %104 = vector.shape_cast %101 : vector<128x128xf32> to vector<1x128x128xf32>
    tpu.vector_store %arg13[%c0_83, %c0_84, %c0_85], %104 {strides = array<i32>} : memref<1x128x128xf32, #tpu.memory_space<vmem>>, vector<1x128x128xf32>,
    return
  }
  func.func @transform_0(%arg0: i32) -> (i32, i32, i32) {
    %c0_i32 = arith.constant 0 : i32
    %c0_i32_0 = arith.constant 0 : i32
    %c0_i32_1 = arith.constant 0 : i32
    return %arg0, %c0_i32, %c0_i32_0 : i32, i32, i32
  }
  func.func @transform_1(%arg0: i32) -> (i32, i32, i32) {
    %c0_i32 = arith.constant 0 : i32
    %c0_i32_0 = arith.constant 0 : i32
    %c0_i32_1 = arith.constant 0 : i32
    return %arg0, %c0_i32, %c0_i32_0 : i32, i32, i32
  }
  func.func @transform_2(%arg0: i32) -> (i32, i32, i32) {
    %c0_i32 = arith.constant 0 : i32
    %c0_i32_0 = arith.constant 0 : i32
    %c0_i32_1 = arith.constant 0 : i32
    return %arg0, %c0_i32, %c0_i32_0 : i32, i32, i32
  }
  func.func @transform_3(%arg0: i32) -> (i32, i32, i32, i32) {
    %c0_i32 = arith.constant 0 : i32
    %c0_i32_0 = arith.constant 0 : i32
    %c0_i32_1 = arith.constant 0 : i32
    %c0_i32_2 = arith.constant 0 : i32
    return %arg0, %c0_i32, %c0_i32_0, %c0_i32_1 : i32, i32, i32, i32
  }
  func.func @transform_4(%arg0: i32) -> (i32, i32) {
    %c0_i32 = arith.constant 0 : i32
    %c0_i32_0 = arith.constant 0 : i32
    %c0_i32_1 = arith.constant 0 : i32
    return %c0_i32, %c0_i32_0 : i32, i32
  }
  func.func @transform_5(%arg0: i32) -> (i32, i32) {
    %c0_i32 = arith.constant 0 : i32
    %c0_i32_0 = arith.constant 0 : i32
    %c0_i32_1 = arith.constant 0 : i32
    return %c0_i32, %c0_i32_0 : i32, i32
  }
  func.func @transform_6(%arg0: i32) -> (i32, i32) {
    %c0_i32 = arith.constant 0 : i32
    %c0_i32_0 = arith.constant 0 : i32
    %c0_i32_1 = arith.constant 0 : i32
    return %c0_i32, %c0_i32_0 : i32, i32
  }
  func.func @transform_7(%arg0: i32) -> (i32, i32) {
    %c0_i32 = arith.constant 0 : i32
    %c0_i32_0 = arith.constant 0 : i32
    %c0_i32_1 = arith.constant 0 : i32
    return %c0_i32, %c0_i32_0 : i32, i32
  }
  func.func @transform_8(%arg0: i32) -> (i32, i32) {
    %c0_i32 = arith.constant 0 : i32
    %c0_i32_0 = arith.constant 0 : i32
    %c0_i32_1 = arith.constant 0 : i32
    return %c0_i32, %c0_i32_0 : i32, i32
  }
  func.func @transform_9(%arg0: i32) -> (i32, i32) {
    %c0_i32 = arith.constant 0 : i32
    %c0_i32_0 = arith.constant 0 : i32
    %c0_i32_1 = arith.constant 0 : i32
    return %c0_i32, %c0_i32_0 : i32, i32
  }
  func.func @transform_10(%arg0: i32) -> (i32, i32) {
    %c0_i32 = arith.constant 0 : i32
    %c0_i32_0 = arith.constant 0 : i32
    %c0_i32_1 = arith.constant 0 : i32
    return %c0_i32, %c0_i32_0 : i32, i32
  }
  func.func @transform_11(%arg0: i32) -> (i32, i32) {
    %c0_i32 = arith.constant 0 : i32
    %c0_i32_0 = arith.constant 0 : i32
    %c0_i32_1 = arith.constant 0 : i32
    return %c0_i32, %c0_i32_0 : i32, i32
  }
  func.func @transform_12(%arg0: i32) -> (i32, i32, i32) {
    %c0_i32 = arith.constant 0 : i32
    %c0_i32_0 = arith.constant 0 : i32
    %c0_i32_1 = arith.constant 0 : i32
    return %arg0, %c0_i32, %c0_i32_0 : i32, i32, i32
  }
}

</mosaic_0001>

<bundles_post_ra>
// kernel: tpu_custom_call.1
= control target key start
LH: loop header
LB: loop body
LE: loop exit
PB: predicated region body
PF: predicated region fallthrough
CT: control target
= control target key end

     0   :  { %s7987_s0 = inlined_call_operand.vmem [shape: f32[2,128,128], index: 0, kind: input, shape index: {}]   ;;  %s7988_s1 = inlined_call_operand.hbm [shape: f32[2,128,128], index: 1, kind: input, shape index: {}]   ;;  %s7989_s2 = inlined_call_operand.hbm [shape: f32[2,128,128], index: 2, kind: input, shape index: {}]   ;;  %s7990_s3 = inlined_call_operand.hbm [shape: f32[2,4,128,128], index: 3, kind: input, shape index: {}]   ;;  %s7991_s4 = inlined_call_operand.vmem [shape: f32[128,128], index: 4, kind: input, shape index: {}]   ;;  %s7992_s5 = inlined_call_operand.vmem [shape: f32[128,1], index: 5, kind: input, shape index: {}]   ;;  %s7993_s6 = inlined_call_operand.hbm [shape: f32[128,128], index: 6, kind: input, shape index: {}]   ;;  %s7994_s7 = inlined_call_operand.vmem [shape: f32[128,1], index: 7, kind: input, shape index: {}]   ;;  %s7995_s8 = inlined_call_operand.hbm [shape: f32[128,128], index: 8, kind: input, shape index: {}]   ;;  %s7996_s9 = inlined_call_operand.vmem [shape: f32[128,1], index: 9, kind: input, shape index: {}]   ;;  %s7997_s10 = inlined_call_operand.hbm [shape: f32[128,128], index: 10, kind: input, shape index: {}]   ;;  %s7998_s11 = inlined_call_operand.vmem [shape: f32[1,128], index: 11, kind: input, shape index: {}]   ;;  %s7999_s12 = inlined_call_operand.hbm [shape: f32[2,128,128], index: 12, kind: output, shape index: {}]  }
   0x1   :  { %8057 = sst [smem:[#allocation80_spill]] %s7989_s2 }
   0x2   :  { %8058 = sst [smem:[#allocation81_spill]] %s7991_s4 }
   0x3   :  { %8059 = sst [smem:[#allocation82_spill]] %s7992_s5 }
   0x4   :  { %8060 = sst [smem:[#allocation83_spill]] %s7993_s6 }
   0x5   :  { %8061 = sst [smem:[#allocation84_spill]] %s7994_s7 }
   0x6   :  { %8062 = sst [smem:[#allocation85_spill]] %s7996_s9 }
   0x7   :  { %8063 = sst [smem:[#allocation86_spill]] %s7998_s11 }
   0x8   :  { %8064 = sst [smem:[#allocation87_spill]] %s7999_s12 }
   0x9   :  { %17 = vsyncpa [#allocation6], 0 }
   0xa   :  { %19 = vsyncpa [#allocation6 + $0x1], 0 }
   0xb   :  { %20 = vsyncpa [#allocation9], 0 }
   0xc   :  { %22 = vsyncpa [#allocation9 + $0x1], 0 }
   0xd   :  { %23 = vsyncpa [#allocation12], 0 }
   0xe   :  { %24 = vsyncpa [#allocation15], 0 }
   0xf   :  { %25 = vsyncpa [#allocation7], 0 }
  0x10   :  { %27 = vsyncpa [#allocation7 + $0x1], 0  ;;  %s6129_s21 = smov 0   ;;  %s6131_s22 = smov 0  }
  0x11   :  { %s6133_s23 = smov 0   ;;  %s6135_s24 = smov 0  }
  0x12 LB: > { %8065 = sst [smem:[#allocation22_spill]] %s6035_s21  ;;  %s6150_s25 = sadd.s32 4294967295, %s6047_s24   ;;  %s6047_s24 = sphi %s6135_s24, %s8230_s24   ;;  %s6043_s23 = sphi %s6133_s23, %s8235_s23   ;;  %s6039_s22 = sphi %s6131_s22, %s8234_s22   ;;  %s6035_s21 = sphi %s6129_s21, %s8233_s21  }
  0x13   : > { %8066 = sst [smem:[#allocation23_spill]] %s6043_s23  ;;  %s4209_s26 = sadd.s32 4294967294, %s6047_s24  }
  0x14   : > { %s6154_s27 = sadd.s32 1, %s6047_s24   ;;  %s66_s28 = sadd.s32 1, %s6043_s23 }
  0x15   : > { %8067 = sst [smem:[#allocation24_spill]] %s6154_s27  ;;  %s63_s29 = ssub.s32 %s6047_s24, %s6154_s27 }
  0x16   : > { %p73_p0 = scmp.ne.s32.totalorder %s6043_s23, %s6039_s22  ;;  %p64_p1 = scmp.eq.s32.totalorder %s63_s29, 0 }
  0x17   : > { %p74_p2 = scmp.eq.s32.totalorder %s6047_s24, 0  ;;  %p79_p3 = scmp.ne.s32.totalorder %s6039_s22, %s6035_s21 }
  0x18   : > { %p8006_p4 = scmp.eq.s32.totalorder %s6150_s25, 0  ;;  %p323_p7 = scmp.eq.s32.totalorder %s6150_s25, 1 }
  0x19   : > { %s6166_s30 = scalar_select %p64_p1, %s6043_s23, %s66_s28  }
  0x1a   : > { %p6168_p5 = por %p74_p2, %p73_p0  ;;  %p6174_p6 = por %p8006_p4, %p79_p3 }
  0x1b   : > { %8068 = sst [smem:[#allocation25_spill]] %s6166_s30  ;;  %p329_p8 = scmp.eq.s32.totalorder %s4209_s26, 1 }
  0x1c   : > { %s8069_s13 = scalar_select %p6168_p5, 1, 0 }
  0x1d   : > { %s8070_s14 = scalar_select %p6174_p6, 1, 0 }
  0x1e   : > { %p4210_p9 = scmp.ge.s32.totalorder %s6047_s24, 1  ;;  %p336_p10 = scmp.lt.s32.totalorder %s6047_s24, 3 }
  0x1f   : > { %p6181_p11 = por %p323_p7, %p73_p0  ;;  %p6185_p12 = por %p329_p8, %p79_p3 }
  0x20   : > { %p6189_p13 = pnand %p4210_p9, %p336_p10  ;;  %s6049_s18 = smov [#allocation11]  }
  0x21   : > { %s8071_s15 = scalar_select %p6181_p11, 1, 0 }
  0x22   : > { %s8073_s16 = scalar_select %p6185_p12, 1, 0 }
  0x23   : > { %8072 = sst [smem:[#allocation26_spill]] %s8071_s15  ;;  %p5341_p1 = pneg %p6189_p13 }
  0x24   : > { %8074 = sst [smem:[#allocation27_spill]] %s8073_s16  ;;  %s354_s19 = sshll.u32 %s6049_s18, 4  ;;  %s355_s19 = int_to_ptr.vmem [resolvable:$true] %s354_s19 }
  0x25   : > { %s8075_s17 = scalar_select %p6189_p13, 1, 0 }
  0x26   : > { %p6197_p2 = pnand %p5341_p1, %p8006_p4  ;;  %s6204_s26 = sand.u32 1, %s6043_s23  }
  0x27   : > { %s8077_s6 = sld [smem:[#allocation83_spill]] }
  0x28   : > { %s8076_s20 = scalar_select %p6197_p2, 1, 0 }
  0x29   : > { %p6215_p8 = pneg %p6197_p2 }
  0x2b   : > { %s8078_s18 = scalar_select %p6215_p8, 1, 0 }
  0x2d   : > { %s5795_s27 = scalar_lea.hbm %s8077_s6, 2048 }
  0x2e   : > { %p5796_p7 = scmp.ne.s32.totalorder %s8077_s6, %s5795_s27  ;;  %p5802_p1 = scmp.lt.u32.totalorder %s5795_s27, %s8077_s6 }
  0x30   : > { %p5798_p9 = pnand %p6215_p8, %p5796_p7 }
  0x32   : > { %p5799_p10 = pneg %p5798_p9 }
  0x34   : > { %p5804_p0 = pnand %p5802_p1, %p5799_p10 }
  0x36   : > { %5807 = shalt.err (!%p5804_p0)
}
  0x37   : > { %s5808_s30 = scalar_lea.vmem %s355_s19, 2048  ;;  %p5816_p11 = scmp.lt.s32.totalorder %s355_s19, %s355_s19 }
  0x38   : > { %p5809_p4 = scmp.ne.s32.totalorder %s355_s19, %s5808_s30  ;;  %p5817_p6 = scmp.lt.s32.totalorder %s5808_s30, %s5808_s30 }
  0x3a   : > { %p5811_p3 = pnand %p5809_p4, %p6215_p8  ;;  %p5818_p13 = por %p5817_p6, %p5816_p11 }
  0x3c   : > { %p5812_p12 = pneg %p5811_p3 }
  0x3e   : > { %p5819_p5 = pnand %p5818_p13, %p5812_p12 }
  0x40   : > { %5822 = shalt.err (!%p5819_p5)
}
  0x41   : > { %s8013_s21 = smov 128   ;;  %s6051_s12 = smov 8  }
  0x42   : > { %5344 = dma.hbm_to_vmem [thread:$0]  (!%p6197_p2), %s8077_s6, 2048, %s355_s19, [#allocation12], %s8013_s21, %s8013_s21, %s6051_s12  }
  0x43   : > { %s8015_s16 = sshll.u32 %s6047_s24, 11  ;;  %p8079_p4 = scmp.ne.s32.totalorder %s8069_s13, 0 }
  0x44   : > { %p8080_p5 = scmp.lt.s32.totalorder %s6047_s24, 2  ;;  %s432_s30 = sand.u32 1, %s6047_s24  }
  0x45   : > { %s8082_s2 = sld [smem:[#allocation80_spill]]  ;;  %s8083_s9 = sshll.u32 %s6204_s26, 7 }
  0x46   : > { %p6239_p6 = pnand %p8080_p5, %p8079_p4  ;;  %s436_s19 = scalar_lea.vmem [#allocation8], %s8083_s9 }
  0x47   : > { %s443_s13 = sshll.u32 %s436_s19, 4  ;;  %s6255_s23 = scalar_lea.sflag [#allocation9], %s432_s30  ;;  %s6253_s13 = int_to_ptr.vmem [resolvable:$true] %s443_s13 }
  0x48   : > { %s8081_s29 = scalar_select %p6239_p6, 1, 0 }
  0x49   : > { %p6261_p12 = pneg %p6239_p6 }
  0x4b   : > { %s6249_s11 = scalar_lea.hbm %s8082_s2, %s8015_s16  ;;  %s5828_s9 = scalar_lea.hbm %s8082_s2, 4096 }
  0x4c   : > { %s5823_s27 = scalar_lea.hbm %s6249_s11, 2048  ;;  %p5829_p3 = scmp.lt.u32.totalorder %s6249_s11, %s8082_s2 }
  0x4d   : > { %p5824_p11 = scmp.ne.s32.totalorder %s6249_s11, %s5823_s27  ;;  %p5830_p7 = scmp.lt.u32.totalorder %s5828_s9, %s5823_s27 }
  0x4e   : > { %s8084_s21 = scalar_select %p6261_p12, 1, 0 }
  0x4f   : > { %p5826_p13 = pnand %p6261_p12, %p5824_p11  ;;  %p5831_p9 = por %p5830_p7, %p5829_p3 }
  0x50   : > { %p5832_p10 = scmp.lt.u32.totalorder %s5823_s27, %s6249_s11 }
  0x51   : > { %p5827_p0 = pneg %p5826_p13 }
  0x52   : > { %p5833_p1 = por %p5832_p10, %p5831_p9 }
  0x54   : > { %p5834_p4 = pnand %p5833_p1, %p5827_p0 }
  0x56   : > { %5837 = shalt.err (!%p5834_p4)
}
  0x57   : > { %s5838_s30 = scalar_lea.vmem %s6253_s13, 2048  ;;  %s6052_s15 = smov [#allocation8]  }
  0x58   : > { %p5839_p5 = scmp.ne.s32.totalorder %s6253_s13, %s5838_s30  ;;  %s5843_s28 = sshll.u32 %s6052_s15, 4  ;;  %s5844_s28 = int_to_ptr.vmem [resolvable:$false] %s5843_s28 }
  0x59   : > { %s5845_s16 = scalar_lea.vmem %s5844_s28, 4096  ;;  %p5846_p2 = scmp.lt.s32.totalorder %s6253_s13, %s5844_s28 }
  0x5a   : > { %p5841_p11 = pnand %p5839_p5, %p6261_p12  ;;  %p5847_p8 = scmp.lt.s32.totalorder %s5845_s16, %s5838_s30 }
  0x5c   : > { %p5842_p13 = pneg %p5841_p11  ;;  %p5848_p3 = por %p5847_p8, %p5846_p2 }
  0x5e   : > { %p5849_p7 = pnand %p5848_p3, %p5842_p13 }
  0x60   : > { %5852 = shalt.err (!%p5849_p7)
}
  0x61   : > { %s8085_s27 = smov 128   ;;  %s6053_s9 = smov [#allocation13]  }
  0x62   : > { %5357 = dma.hbm_to_vmem [thread:$0]  (!%p6239_p6), %s6249_s11, 2048, %s6253_s13, %s6255_s23, %s8085_s27, %s8085_s27, %s6051_s12  }
  0x63   : > { %s370_s19 = sshll.u32 %s6053_s9, 4  ;;  %s6054_s15 = smov [#allocation14]   ;;  %s371_s19 = int_to_ptr.vmem [resolvable:$true] %s370_s19 }
  0x64   : > { %s386_s2 = sshll.u32 %s6054_s15, 4  ;;  %s5853_s16 = scalar_lea.hbm %s7995_s8, 2048  ;;  %s387_s2 = int_to_ptr.vmem [resolvable:$true] %s386_s2 }
  0x65   : > { %p5854_p2 = scmp.ne.s32.totalorder %s7995_s8, %s5853_s16  ;;  %p8086_p8 = scmp.ne.s32.totalorder %s8078_s18, 0 }
  0x66   : > { %p5860_p10 = scmp.lt.u32.totalorder %s5853_s16, %s7995_s8 }
  0x67   : > { %p5856_p0 = pnand %p5854_p2, %p8086_p8 }
  0x69   : > { %p5857_p9 = pneg %p5856_p0 }
  0x6b   : > { %p5862_p1 = pnand %p5860_p10, %p5857_p9 }
  0x6d   : > { %5865 = shalt.err (!%p5862_p1)
}
  0x6e   : > { %s5866_s11 = scalar_lea.vmem %s371_s19, 2048  ;;  %p5874_p13 = scmp.lt.s32.totalorder %s371_s19, %s371_s19 }
  0x6f   : > { %p5867_p4 = scmp.ne.s32.totalorder %s371_s19, %s5866_s11  ;;  %p5875_p3 = scmp.lt.s32.totalorder %s5866_s11, %s5866_s11 }
  0x71   : > { %p5869_p5 = pnand %p5867_p4, %p8086_p8  ;;  %p5876_p7 = por %p5875_p3, %p5874_p13 }
  0x73   : > { %p5870_p11 = pneg %p5869_p5 }
  0x75   : > { %p5877_p6 = pnand %p5876_p7, %p5870_p11 }
  0x77   : > { %5880 = shalt.err (!%p5877_p6)
}
  0x78   : > { %p8087_p2 = scmp.ne.s32.totalorder %s8076_s20, 0  ;;  %s5881_s13 = scalar_lea.hbm %s7997_s10, 2048 }
  0x79   : > { %p5882_p0 = scmp.ne.s32.totalorder %s7997_s10, %s5881_s13  ;;  %p5888_p10 = scmp.lt.u32.totalorder %s5881_s13, %s7997_s10 }
  0x7a   : > { %5347 = dma.hbm_to_vmem [thread:$0]  (!%p8087_p2), %s7995_s8, 2048, %s371_s19, [#allocation12], %s8085_s27, %s8085_s27, %s6051_s12  }
  0x7b   : > { %p5884_p6 = pnand %p5882_p0, %p8086_p8 }
  0x7d   : > { %p5885_p9 = pneg %p5884_p6 }
  0x7f   : > { %p5890_p1 = pnand %p5888_p10, %p5885_p9 }
  0x81   : > { %5893 = shalt.err (!%p5890_p1)
}
  0x82   : > { %s5894_s16 = scalar_lea.vmem %s387_s2, 2048  ;;  %p5902_p13 = scmp.lt.s32.totalorder %s387_s2, %s387_s2 }
  0x83   : > { %p5895_p4 = scmp.ne.s32.totalorder %s387_s2, %s5894_s16  ;;  %p5903_p3 = scmp.lt.s32.totalorder %s5894_s16, %s5894_s16 }
  0x85   : > { %p5897_p5 = pnand %p5895_p4, %p8086_p8  ;;  %p5904_p7 = por %p5903_p3, %p5902_p13 }
  0x87   : > { %p5898_p11 = pneg %p5897_p5 }
  0x89   : > { %p5905_p12 = pnand %p5904_p7, %p5898_p11 }
  0x8b   : > { %5908 = shalt.err (!%p5905_p12)
}
  0x8c   : > { %5350 = dma.hbm_to_vmem [thread:$0]  (!%p8087_p2), %s7997_s10, 2048, %s387_s2, [#allocation15], %s8085_s27, %s8085_s27, %s6051_s12  }
  0x8d   : > { %s8088_s18 = sshll.u32 %s6047_s24, 11  ;;  %s8089_s7 = sshll.u32 %s6204_s26, 7 }
  0x8e   : > { %s6335_s6 = scalar_lea.hbm %s7988_s1, %s8088_s18  ;;  %s415_s20 = scalar_lea.vmem [#allocation5], %s8089_s7 }
  0x8f   : > { %s422_s13 = sshll.u32 %s415_s20, 4  ;;  %s4221_s9 = sshll.u32 %s6204_s26, 9  ;;  %s6340_s13 = int_to_ptr.vmem [resolvable:$true] %s422_s13 }
  0x90   : > { %s412_s15 = scalar_lea.sflag [#allocation6], %s6204_s26  ;;  %s5909_s28 = scalar_lea.hbm %s6335_s6, 2048 }
  0x91   : > { %p5910_p12 = scmp.ne.s32.totalorder %s6335_s6, %s5909_s28  ;;  %p8090_p8 = scmp.ne.s32.totalorder %s8084_s21, 0 }
  0x92   : > { %s5914_s16 = scalar_lea.hbm %s7988_s1, 4096  ;;  %p5915_p6 = scmp.lt.u32.totalorder %s6335_s6, %s7988_s1 }
  0x93   : > { %p5912_p2 = pnand %p5910_p12, %p8090_p8  ;;  %p5916_p9 = scmp.lt.u32.totalorder %s5914_s16, %s5909_s28 }
  0x94   : > { %p5918_p1 = scmp.lt.u32.totalorder %s5909_s28, %s6335_s6 }
  0x95   : > { %p5913_p0 = pneg %p5912_p2  ;;  %p5917_p10 = por %p5916_p9, %p5915_p6 }
  0x97   : > { %p5919_p4 = por %p5918_p1, %p5917_p10 }
  0x99   : > { %p5920_p5 = pnand %p5919_p4, %p5913_p0 }
  0x9b   : > { %5923 = shalt.err (!%p5920_p5)
}
  0x9c   : > { %s5924_s18 = scalar_lea.vmem %s6340_s13, 2048  ;;  %s6055_s4 = smov [#allocation5]  }
  0x9d   : > { %p5925_p11 = scmp.ne.s32.totalorder %s6340_s13, %s5924_s18  ;;  %s5929_s5 = sshll.u32 %s6055_s4, 4  ;;  %s5930_s5 = int_to_ptr.vmem [resolvable:$false] %s5929_s5 }
  0x9e   : > { %s5931_s7 = scalar_lea.vmem %s5930_s5, 4096  ;;  %p5932_p7 = scmp.lt.s32.totalorder %s6340_s13, %s5930_s5 }
  0x9f   : > { %p5927_p13 = pnand %p5925_p11, %p8090_p8  ;;  %p5933_p12 = scmp.lt.s32.totalorder %s5931_s7, %s5924_s18 }
  0xa1   : > { %p5928_p3 = pneg %p5927_p13  ;;  %p5934_p2 = por %p5933_p12, %p5932_p7 }
  0xa3   : > { %p5935_p6 = pnand %p5934_p2, %p5928_p3 }
  0xa5   : > { %5938 = shalt.err (!%p5935_p6)
}
  0xa6   : > { %p8091_p0 = scmp.ne.s32.totalorder %s8081_s29, 0  ;;  %s4354_s20 = sshll.u32 %s6047_s24, 13 }
  0xa7   : > { %s457_s28 = scalar_lea.vmem [#allocation10], %s4221_s9  ;;  %s6375_s19 = scalar_lea.hbm %s7990_s3, %s4354_s20 }
  0xa8   : > { %5354 = dma.hbm_to_vmem [thread:$0]  (!%p8091_p0), %s6335_s6, 2048, %s6340_s13, %s412_s15, %s8085_s27, %s8085_s27, %s6051_s12  }
  0xa9   : > { %s464_s2 = sshll.u32 %s457_s28, 4  ;;  %s5939_s11 = scalar_lea.hbm %s6375_s19, 8192  ;;  %s6377_s2 = int_to_ptr.vmem [resolvable:$true] %s464_s2 }
  0xaa   : > { %p5940_p9 = scmp.ne.s32.totalorder %s6375_s19, %s5939_s11  ;;  %s5944_s13 = scalar_lea.hbm %s7990_s3, 16384 }
  0xab   : > { %p5945_p4 = scmp.lt.u32.totalorder %s6375_s19, %s7990_s3  ;;  %p5946_p5 = scmp.lt.u32.totalorder %s5944_s13, %s5939_s11 }
  0xac   : > { %p5942_p10 = pnand %p5940_p9, %p8090_p8  ;;  %p5948_p13 = scmp.lt.u32.totalorder %s5939_s11, %s6375_s19 }
  0xad   : > { %p5947_p11 = por %p5946_p5, %p5945_p4 }
  0xae   : > { %p5943_p1 = pneg %p5942_p10 }
  0xaf   : > { %p5949_p3 = por %p5948_p13, %p5947_p11 }
  0xb1   : > { %p5950_p7 = pnand %p5949_p3, %p5943_p1 }
  0xb3   : > { %5953 = shalt.err (!%p5950_p7)
}
  0xb4   : > { %s5954_s18 = scalar_lea.vmem %s6377_s2, 8192  ;;  %s6056_s4 = smov [#allocation10]  }
  0xb5   : > { %p5955_p12 = scmp.ne.s32.totalorder %s6377_s2, %s5954_s18  ;;  %s5959_s5 = sshll.u32 %s6056_s4, 4  ;;  %s5960_s5 = int_to_ptr.vmem [resolvable:$false] %s5959_s5 }
  0xb6   : > { %s5961_s7 = scalar_lea.vmem %s5960_s5, 16384  ;;  %p5962_p9 = scmp.lt.s32.totalorder %s6377_s2, %s5960_s5 }
  0xb7   : > { %p5957_p2 = pnand %p5955_p12, %p8090_p8  ;;  %p5963_p10 = scmp.lt.s32.totalorder %s5961_s7, %s5954_s18 }
  0xb9   : > { %p5958_p6 = pneg %p5957_p2  ;;  %p5964_p4 = por %p5963_p10, %p5962_p9 }
  0xbb   : > { %p5965_p5 = pnand %p5964_p4, %p5958_p6 }
  0xbd   : > { %5968 = shalt.err (!%p5965_p5)
}
  0xbe   : > { %5360 = dma.hbm_to_vmem [thread:$0]  (!%p8091_p0), %s6375_s19, 8192, %s6377_s2, %s6255_s23, %s8085_s27, %s8085_s27, %s6051_s12  }
  0xbf   : > { %p8092_p8 = scmp.ne.s32.totalorder %s8075_s17, 0 }
  0xc1   : > { %476 = sbr.rel (%p8092_p8) target bundleno = 2327 (0x917), region = 68 }
  0xc8   : > { %s6407_s21 = sand.u32 1, %s6039_s22   ;;  %p8093_p1 = scmp.ne.s32.totalorder %s8070_s14, 0 }
  0xc9   : > { %s6410_s20 = sshll.u32 %s6407_s21, 7  ;;  %s479_s29 = scalar_lea.sflag [#allocation6], %s6407_s21 }
  0xca   : > { %s6414_s28 = scalar_lea.vmem [#allocation5], %s6410_s20 }
  0xcb   : > { %6014 = dma.done.wait (%p8093_p1), %s479_s29, 2048  }
  0xcc   : > { %6016 = vsyncadd (%p8093_p1), %s479_s29, 4294965248  ;;  %s487_s17 = sand.u32 1, %s6150_s25   ;;  %s6422_s23 = scalar_lea.vmem [#allocation8], %s6410_s20 }
  0xcd   : > { %s488_s12 = scalar_lea.sflag [#allocation9], %s487_s17 }
  0xce   : > { %6018 = dma.done.wait (%p8093_p1), %s488_s12, 10240  }
  0xcf   : > { %6020 = vsyncadd (%p8093_p1), %s488_s12, 4294957056  ;;  %s4227_s27 = sshll.u32 %s6407_s21, 9  ;;  %p8094_p0 = scmp.eq.s32.totalorder %s6150_s25, 0 }
  0xd0   : > { %s6429_s2 = scalar_lea.vmem [#allocation10], %s4227_s27 }
  0xd1   : > { %6022 = dma.done.wait (%p8094_p0), [#allocation12], 4096   ;;  %p8095_p11 = pmov %p8094_p0 }
  0xd2   : > { %p8096_p13 = pmov %p8094_p0 }
  0xd3   : > { %6024 = vsyncadd (%p8095_p11), [#allocation12], 4294963200 }
  0xd4   : > { %6026 = dma.done.wait (%p8096_p13), [#allocation15], 2048   ;;  %p8097_p3 = pmov %p8094_p0 }
  0xd5   : > { %p568_p7 = scmp.lt.s32.totalorder %s6150_s25, 1  ;;  %v6057_v0 = vmov 0   ;;  %v878_v3 = vld [vmem:[%s6414_s28] sm:$0xff]  ;;  %v879_v5 = vld [vmem:[%s6414_s28 + $0x8] sm:$0xff]  ;;  %v880_v10 = vld [vmem:[%s6414_s28 + $0x10] sm:$0xff]  ;;  %s8098_s13 = sld [smem:[#allocation81_spill]] }
  0xd6   : > { %6028 = vsyncadd (%p8097_p3), [#allocation15], 4294965248  ;;  %5418 = vset.pattern.permute.xlu1 %v6057_v0  ;;  %5417 = vset.pattern.permute.xlu0 %v6057_v0  ;;  %v5157_v8 = vpack.c.bf16 %v879_v5, %v878_v3  ;;  %v881_v11 = vld [vmem:[%s6414_s28 + $0x18] sm:$0xff]  ;;  %v882_v15 = vld [vmem:[%s6414_s28 + $0x20] sm:$0xff]  ;;  %s8099_s18 = sld [smem:[#allocation82_spill]]  ;;  %s8100_s17 = sld [smem:[#allocation84_spill]] }
  0xd7   : > { %s569_s14 = scalar_select %p568_p7, %s6150_s25, 1  ;;  %v5161_v12 = vpack.c.bf16 %v881_v11, %v880_v10  ;;  %v883_v16 = vld [vmem:[%s6414_s28 + $0x28] sm:$0xff]  ;;  %v862_v20 = vld [vmem:[#allocation11] sm:$0xff]  ;;  %v884_v23 = vld [vmem:[%s6414_s28 + $0x30] sm:$0xff]  ;;  %vm1500_vm0 = vcmask 261120   ;;  %vm3820_vm1 = vcmask 523264  }
  0xd8   : > { %5158 = vmatprep.subr.bf16.mxu1 %v5157_v8  ;;  %v5165_v18 = vpack.c.bf16 %v883_v16, %v882_v15  ;;  %4733 = vmatprep.mubr.f32.mxu1 %v862_v20  ;;  %v885_v24 = vld [vmem:[%s6414_s28 + $0x38] sm:$0xff]  ;;  %v886_v30 = vld [vmem:[%s6414_s28 + $0x40] sm:$0xff]  ;;  %v887_v31 = vld [vmem:[%s6414_s28 + $0x48] sm:$0xff]  ;;  %s8101_s6 = sld [smem:[#allocation85_spill]]  ;;  %s6059_s5 = smov 64   ;;  %vm3837_vm2 = vcmask 785408  }
  0xd9   : > { %s4355_s30 = sshll.u32 %s569_s14, 7  ;;  %5160 = vmatpush3.bf16.xpose.msra.mxu1 %v5157_v8  ;;  %v5169_v26 = vpack.c.bf16 %v885_v24, %v884_v23  ;;  %v5173_v34 = vpack.c.bf16 %v887_v31, %v886_v30  ;;  %v888_v38 = vld [vmem:[%s6414_s28 + $0x50] sm:$0xff]  ;;  %v889_v39 = vld [vmem:[%s6414_s28 + $0x58] sm:$0xff]  ;;  %v890_v49 = vld [vmem:[%s6414_s28 + $0x60] sm:$0xff]  ;;  %s6060_s7 = smov 96  }
  0xda   : > { %s6444_s11 = scalar_lea.vmem %s7987_s0, %s4355_s30  ;;  %5162 = vmatprep.subr.bf16.mxu1 %v5161_v12  ;;  %v5177_v44 = vpack.c.bf16 %v889_v39, %v888_v38  ;;  %v891_v50 = vld [vmem:[%s6414_s28 + $0x68] sm:$0xff]  ;;  %v892_v58 = vld [vmem:[%s6414_s28 + $0x70] sm:$0xff]  ;;  %v893_v59 = vld [vmem:[%s6414_s28 + $0x78] sm:$0xff]  ;;  %s8222_s27 = sld [smem:[#allocation86_spill]] }
  0xdb   : > { %v589_v1 = vld [vmem:[%s6444_s11] sm:$0xff]  ;;  %v590_v2 = vld [vmem:[%s6444_s11 + $0x8] sm:$0xff]  ;;  %v591_v6 = vld [vmem:[%s6444_s11 + $0x10] sm:$0xff]  ;;  %v5181_v54 = vpack.c.bf16 %v891_v50, %v890_v49  ;;  %v5185_v62 = vpack.c.bf16 %v893_v59, %v892_v58  ;;  %s7918_s14 = scalar_lea.vmem [#allocation16], %s6410_s20  ;;  %s8223_s20 = sld [smem:[#allocation26_spill]] }
  0xdc   : > { %v5125_v4 = vpack.c.bf16 %v590_v2, %v589_v1  ;;  %v592_v7 = vld [vmem:[%s6444_s11 + $0x18] sm:$0xff]  ;;  %v593_v13 = vld [vmem:[%s6444_s11 + $0x20] sm:$0xff]  ;;  %v594_v14 = vld [vmem:[%s6444_s11 + $0x28] sm:$0xff]  ;;  %s4356_s30 = sshll.u32 %s6150_s25, 11  ;;  %s4052_s16 = sshll.u32 %s7918_s14, 4  ;;  %s7941_s16 = int_to_ptr.vmem [resolvable:$true] %s4052_s16 }
  0xdd   : > { %v5129_v9 = vpack.c.bf16 %v592_v7, %v591_v6  ;;  %v5133_v17 = vpack.c.bf16 %v594_v14, %v593_v13  ;;  %v573_v19 = vld [vmem:[%s8098_s13] sm:$0xff]  ;;  %v595_v21 = vld [vmem:[%s6444_s11 + $0x30] sm:$0xff]  ;;  %v596_v22 = vld [vmem:[%s6444_s11 + $0x38] sm:$0xff]  ;;  %s4039_s25 = scalar_lea.sflag [#allocation7], %s6407_s21  ;;  %s5969_s9 = scalar_lea.vmem %s7941_s16, 2048 }
  0xde   : > { %5126 = vmatprep.subr.bf16.mxu0 %v5125_v4  ;;  %4677 = vmatprep.mubr.f32.mxu0 %v573_v19  ;;  %v5137_v25 = vpack.c.bf16 %v596_v22, %v595_v21  ;;  %v607_v27 = vld [vmem:[%s8099_s18 + $0x10] sm:$0xff]  ;;  %v597_v28 = vld [vmem:[%s6444_s11 + $0x40] sm:$0xff]  ;;  %v598_v29 = vld [vmem:[%s6444_s11 + $0x48] sm:$0xff]  ;;  %p5970_p12 = scmp.ne.s32.totalorder %s7941_s16, %s5969_s9  ;;  %s6061_s15 = smov [#allocation16]  }
  0xdf   : > { %5128 = vmatpush3.bf16.xpose.msra.mxu0 %v5125_v4  ;;  %633 = vperm.xlu1 %5418, %v607_v27   ;;  %v608_v32 = vld [vmem:[%s8099_s18 + $0x18] sm:$0xff]  ;;  %v5141_v33 = vpack.c.bf16 %v598_v29, %v597_v28  ;;  %v895_v35 = vld [vmem:[%s8100_s17 + $0x8] sm:$0xff]  ;;  %v599_v36 = vld [vmem:[%s6444_s11 + $0x50] sm:$0xff] }
  0xe0   : > { %5130 = vmatprep.subr.bf16.mxu0 %v5129_v9  ;;  %v600_v37 = vld [vmem:[%s6444_s11 + $0x58] sm:$0xff]  ;;  %v605_v41 = vld [vmem:[%s8099_s18] sm:$0xff]  ;;  %v606_v43 = vld [vmem:[%s8099_s18 + $0x8] sm:$0xff] }
  0xe1   : > { %5164 = vmatpush3.bf16.xpose.msra.mxu1 %v5161_v12  ;;  %v897_v40 = vld [vmem:[%s8100_s17 + $0x18] sm:$0xff]  ;;  %623 = vperm.xlu0 %5417, %v605_v41   ;;  %v5145_v42 = vpack.c.bf16 %v600_v37, %v599_v36  ;;  %v609_v45 = vld [vmem:[%s8099_s18 + $0x20] sm:$0xff]  ;;  %v602_v48 = vld [vmem:[%s6444_s11 + $0x68] sm:$0xff]  ;;  %p8225_p2 = scmp.ne.s32.totalorder %s8223_s20, 0 }
  0xe2   : > { %5166 = vmatprep.subr.bf16.mxu1 %v5165_v18  ;;  %v894_v46 = vld [vmem:[%s8100_s17] sm:$0xff]  ;;  %v610_v51 = vld [vmem:[%s8099_s18 + $0x28] sm:$0xff]  ;;  %v896_v53 = vld [vmem:[%s8100_s17 + $0x10] sm:$0xff] }
  0xe3   : > { %638 = vperm.xlu1 %5418, %v608_v32   ;;  %v601_v47 = vld [vmem:[%s6444_s11 + $0x60] sm:$0xff]  ;;  %v611_v55 = vld [vmem:[%s8099_s18 + $0x30] sm:$0xff]  ;;  %v604_v57 = vld [vmem:[%s6444_s11 + $0x78] sm:$0xff]  ;;  %p5971_p6 = pnand %p5970_p12, %p8225_p2 }
  0xe4   : > { %v5149_v52 = vpack.c.bf16 %v602_v48, %v601_v47  ;;  %v603_v56 = vld [vmem:[%s6444_s11 + $0x70] sm:$0xff]  ;;  %v612_v60 = vld [vmem:[%s8099_s18 + $0x38] sm:$0xff]  ;;  %v1183_v63 = vld [vmem:[%s8101_s6] sm:$0xff]  ;;  %s8224_s11 = sld [smem:[#allocation87_spill]] }
  0xe5   : > { %628 = vperm.xlu0 %5417, %v606_v43   ;;  %v5153_v61 = vpack.c.bf16 %v604_v57, %v603_v56  ;;  %v1167_v0 = vld [vmem:[%s6422_s23] sm:$0xff]  ;;  %v1168_v1 = vld [vmem:[%s6422_s23 + $0x8] sm:$0xff]  ;;  %v1185_v4 = vld [vmem:[%s8101_s6 + $0x10] sm:$0xff]  ;;  %p5972_p9 = pneg %p5971_p6 }
  0xe6   : > { %v1184_v2 = vld [vmem:[%s8101_s6 + $0x8] sm:$0xff]  ;;  %v5189_v3 = vpack.c.bf16 %v1168_v1, %v1167_v0  ;;  %v1169_v5 = vld [vmem:[%s6422_s23 + $0x10] sm:$0xff]  ;;  %v1170_v6 = vld [vmem:[%s6422_s23 + $0x18] sm:$0xff] }
  0xe7   : > { %5132 = vmatpush3.bf16.xpose.msra.mxu0 %v5129_v9  ;;  %917 = vperm.xlu1 %5418, %v895_v35   ;;  %v898_v7 = vld [vmem:[%s8100_s17 + $0x20] sm:$0xff]  ;;  %v574_v8 = vld [vmem:[%s8098_s13 + $0x8] sm:$0xff]  ;;  %v575_v10 = vld [vmem:[%s8098_s13 + $0x10] sm:$0xff]  ;;  %v5193_v12 = vpack.c.bf16 %v1170_v6, %v1169_v5 }
  0xe8   : > { %5134 = vmatprep.subr.bf16.mxu0 %v5133_v17  ;;  %v863_v9 = vld [vmem:[#allocation11 + $0x8] sm:$0xff]  ;;  %v864_v11 = vld [vmem:[#allocation11 + $0x10] sm:$0xff]  ;;  %v576_v14 = vld [vmem:[%s8098_s13 + $0x18] sm:$0xff] }
  0xe9   : > { %5168 = vmatpush3.bf16.xpose.msra.mxu1 %v5165_v18  ;;  %912 = vperm.xlu0 %5417, %v894_v46   ;;  %v899_v13 = vld [vmem:[%s8100_s17 + $0x28] sm:$0xff]  ;;  %v865_v15 = vld [vmem:[#allocation11 + $0x18] sm:$0xff]  ;;  %v577_v16 = vld [vmem:[%s8098_s13 + $0x20] sm:$0xff] }
  0xea   : > { %5170 = vmatprep.subr.bf16.mxu1 %v5169_v26  ;;  %v1171_v18 = vld [vmem:[%s6422_s23 + $0x20] sm:$0xff]  ;;  %v1172_v19 = vld [vmem:[%s6422_s23 + $0x28] sm:$0xff]  ;;  %v900_v20 = vld [vmem:[%s8100_s17 + $0x30] sm:$0xff]  ;;  %s7939_s26 = scalar_lea.hbm %s8224_s11, %s4356_s30 }
  0xeb   : > { %927 = vperm.xlu1 %5418, %v897_v40   ;;  %v578_v21 = vld [vmem:[%s8098_s13 + $0x28] sm:$0xff]  ;;  %v579_v23 = vld [vmem:[%s8098_s13 + $0x30] sm:$0xff]  ;;  %v580_v27 = vld [vmem:[%s8098_s13 + $0x38] sm:$0xff] }
  0xec   : > { %v867_v22 = vld [vmem:[#allocation11 + $0x28] sm:$0xff]  ;;  %v868_v24 = vld [vmem:[#allocation11 + $0x30] sm:$0xff]  ;;  %v869_v28 = vld [vmem:[#allocation11 + $0x38] sm:$0xff] }
  0xed   : > { %922 = vperm.xlu0 %5417, %v896_v53   ;;  %v581_v29 = vld [vmem:[%s8098_s13 + $0x40] sm:$0xff]  ;;  %v1173_v31 = vld [vmem:[%s6422_s23 + $0x30] sm:$0xff]  ;;  %v1174_v32 = vld [vmem:[%s6422_s23 + $0x38] sm:$0xff] }
  0xee   : > { %v870_v30 = vld [vmem:[#allocation11 + $0x40] sm:$0xff]  ;;  %v871_v35 = vld [vmem:[#allocation11 + $0x48] sm:$0xff]  ;;  %v583_v36 = vld [vmem:[%s8098_s13 + $0x50] sm:$0xff]  ;;  %v5201_v38 = vpack.c.bf16 %v1174_v32, %v1173_v31 }
  0xef   : > { %5136 = vmatpush3.bf16.xpose.msra.mxu0 %v5133_v17  ;;  %643 = vperm.xlu1 %5418, %v609_v45   ;;  %v866_v17 = vld [vmem:[#allocation11 + $0x20] sm:$0xff]  ;;  %v872_v37 = vld [vmem:[#allocation11 + $0x50] sm:$0xff]  ;;  %v903_v39 = vld [vmem:[%s8100_s17 + $0x48] sm:$0xff] }
  0xf0   : > { %5138 = vmatprep.subr.bf16.mxu0 %v5137_v25  ;;  %v584_v40 = vld [vmem:[%s8098_s13 + $0x58] sm:$0xff]  ;;  %v1175_v43 = vld [vmem:[%s6422_s23 + $0x40] sm:$0xff]  ;;  %v619_v45 = vld [vmem:[%s8099_s18 + $0x70] sm:$0xff] }
  0xf1   : > { %5172 = vmatpush3.bf16.xpose.msra.mxu1 %v5169_v26  ;;  %v901_v26 = vld [vmem:[%s8100_s17 + $0x38] sm:$0xff]  ;;  %v586_v46 = vld [vmem:[%s8098_s13 + $0x68] sm:$0xff]  ;;  %v587_v47 = vld [vmem:[%s8098_s13 + $0x70] sm:$0xff] }
  0xf2   : > { %5174 = vmatprep.subr.bf16.mxu1 %v5173_v34  ;;  %v873_v41 = vld [vmem:[#allocation11 + $0x58] sm:$0xff]  ;;  %v1180_v56 = vld [vmem:[%s6422_s23 + $0x68] sm:$0xff]  ;;  %v1181_v58 = vld [vmem:[%s6422_s23 + $0x70] sm:$0xff] }
  0xf3   : > { %648 = vperm.xlu1 %5418, %v610_v51   ;;  %v905_v49 = vld [vmem:[%s8100_s17 + $0x58] sm:$0xff]  ;;  %v1151_v51 = vld [vmem:[#allocation13] sm:$0xff] }
  0xf4   : > { %v588_v50 = vld [vmem:[%s8098_s13 + $0x78] sm:$0xff] }
  0xf5   : > { %v1178_v53 = vld [vmem:[%s6422_s23 + $0x58] sm:$0xff] }
  0xf6   : > { %v1182_v59 = vld [vmem:[%s6422_s23 + $0x78] sm:$0xff] }
  0xf7   : > { %5140 = vmatpush3.bf16.xpose.msra.mxu0 %v5137_v25  ;;  %653 = vperm.xlu1 %5418, %v611_v55   ;;  %v5197_v25 = vpack.c.bf16 %v1172_v19, %v1171_v18  ;;  %v1179_v55 = vld [vmem:[%s6422_s23 + $0x60] sm:$0xff] }
  0xf8   : > { %5142 = vmatprep.subr.bf16.mxu0 %v5141_v33  ;;  %v5213_v57 = vpack.c.bf16 %v1180_v56, %v1179_v55 }
  0xf9   : > { %5176 = vmatpush3.bf16.xpose.msra.mxu1 %v5173_v34  ;;  %v582_v34 = vld [vmem:[%s8098_s13 + $0x48] sm:$0xff] }
  0xfa   : > { %5178 = vmatprep.subr.bf16.mxu1 %v5177_v44 }
  0xfb   : > { %658 = vperm.xlu1 %5418, %v612_v60   ;;  %v5217_v60 = vpack.c.bf16 %v1182_v59, %v1181_v58 }
  0xff   : > { %5144 = vmatpush3.bf16.xpose.msra.mxu0 %v5141_v33  ;;  %1201 = vperm.xlu1 %5418, %v1183_v63   ;;  %v617_v33 = vld [vmem:[%s8099_s18 + $0x60] sm:$0xff]  ;;  %v1154_v63 = vld [vmem:[#allocation13 + $0x18] sm:$0xff] }
 0x100   : > { %5146 = vmatprep.subr.bf16.mxu0 %v5145_v42 }
 0x101   : > { %5180 = vmatpush3.bf16.xpose.msra.mxu1 %v5177_v44  ;;  %v1176_v44 = vld [vmem:[%s6422_s23 + $0x48] sm:$0xff] }
 0x102   : > { %5182 = vmatprep.subr.bf16.mxu1 %v5181_v54  ;;  %v5205_v48 = vpack.c.bf16 %v1176_v44, %v1175_v43 }
 0x103   : > { %1206 = vperm.xlu1 %5418, %v1184_v2  }
 0x107   : > { %5148 = vmatpush3.bf16.xpose.msra.mxu0 %v5145_v42  ;;  %1211 = vperm.xlu1 %5418, %v1185_v4   ;;  %v585_v42 = vld [vmem:[%s8098_s13 + $0x60] sm:$0xff] }
 0x108   : > { %5150 = vmatprep.subr.bf16.mxu0 %v5149_v52 }
 0x109   : > { %5184 = vmatpush3.bf16.xpose.msra.mxu1 %v5181_v54 }
 0x10a   : > { %5186 = vmatprep.subr.bf16.mxu1 %v5185_v62 }
 0x10b   : > { %932 = vperm.xlu1 %5418, %v898_v7  }
 0x10f   : > { %5152 = vmatpush3.bf16.xpose.msra.mxu0 %v5149_v52  ;;  %937 = vperm.xlu1 %5418, %v899_v13   ;;  %v1177_v52 = vld [vmem:[%s6422_s23 + $0x50] sm:$0xff]  ;;  %s5973_s23 = sshll.u32 %s6061_s15, 4  ;;  %s5974_s23 = int_to_ptr.vmem [resolvable:$false] %s5973_s23 }
 0x110   : > { %5154 = vmatprep.subr.bf16.mxu0 %v5153_v61  ;;  %v5209_v54 = vpack.c.bf16 %v1178_v53, %v1177_v52  ;;  %s5975_s4 = scalar_lea.vmem %s5974_s23, 4096  ;;  %p5976_p10 = scmp.lt.s32.totalorder %s7941_s16, %s5974_s23 }
 0x111   : > { %5188 = vmatpush3.bf16.xpose.msra.mxu1 %v5185_v62  ;;  %v1153_v62 = vld [vmem:[#allocation13 + $0x10] sm:$0xff]  ;;  %p5977_p4 = scmp.lt.s32.totalorder %s5975_s4, %s5969_s9 }
 0x113   : > { %942 = vperm.xlu1 %5418, %v900_v20   ;;  %p5978_p5 = por %p5977_p4, %p5976_p10 }
 0x115   : > { %p5979_p8 = pnand %p5978_p5, %p5972_p9 }
 0x117   : > { %5156 = vmatpush3.bf16.xpose.msra.mxu0 %v5153_v61  ;;  %947 = vperm.xlu1 %5418, %v901_v26   ;;  %v1152_v61 = vld [vmem:[#allocation13 + $0x8] sm:$0xff] }
 0x118   : > { %5190 = vmatprep.subr.bf16.mxu0 %v5189_v3  ;;  %4734 = vmatmul.mubr.f32.vlgmr.msra.gmra.mrb[0].mxu1 %v863_v9 }
 0x119   : > { %4736 = vmatprep.mubr.f32.mxu1 %v864_v11 }
 0x11b   : > { %683 = vperm.xlu1 %5418, %v617_v33  }
 0x11c   : > { %4737 = vmatmul.mubr.f32.gmra.mrb[2].mxu1 %v865_v15  ;;  %v875_v15 = vld [vmem:[#allocation11 + $0x68] sm:$0xff] }
 0x11d   : > { %4739 = vmatprep.mubr.f32.mxu1 %v866_v17 }
 0x11e   : > { %4678 = vmatmul.mubr.f32.vlgmr.msra.gmra.mrb[0].mxu0 %v574_v8 }
 0x11f   : > { %5192 = vmatpush3.bf16.xpose.msra.mxu0 %v5189_v3  ;;  %4680 = vmatprep.mubr.f32.mxu0 %v575_v10 }
 0x120   : > { %5194 = vmatprep.subr.bf16.mxu0 %v5193_v12  ;;  %4740 = vmatmul.mubr.f32.gmra.mrb[4].mxu1 %v867_v22  ;;  %v877_v22 = vld [vmem:[#allocation11 + $0x78] sm:$0xff] }
 0x121   : > { %4742 = vmatprep.mubr.f32.mxu1 %v868_v24  ;;  %957 = vperm.xlu1 %5418, %v903_v39  }
 0x122   : > { %4681 = vmatmul.mubr.f32.gmra.mrb[2].mxu0 %v576_v14  ;;  %v874_v14 = vld [vmem:[#allocation11 + $0x60] sm:$0xff] }
 0x123   : > { %4683 = vmatprep.mubr.f32.mxu0 %v577_v16 }
 0x124   : > { %4743 = vmatmul.mubr.f32.gmra.mrb[6].mxu1 %v869_v28 }
 0x125   : > { %4745 = vmatprep.mubr.f32.mxu1 %v870_v30  ;;  %693 = vperm.xlu1 %5418, %v619_v45  }
 0x126   : > { %4684 = vmatmul.mubr.f32.gmra.mrb[4].mxu0 %v578_v21  ;;  %v876_v21 = vld [vmem:[#allocation11 + $0x70] sm:$0xff] }
 0x127   : > { %5196 = vmatpush3.bf16.xpose.msra.mxu0 %v5193_v12  ;;  %4686 = vmatprep.mubr.f32.mxu0 %v579_v23 }
 0x128   : > { %5198 = vmatprep.subr.bf16.mxu0 %v5197_v25  ;;  %4746 = vmatmul.mubr.f32.gmra.mrb[8].mxu1 %v871_v35 }
 0x129   : > { %4748 = vmatprep.mubr.f32.mxu1 %v872_v37  ;;  %967 = vperm.xlu1 %5418, %v905_v49  }
 0x12a   : > { %4687 = vmatmul.mubr.f32.gmra.mrb[6].mxu0 %v580_v27 }
 0x12b   : > { %4689 = vmatprep.mubr.f32.mxu0 %v581_v29 }
 0x12c   : > { %4749 = vmatmul.mubr.f32.gmra.mrb[10].mxu1 %v873_v41 }
 0x12d   : > { %4751 = vmatprep.mubr.f32.mxu1 %v874_v14 }
 0x12e   : > { %4690 = vmatmul.mubr.f32.gmra.mrb[8].mxu0 %v582_v34 }
 0x12f   : > { %5200 = vmatpush3.bf16.xpose.msra.mxu0 %v5197_v25  ;;  %4692 = vmatprep.mubr.f32.mxu0 %v583_v36 }
 0x130   : > { %5202 = vmatprep.subr.bf16.mxu0 %v5201_v38  ;;  %4752 = vmatmul.mubr.f32.gmra.mrb[12].mxu1 %v875_v15 }
 0x131   : > { %4754 = vmatprep.mubr.f32.mxu1 %v876_v21 }
 0x132   : > { %4693 = vmatmul.mubr.f32.gmra.mrb[10].mxu0 %v584_v40 }
 0x133   : > { %4695 = vmatprep.mubr.f32.mxu0 %v585_v42 }
 0x134   : > { %4755 = vmatmul.mubr.f32.gmra.mrb[14].mxu1 %v877_v22  ;;  %v904_v22 = vld [vmem:[%s8100_s17 + $0x50] sm:$0xff] }
 0x136   : > { %4696 = vmatmul.mubr.f32.gmra.mrb[12].mxu0 %v586_v46 }
 0x137   : > { %5204 = vmatpush3.bf16.xpose.msra.mxu0 %v5201_v38  ;;  %4698 = vmatprep.mubr.f32.mxu0 %v587_v47 }
 0x138   : > { %5206 = vmatprep.subr.bf16.mxu0 %v5205_v48 }
 0x13a   : > { %4699 = vmatmul.mubr.f32.gmra.mrb[14].mxu0 %v588_v50 }
 0x13b   : > { %4789 = vmatprep.mubr.f32.mxu0 %v1151_v51 }
 0x13f   : > { %5208 = vmatpush3.bf16.xpose.msra.mxu0 %v5205_v48 }
 0x140   : > { %5210 = vmatprep.subr.bf16.mxu0 %v5209_v54 }
 0x147   : > { %5212 = vmatpush3.bf16.xpose.msra.mxu0 %v5209_v54 }
 0x148   : > { %5214 = vmatprep.subr.bf16.mxu0 %v5213_v57 }
 0x14f   : > { %5216 = vmatpush3.bf16.xpose.msra.mxu0 %v5213_v57 }
 0x150   : > { %5218 = vmatprep.subr.bf16.mxu0 %v5217_v60 }
 0x157   : > { %5220 = vmatpush3.bf16.xpose.msra.mxu0 %v5217_v60 }
 0x15e   : > { %4790 = vmatmul.mubr.f32.vlgmr.msra.gmra.mrb[16].mxu0 %v1152_v61  ;;  %v634_v0 = vpop.permute.xlu1 %633 }
 0x15f   : > { %4792 = vmatprep.mubr.f32.mxu0 %v1153_v62 }
 0x160   : > { %v624_v10 = vpop.permute.xlu0 %623 }
 0x162   : > { %4793 = vmatmul.mubr.f32.gmra.mrb[18].mxu0 %v1154_v63  ;;  %v639_v1 = vpop.permute.xlu1 %638 }
 0x164   : > { %v629_v12 = vpop.permute.xlu0 %628 }
 0x166   : > { %v918_v2 = vpop.permute.xlu1 %917 }
 0x168   : > { %v913_v16 = vpop.permute.xlu0 %912 }
 0x16a   : > { %v928_v3 = vpop.permute.xlu1 %927 }
 0x16c   : > { %v923_v27 = vpop.permute.xlu0 %922 }
 0x16e   : > { %v6611_v4 = vpop.permute.xlu1 %643 }
 0x172   : > { %v6613_v5 = vpop.permute.xlu1 %648 }
 0x176   : > { %v6615_v6 = vpop.permute.xlu1 %653 }
 0x17a   : > { %v6617_v7 = vpop.permute.xlu1 %658 }
 0x17e   : > { %v6619_v8 = vpop.permute.xlu1 %1201 }
 0x182   : > { %v6621_v9 = vpop.permute.xlu1 %1206 }
 0x186   : > { %v6623_v11 = vpop.permute.xlu1 %1211 }
 0x18a   : > { %v933_v13 = vpop.permute.xlu1 %932 }
 0x18e   : > { %v938_v17 = vpop.permute.xlu1 %937 }
 0x192   : > { %v943_v32 = vpop.permute.xlu1 %942 }
 0x196   : > { %v948_v45 = vpop.permute.xlu1 %947 }
 0x1eb   : > { %v4735_v19 = vpop.f32.mrb[0].mxu1 }
 0x1ec   : > { %v1062_v23 = vadd.f32 %v4735_v19, %v918_v2  ;;  %v1056_v24 = vpop.f32.mrb[1].mxu1  ;;  %v902_v19 = vld [vmem:[%s8100_s17 + $0x40] sm:$0xff] }
 0x1ed   : > { %v1057_v26 = vadd.f32 %v1056_v24, %v913_v16  ;;  %v1186_v16 = vld [vmem:[%s8101_s6 + $0x18] sm:$0xff] }
 0x1ee   : > { %v620_v24 = vld [vmem:[%s8099_s18 + $0x78] sm:$0xff] }
 0x1ef   : > { %v5221_v29 = vpack.c.bf16 %v1062_v23, %v1057_v26  ;;  %v4738_v30 = vpop.f32.mrb[2].mxu1 }
 0x1f0   : > { %v1072_v34 = vadd.f32 %v4738_v30, %v928_v3  ;;  %v1066_v35 = vpop.f32.mrb[3].mxu1 }
 0x1f1   : > { %v4679_v18 = vpop.f32.mrb[0].mxu0  ;;  %v1067_v36 = vadd.f32 %v1066_v35, %v923_v27  ;;  %5222 = vmatprep.subr.bf16.mxu1 %v5221_v29 }
 0x1f2   : > { %v767_v20 = vpop.f32.mrb[1].mxu0  ;;  %v773_v33 = vadd.f32 %v4679_v18, %v629_v12  ;;  %5224 = vmatpush3.bf16.msra.mxu1 %v5221_v29  ;;  %v616_v18 = vld [vmem:[%s8099_s18 + $0x58] sm:$0xff] }
 0x1f3   : > { %v768_v25 = vadd.f32 %v767_v20, %v624_v10  ;;  %v5225_v39 = vpack.c.bf16 %v1072_v34, %v1067_v36  ;;  %v4741_v40 = vpop.f32.mrb[4].mxu1  ;;  %v618_v20 = vld [vmem:[%s8099_s18 + $0x68] sm:$0xff] }
 0x1f4   : > { %v1082_v42 = vadd.f32 %v4741_v40, %v938_v17  ;;  %v1076_v43 = vpop.f32.mrb[5].mxu1  ;;  %v613_v17 = vld [vmem:[%s8099_s18 + $0x40] sm:$0xff] }
 0x1f5   : > { %1468 = vxpose.xlu0.b32.start [1/4] (short) %v768_v25, 128  ;;  %v4682_v28 = vpop.f32.mrb[2].mxu0  ;;  %v1077_v44 = vadd.f32 %v1076_v43, %v933_v13  ;;  %5226 = vmatprep.subr.bf16.mxu1 %v5225_v39 }
 0x1f6   : > { %v777_v31 = vpop.f32.mrb[3].mxu0  ;;  %5228 = vmatpush3.bf16.msra.mxu1 %v5225_v39  ;;  %v783_v50 = vadd.f32 %v4682_v28, %v639_v1 }
 0x1f7   : > { %v778_v37 = vadd.f32 %v777_v31, %v634_v0  ;;  %v6631_v47 = vpack.c.bf16 %v1082_v42, %v1077_v44  ;;  %v4744_v48 = vpop.f32.mrb[6].mxu1 }
 0x1f8   : > { %v1092_v51 = vadd.f32 %v4744_v48, %v948_v45  ;;  %v1086_v52 = vpop.f32.mrb[7].mxu1 }
 0x1f9   : > { %v6625_v38 = vpop.f32.mrb[4].mxu0  ;;  %1469 = vxpose.xlu0.b32.cont [2/4] (short) %v773_v33, 128  ;;  %v1087_v53 = vadd.f32 %v1086_v52, %v943_v32  ;;  %5238 = vmatprep.subr.bf16.mxu0 %v6631_v47 }
 0x1fa   : > { %v6627_v41 = vpop.f32.mrb[5].mxu0  ;;  %5240 = vmatpush3.bf16.msra.mxu0 %v6631_v47 }
 0x1fb   : > { %v6639_v55 = vpack.c.bf16 %v1092_v51, %v1087_v53  ;;  %v6641_v56 = vpop.f32.mrb[8].mxu1 }
 0x1fc   : > { %v6645_v58 = vpop.f32.mrb[9].mxu1 }
 0x1fd   : > { %v6629_v46 = vpop.f32.mrb[6].mxu0  ;;  %1470 = vxpose.xlu0.b32.cont [3/4] (short) %v778_v37, 128  ;;  %5242 = vmatprep.subr.bf16.mxu0 %v6639_v55 }
 0x1fe   : > { %v6633_v49 = vpop.f32.mrb[7].mxu0  ;;  %5244 = vmatpush3.bf16.msra.mxu0 %v6639_v55 }
 0x1ff   : > { %v6651_v60 = vpop.f32.mrb[10].mxu1 }
 0x200   : > { %v6686_v21 = vpop.f32.mrb[11].mxu1 }
 0x201   : > { %1471 = vxpose.xlu0.b32.end [4/4] (short) %v783_v50, 128  ;;  %v6637_v54 = vpop.f32.mrb[8].mxu0 }
 0x202   : > { %v6643_v57 = vpop.f32.mrb[9].mxu0 }
 0x203   : > { %v6710_v42 = vpop.f32.mrb[12].mxu1 }
 0x204   : > { %v6712_v43 = vpop.f32.mrb[13].mxu1 }
 0x205   : > { %v6649_v59 = vpop.f32.mrb[10].mxu0 }
 0x206   : > { %v6653_v61 = vpop.f32.mrb[11].mxu0 }
 0x207   : > { %v6714_v44 = vpop.f32.mrb[14].mxu1 }
 0x208   : > { %v6716_v45 = vpop.f32.mrb[15].mxu1 }
 0x209   : > { %v6655_v62 = vpop.f32.mrb[12].mxu0 }
 0x20a   : > { %v6657_v63 = vpop.f32.mrb[13].mxu0 }
 0x20d   : > { %v6659_v0 = vpop.f32.mrb[14].mxu0 }
 0x20e   : > { %v6661_v1 = vpop.f32.mrb[15].mxu0 }
 0x231   : > { %v4791_v2 = vpop.f32.mrb[16].mxu0 }
 0x232   : > { %v1351_v3 = vadd.f32 %v4791_v2, %v6621_v9  ;;  %v1345_v10 = vpop.f32.mrb[17].mxu0  ;;  %v614_v9 = vld [vmem:[%s8099_s18 + $0x48] sm:$0xff] }
 0x233   : > { %v1346_v12 = vadd.f32 %v1345_v10, %v6619_v8  ;;  %v615_v8 = vld [vmem:[%s8099_s18 + $0x50] sm:$0xff] }
 0x235   : > { %v5229_v13 = vpack.c.bf16 %v1351_v3, %v1346_v12  ;;  %v4794_v14 = vpop.f32.mrb[18].mxu0  ;;  %v6724_v3 = vpop.permute.xlu1 %683 }
 0x236   : > { %v1355_v15 = vpop.f32.mrb[19].mxu0 }
 0x237   : > { %5230 = vmatprep.subr.bf16.mxu1 %v5229_v13  ;;  %v1356_v50 = vadd.f32 %v1355_v15, %v6623_v11 }
 0x239   : > { %v958_v12 = vpop.permute.xlu1 %957 }
 0x25a   : > { %1216 = vperm.xlu0 %5417, %v1186_v16   ;;  %v6732_v16 = vpop.permute.xlu1 %693 }
 0x25e   : > { %663 = vperm.xlu0 %5417, %v613_v17  }
 0x262   : > { %668 = vperm.xlu0 %5417, %v614_v9  }
 0x266   : > { %673 = vperm.xlu0 %5417, %v615_v8   ;;  %v968_v8 = vpop.permute.xlu1 %967 }
 0x26a   : > { %678 = vperm.xlu0 %5417, %v616_v18  }
 0x26e   : > { %952 = vperm.xlu0 %5417, %v902_v19   ;;  %v1112_v19 = vadd.f32 %v6651_v60, %v968_v8  ;;  %v1455_v60 = vld [vmem:[%s6429_s2 + $0x18] sm:$0xff] }
 0x272   : > { %688 = vperm.xlu0 %5417, %v618_v20  }
 0x275   : > { %v1484_v23 = vpop.trf.xlu0 }
 0x276   : > { %962 = vperm.xlu0 %5417, %v904_v22   ;;  %4821 = vmatprep.mubr.msk.f32.mxu1 %vm1500_vm0, %v1484_v23 }
 0x279   : > { %v1485_v25 = vpop.trf.xlu0 }
 0x27a   : > { %698 = vperm.xlu0 %5417, %v620_v24   ;;  %4822 = vmatmul.mubr.msk.f32.vlgmr.msra.gmra.mrb[16].mxu1 %vm1500_vm0, %v1485_v25 }
 0x27b   : > { %5232 = vmatpush3.bf16.xpose.msra.mxu1 %v5229_v13 }
 0x27d   : > { %v1486_v26 = vpop.trf.xlu0 }
 0x27e   : > { %4824 = vmatprep.mubr.msk.f32.mxu1 %vm1500_vm0, %v1486_v26 }
 0x281   : > { %v1487_v27 = vpop.trf.xlu0 }
 0x282   : > { %4825 = vmatmul.mubr.msk.f32.gmra.mrb[18].mxu1 %vm1500_vm0, %v1487_v27 }
 0x285   : > { %v1488_v28 = vpop.trf.xlu0 }
 0x286   : > { %4827 = vmatprep.mubr.msk.f32.mxu1 %vm1500_vm0, %v1488_v28 }
 0x289   : > { %v1489_v29 = vpop.trf.xlu0 }
 0x28a   : > { %4828 = vmatmul.mubr.msk.f32.gmra.mrb[20].mxu1 %vm1500_vm0, %v1489_v29  ;;  %v1454_v29 = vld [vmem:[%s6429_s2 + $0x10] sm:$0xff] }
 0x28d   : > { %v1490_v30 = vpop.trf.xlu0 }
 0x28e   : > { %4830 = vmatprep.mubr.msk.f32.mxu1 %vm1500_vm0, %v1490_v30 }
 0x291   : > { %v1491_v31 = vpop.trf.xlu0 }
 0x292   : > { %4831 = vmatmul.mubr.msk.f32.gmra.mrb[22].mxu1 %vm1500_vm0, %v1491_v31  ;;  %v1457_v31 = vld [vmem:[%s6429_s2 + $0x28] sm:$0xff] }
 0x295   : > { %v1492_v32 = vpop.trf.xlu0 }
 0x296   : > { %4833 = vmatprep.mubr.msk.f32.mxu1 %vm1500_vm0, %v1492_v32 }
 0x299   : > { %v1493_v33 = vpop.trf.xlu0 }
 0x29a   : > { %4834 = vmatmul.mubr.msk.f32.gmra.mrb[24].mxu1 %vm1500_vm0, %v1493_v33 }
 0x29d   : > { %v1494_v34 = vpop.trf.xlu0 }
 0x29e   : > { %4836 = vmatprep.mubr.msk.f32.mxu1 %vm1500_vm0, %v1494_v34 }
 0x2a1   : > { %v1495_v35 = vpop.trf.xlu0 }
 0x2a2   : > { %4837 = vmatmul.mubr.msk.f32.gmra.mrb[26].mxu1 %vm1500_vm0, %v1495_v35  ;;  %v1456_v35 = vld [vmem:[%s6429_s2 + $0x20] sm:$0xff] }
 0x2a5   : > { %v1496_v36 = vpop.trf.xlu0 }
 0x2a6   : > { %4839 = vmatprep.mubr.msk.f32.mxu1 %vm1500_vm0, %v1496_v36 }
 0x2a9   : > { %v1497_v37 = vpop.trf.xlu0 }
 0x2aa   : > { %4840 = vmatmul.mubr.msk.f32.gmra.mrb[28].mxu1 %vm1500_vm0, %v1497_v37  ;;  %v1459_v37 = vld [vmem:[%s6429_s2 + $0x38] sm:$0xff] }
 0x2ad   : > { %v1498_v39 = vpop.trf.xlu0 }
 0x2ae   : > { %4842 = vmatprep.mubr.msk.f32.mxu1 %vm1500_vm0, %v1498_v39  ;;  %v1458_v39 = vld [vmem:[%s6429_s2 + $0x30] sm:$0xff] }
 0x2b1   : > { %v1499_v40 = vpop.trf.xlu0 }
 0x2b2   : > { %4843 = vmatmul.mubr.msk.f32.gmra.mrb[30].mxu1 %vm1500_vm0, %v1499_v40 }
 0x2d9   : > { %v1217_v48 = vpop.permute.xlu0 %1216 }
 0x2da   : > { %v1361_v51 = vadd.f32 %v4794_v14, %v1217_v48  ;;  %v1102_v14 = vadd.f32 %v6641_v56, %v958_v12  ;;  %v1453_v56 = vld [vmem:[%s6429_s2 + $0x8] sm:$0xff] }
 0x2dc   : > { %v5233_v52 = vpack.c.bf16 %v1361_v51, %v1356_v50 }
 0x2dd   : > { %v6719_v53 = vpop.permute.xlu0 %663 }
 0x2de   : > { %5234 = vmatprep.subr.bf16.mxu1 %v5233_v52 }
 0x2df   : > { %5236 = vmatpush3.bf16.xpose.msra.mxu1 %v5233_v52  ;;  %v1461_v52 = vld [vmem:[%s6429_s2 + $0x48] sm:$0xff] }
 0x2e0   : > { %5317 = vmatprep.subr.bf16.mxu1 %v6631_v47 }
 0x2e1   : > { %v6722_v2 = vpop.permute.xlu0 %668 }
 0x2e5   : > { %v6726_v10 = vpop.permute.xlu0 %673 }
 0x2e9   : > { %v6728_v13 = vpop.permute.xlu0 %678 }
 0x2ed   : > { %v953_v11 = vpop.permute.xlu0 %952 }
 0x2ee   : > { %v1097_v15 = vadd.f32 %v6645_v58, %v953_v11  ;;  %v1452_v58 = vld [vmem:[%s6429_s2] sm:$0xff] }
 0x2f0   : > { %v6734_v17 = vpack.c.bf16 %v1102_v14, %v1097_v15  ;;  %v1460_v15 = vld [vmem:[%s6429_s2 + $0x40] sm:$0xff] }
 0x2f1   : > { %v6736_v9 = vpop.permute.xlu0 %688 }
 0x2f2   : > { %5254 = vmatprep.subr.bf16.mxu0 %v6734_v17 }
 0x2f5   : > { %v963_v18 = vpop.permute.xlu0 %962 }
 0x2f6   : > { %v1107_v20 = vadd.f32 %v6686_v21, %v963_v18  ;;  %v1463_v18 = vld [vmem:[%s6429_s2 + $0x58] sm:$0xff] }
 0x2f8   : > { %v6741_v22 = vpack.c.bf16 %v1112_v19, %v1107_v20 }
 0x34d   : > { %v4823_v23 = vpop.f32.mrb[16].mxu1 }
 0x34e   : > { %v6745_v24 = vadd.f32 %v4823_v23, %v1453_v56  ;;  %v1615_v25 = vpop.f32.mrb[17].mxu1 }
 0x34f   : > { %v6747_v26 = vadd.f32 %v1615_v25, %v1452_v58  ;;  %v1462_v58 = vld [vmem:[%s6429_s2 + $0x50] sm:$0xff]  ;;  %v1465_v25 = vld [vmem:[%s6429_s2 + $0x68] sm:$0xff] }
 0x350   : > { %1696 = vmax.xlane.f32.xlu0 %v6745_v24 }
 0x351   : > { %1694 = vmax.xlane.f32.xlu1 %v6747_v26 }
 0x355   : > { %v4826_v27 = vpop.f32.mrb[18].mxu1 }
 0x356   : > { %v6752_v21 = vadd.f32 %v4826_v27, %v1455_v60  ;;  %v1625_v28 = vpop.f32.mrb[19].mxu1  ;;  %v1464_v60 = vld [vmem:[%s6429_s2 + $0x60] sm:$0xff] }
 0x357   : > { %v6756_v30 = vadd.f32 %v1625_v28, %v1454_v29 }
 0x358   : > { %1700 = vmax.xlane.f32.xlu1 %v6752_v21 }
 0x35c   : > { %1698 = vmax.xlane.f32.xlu1 %v6756_v30 }
 0x35d   : > { %v4829_v32 = vpop.f32.mrb[20].mxu1 }
 0x35e   : > { %v6760_v33 = vadd.f32 %v4829_v32, %v1457_v31  ;;  %v1635_v34 = vpop.f32.mrb[21].mxu1  ;;  %v1467_v32 = vld [vmem:[%s6429_s2 + $0x78] sm:$0xff] }
 0x35f   : > { %v6764_v36 = vadd.f32 %v1635_v34, %v1456_v35  ;;  %v1466_v34 = vld [vmem:[%s6429_s2 + $0x70] sm:$0xff] }
 0x360   : > { %1704 = vmax.xlane.f32.xlu1 %v6760_v33 }
 0x364   : > { %1702 = vmax.xlane.f32.xlu1 %v6764_v36 }
 0x365   : > { %v4832_v40 = vpop.f32.mrb[22].mxu1 }
 0x366   : > { %v6769_v48 = vadd.f32 %v4832_v40, %v1459_v37  ;;  %v1645_v50 = vpop.f32.mrb[23].mxu1 }
 0x367   : > { %v6771_v51 = vadd.f32 %v1645_v50, %v1458_v39  ;;  %v906_v50 = vld [vmem:[%s8100_s17 + $0x60] sm:$0xff] }
 0x368   : > { %1708 = vmax.xlane.f32.xlu0 %v6769_v48 }
 0x369   : > { %1706 = vmax.xlane.f32.xlu1 %v6771_v51 }
 0x36d   : > { %v4835_v12 = vpop.f32.mrb[24].mxu1 }
 0x36e   : > { %v6776_v11 = vadd.f32 %v4835_v12, %v1461_v52  ;;  %v1655_v14 = vpop.f32.mrb[25].mxu1  ;;  %v907_v52 = vld [vmem:[%s8100_s17 + $0x68] sm:$0xff]  ;;  %v908_v12 = vld [vmem:[%s8100_s17 + $0x70] sm:$0xff] }
 0x36f   : > { %v6780_v8 = vadd.f32 %v1655_v14, %v1460_v15  ;;  %v1155_v14 = vld [vmem:[#allocation13 + $0x20] sm:$0xff]  ;;  %v909_v15 = vld [vmem:[%s8100_s17 + $0x78] sm:$0xff] }
 0x370   : > { %1712 = vmax.xlane.f32.xlu1 %v6776_v11  ;;  %4795 = vmatprep.mubr.f32.mxu0 %v1155_v14  ;;  %v808_v14 = vadd.f32 %v6643_v57, %v6719_v53 }
 0x374   : > { %1710 = vmax.xlane.f32.xlu1 %v6780_v8 }
 0x375   : > { %v4838_v19 = vpop.f32.mrb[26].mxu1 }
 0x376   : > { %v6784_v20 = vadd.f32 %v4838_v19, %v1463_v18  ;;  %v1665_v56 = vpop.f32.mrb[27].mxu1  ;;  %v1156_v18 = vld [vmem:[#allocation13 + $0x28] sm:$0xff]  ;;  %v1157_v19 = vld [vmem:[#allocation13 + $0x30] sm:$0xff] }
 0x377   : > { %v6788_v23 = vadd.f32 %v1665_v56, %v1462_v58  ;;  %4796 = vmatmul.mubr.f32.gmra.mrb[20].mxu0 %v1156_v18  ;;  %v1158_v56 = vld [vmem:[#allocation13 + $0x38] sm:$0xff]  ;;  %v1159_v58 = vld [vmem:[#allocation13 + $0x40] sm:$0xff] }
 0x378   : > { %1716 = vmax.xlane.f32.xlu1 %v6784_v20  ;;  %4798 = vmatprep.mubr.f32.mxu0 %v1157_v19 }
 0x37b   : > { %4799 = vmatmul.mubr.f32.gmra.mrb[22].mxu0 %v1158_v56 }
 0x37c   : > { %1714 = vmax.xlane.f32.xlu1 %v6788_v23  ;;  %4801 = vmatprep.mubr.f32.mxu0 %v1159_v58 }
 0x37d   : > { %v4841_v27 = vpop.f32.mrb[28].mxu1 }
 0x37e   : > { %v6793_v28 = vadd.f32 %v4841_v27, %v1465_v25  ;;  %v1675_v29 = vpop.f32.mrb[29].mxu1  ;;  %v1160_v25 = vld [vmem:[#allocation13 + $0x48] sm:$0xff]  ;;  %v1162_v27 = vld [vmem:[#allocation13 + $0x58] sm:$0xff] }
 0x37f   : > { %v6795_v31 = vadd.f32 %v1675_v29, %v1464_v60  ;;  %v1161_v60 = vld [vmem:[#allocation13 + $0x50] sm:$0xff]  ;;  %4802 = vmatmul.mubr.f32.gmra.mrb[24].mxu0 %v1160_v25  ;;  %v1163_v29 = vld [vmem:[#allocation13 + $0x60] sm:$0xff] }
 0x380   : > { %1720 = vmax.xlane.f32.xlu1 %v6793_v28  ;;  %4804 = vmatprep.mubr.f32.mxu0 %v1161_v60 }
 0x381   : > { %1718 = vmax.xlane.f32.xlu0 %v6795_v31 }
 0x383   : > { %4805 = vmatmul.mubr.f32.gmra.mrb[26].mxu0 %v1162_v27 }
 0x384   : > { %4807 = vmatprep.mubr.f32.mxu0 %v1163_v29 }
 0x385   : > { %v4844_v35 = vpop.f32.mrb[30].mxu1 }
 0x386   : > { %v6801_v37 = vadd.f32 %v4844_v35, %v1467_v32  ;;  %v1685_v39 = vpop.f32.mrb[31].mxu1  ;;  %v1164_v32 = vld [vmem:[#allocation13 + $0x68] sm:$0xff]  ;;  %v788_v35 = vadd.f32 %v6627_v41, %v6611_v4  ;;  %v813_v4 = vadd.f32 %v6637_v54, %v6722_v2 }
 0x387   : > { %v6803_v40 = vadd.f32 %v1685_v39, %v1466_v34  ;;  %v1165_v34 = vld [vmem:[#allocation13 + $0x70] sm:$0xff]  ;;  %4808 = vmatmul.mubr.f32.gmra.mrb[28].mxu0 %v1164_v32  ;;  %v1166_v39 = vld [vmem:[#allocation13 + $0x78] sm:$0xff] }
 0x388   : > { %1724 = vmax.xlane.f32.xlu0 %v6801_v37  ;;  %4810 = vmatprep.mubr.f32.mxu0 %v1165_v34 }
 0x389   : > { %1722 = vmax.xlane.f32.xlu1 %v6803_v40 }
 0x38b   : > { %4811 = vmatmul.mubr.f32.gmra.mrb[30].mxu0 %v1166_v39 }
 0x39e   : > { %972 = vperm.xlu0 %5417, %v906_v50   ;;  %v793_v50 = vadd.f32 %v6625_v38, %v6613_v5  ;;  %v818_v5 = vadd.f32 %v6653_v61, %v6726_v10  ;;  %v699_v38 = vpop.permute.xlu0 %698 }
 0x3a2   : > { %977 = vperm.xlu0 %5417, %v907_v52   ;;  %v798_v52 = vadd.f32 %v6633_v49, %v6615_v6  ;;  %v823_v6 = vadd.f32 %v6649_v59, %v6728_v13 }
 0x3a6   : > { %982 = vperm.xlu0 %5417, %v908_v12   ;;  %v803_v12 = vadd.f32 %v6629_v46, %v6617_v7 }
 0x3aa   : > { %987 = vperm.xlu0 %5417, %v909_v15  }
 0x3bc   : > { %2012 = vxpose.xlu1.b32.start [1/4] (short) %v788_v35, 128 }
 0x3c0   : > { %2013 = vxpose.xlu1.b32.cont [2/4] (short) %v793_v50, 128 }
 0x3c4   : > { %2014 = vxpose.xlu1.b32.cont [3/4] (short) %v798_v52, 128 }
 0x3c8   : > { %2015 = vxpose.xlu1.b32.end [4/4] (short) %v803_v12, 128  ;;  %2555 = vxpose.xlu0.b32.start [1/4] (short) %v808_v14, 128 }
 0x3cc   : > { %2556 = vxpose.xlu0.b32.cont [2/4] (short) %v813_v4, 128 }
 0x3d0   : > { %2557 = vxpose.xlu0.b32.cont [3/4] (short) %v818_v5, 128 }
 0x3d4   : > { %2558 = vxpose.xlu0.b32.end [4/4] (short) %v823_v6, 128 }
 0x3dd   : > { %v1697_v41 = vpop.xlane.xlu0 %1696 }
 0x3de   : > { %v1727_v7 = vsub.f32 %v6745_v24, %v1697_v41  ;;  %v1695_v46 = vpop.xlane.xlu1 %1694 }
 0x3df   : > { %v1726_v49 = vsub.f32 %v6747_v26, %v1695_v46 }
 0x3e0   : > { %v1744_v57 = vmul.f32 1.442695, %v1727_v7 }
 0x3e1   : > { %v1742_v53 = vmul.f32 1.442695, %v1726_v49 }
 0x3e3   : > { %5539 = vpow2.f32 %v1742_v53 }
 0x3e4   : > { %5541 = vpow2.f32 %v1744_v57 }
 0x3e5   : > { %v1701_v54 = vpop.xlane.xlu1 %1700 }
 0x3e6   : > { %v1729_v2 = vsub.f32 %v6752_v21, %v1701_v54 }
 0x3e8   : > { %v1748_v15 = vmul.f32 1.442695, %v1729_v2 }
 0x3e9   : > { %v1699_v61 = vpop.xlane.xlu1 %1698 }
 0x3ea   : > { %v1728_v10 = vsub.f32 %v6756_v30, %v1699_v61 }
 0x3ec   : > { %v1746_v59 = vmul.f32 1.442695, %v1728_v10 }
 0x3ed   : > { %v6839_v13 = vpop.eup %5539  ;;  %v1705_v18 = vpop.xlane.xlu1 %1704 }
 0x3ee   : > { %8102 = vst [vmem:[#allocation28_spill] sm:$0xff] %v6839_v13  ;;  %v6841_v19 = vpop.eup %5541  ;;  %5543 = vpow2.f32 %v1746_v59  ;;  %4853 = vmatprep.mubr.f32.mxu1 %v6839_v13  ;;  %v1731_v24 = vsub.f32 %v6760_v33, %v1705_v18  ;;  %v828_v33 = vadd.f32 %v6657_v63, %v6724_v3  ;;  %v838_v3 = vadd.f32 %v6661_v1, %v6732_v16 }
 0x3ef   : > { %8103 = vst [vmem:[#allocation29_spill] sm:$0xff] %v6841_v19  ;;  %5545 = vpow2.f32 %v1748_v15  ;;  %4854 = vmatmul.mubr.f32.vlgmr.msra.gmra.mrb[32].mxu1 %v6841_v19 }
 0x3f0   : > { %5319 = vmatpush3.bf16.msra.mxu1 %v6631_v47  ;;  %v1752_v30 = vmul.f32 1.442695, %v1731_v24 }
 0x3f1   : > { %5318 = vmatprep.subr.bf16.mxu1 %v6639_v55  ;;  %v1703_v26 = vpop.xlane.xlu1 %1702 }
 0x3f2   : > { %v1730_v21 = vsub.f32 %v6764_v36, %v1703_v26 }
 0x3f4   : > { %v1750_v56 = vmul.f32 1.442695, %v1730_v21  ;;  %5320 = vmatpush3.bf16.msra.mxu1 %v6639_v55  ;;  %v833_v55 = vadd.f32 %v6655_v62, %v6736_v9  ;;  %v843_v62 = vadd.f32 %v6659_v0, %v699_v38 }
 0x3f5   : > { %v1709_v58 = vpop.xlane.xlu0 %1708 }
 0x3f6   : > { %5547 = vpow2.f32 %v1750_v56  ;;  %v1733_v25 = vsub.f32 %v6769_v48, %v1709_v58  ;;  %v1707_v60 = vpop.xlane.xlu1 %1706 }
 0x3f7   : > { %5549 = vpow2.f32 %v1752_v30  ;;  %v1732_v47 = vsub.f32 %v6771_v51, %v1707_v60 }
 0x3f8   : > { %v6854_v27 = vpop.eup %5543  ;;  %v1756_v29 = vmul.f32 1.442695, %v1733_v25 }
 0x3f9   : > { %8104 = vst [vmem:[#allocation30_spill] sm:$0xff] %v6854_v27  ;;  %v6856_v32 = vpop.eup %5545  ;;  %v1754_v36 = vmul.f32 1.442695, %v1732_v47  ;;  %3098 = vxpose.xlu1.b32.start [1/4] (short) %v828_v33, 128  ;;  %4856 = vmatprep.mubr.f32.mxu1 %v6854_v27 }
 0x3fa   : > { %8105 = vst [vmem:[#allocation31_spill] sm:$0xff] %v6856_v32  ;;  %4857 = vmatmul.mubr.f32.gmra.mrb[34].mxu1 %v6856_v32  ;;  %v4296_v32 = vld [vmem:[%s6429_s2 + $0x170] sm:$0xff] }
 0x3fb   : > { %5551 = vpow2.f32 %v1754_v36 }
 0x3fc   : > { %5553 = vpow2.f32 %v1756_v29 }
 0x3fd   : > { %v1713_v63 = vpop.xlane.xlu1 %1712  ;;  %3099 = vxpose.xlu1.b32.cont [2/4] (short) %v833_v55, 128 }
 0x3fe   : > { %v1735_v48 = vsub.f32 %v6776_v11, %v1713_v63 }
 0x400   : > { %v6865_v51 = vpop.eup %5547  ;;  %v1760_v9 = vmul.f32 1.442695, %v1735_v48 }
 0x401   : > { %8106 = vst [vmem:[#allocation32_spill] sm:$0xff] %v6865_v51  ;;  %v6867_v34 = vpop.eup %5549  ;;  %v1711_v35 = vpop.xlane.xlu1 %1710  ;;  %3100 = vxpose.xlu1.b32.cont [3/4] (short) %v838_v3, 128  ;;  %4859 = vmatprep.mubr.f32.mxu1 %v6865_v51 }
 0x402   : > { %8107 = vst [vmem:[#allocation33_spill] sm:$0xff] %v6867_v34  ;;  %v1734_v39 = vsub.f32 %v6780_v8, %v1711_v35  ;;  %4860 = vmatmul.mubr.f32.gmra.mrb[36].mxu1 %v6867_v34 }
 0x404   : > { %v1758_v50 = vmul.f32 1.442695, %v1734_v39 }
 0x405   : > { %v6873_v52 = vpop.eup %5551  ;;  %v1717_v1 = vpop.xlane.xlu1 %1716  ;;  %3101 = vxpose.xlu1.b32.end [4/4] (short) %v843_v62, 128 }
 0x406   : > { %8108 = vst [vmem:[#allocation34_spill] sm:$0xff] %v6873_v52  ;;  %v6875_v16 = vpop.eup %5553  ;;  %5555 = vpow2.f32 %v1758_v50  ;;  %4862 = vmatprep.mubr.f32.mxu1 %v6873_v52  ;;  %v1737_v11 = vsub.f32 %v6784_v20, %v1717_v1 }
 0x407   : > { %8109 = vst [vmem:[#allocation35_spill] sm:$0xff] %v6875_v16  ;;  %5557 = vpow2.f32 %v1760_v9  ;;  %4863 = vmatmul.mubr.f32.gmra.mrb[38].mxu1 %v6875_v16  ;;  %v4290_v16 = vld [vmem:[%s6429_s2 + $0x140] sm:$0xff] }
 0x408   : > { %v1764_v0 = vmul.f32 1.442695, %v1737_v11 }
 0x409   : > { %v1715_v8 = vpop.xlane.xlu1 %1714 }
 0x40a   : > { %v1736_v12 = vsub.f32 %v6788_v23, %v1715_v8 }
 0x40c   : > { %v1762_v14 = vmul.f32 1.442695, %v1736_v12 }
 0x40d   : > { %v1721_v4 = vpop.xlane.xlu1 %1720 }
 0x40e   : > { %5559 = vpow2.f32 %v1762_v14  ;;  %v1739_v5 = vsub.f32 %v6793_v28, %v1721_v4  ;;  %v1719_v6 = vpop.xlane.xlu0 %1718 }
 0x40f   : > { %5561 = vpow2.f32 %v1764_v0  ;;  %v1738_v38 = vsub.f32 %v6795_v31, %v1719_v6 }
 0x410   : > { %v6883_v41 = vpop.eup %5555  ;;  %v1768_v7 = vmul.f32 1.442695, %v1739_v5 }
 0x411   : > { %8110 = vst [vmem:[#allocation36_spill] sm:$0xff] %v6883_v41  ;;  %v6885_v46 = vpop.eup %5557  ;;  %v1766_v20 = vmul.f32 1.442695, %v1738_v38  ;;  %4865 = vmatprep.mubr.f32.mxu1 %v6883_v41 }
 0x412   : > { %8111 = vst [vmem:[#allocation37_spill] sm:$0xff] %v6885_v46  ;;  %4866 = vmatmul.mubr.f32.gmra.mrb[40].mxu1 %v6885_v46  ;;  %v4286_v46 = vld [vmem:[%s6429_s2 + $0x120] sm:$0xff] }
 0x413   : > { %5563 = vpow2.f32 %v1766_v20 }
 0x414   : > { %5565 = vpow2.f32 %v1768_v7 }
 0x415   : > { %v1725_v23 = vpop.xlane.xlu0 %1724 }
 0x416   : > { %v1741_v49 = vsub.f32 %v6801_v37, %v1725_v23  ;;  %v1723_v28 = vpop.xlane.xlu1 %1722 }
 0x417   : > { %v1740_v57 = vsub.f32 %v6803_v40, %v1723_v28 }
 0x418   : > { %v6891_v53 = vpop.eup %5559  ;;  %v1772_v31 = vmul.f32 1.442695, %v1741_v49 }
 0x419   : > { %8112 = vst [vmem:[#allocation38_spill] sm:$0xff] %v6891_v53  ;;  %v6893_v54 = vpop.eup %5561  ;;  %v1770_v2 = vmul.f32 1.442695, %v1740_v57  ;;  %4868 = vmatprep.mubr.f32.mxu1 %v6891_v53 }
 0x41a   : > { %8113 = vst [vmem:[#allocation39_spill] sm:$0xff] %v6893_v54  ;;  %4869 = vmatmul.mubr.f32.gmra.mrb[42].mxu1 %v6893_v54 }
 0x41b   : > { %5567 = vpow2.f32 %v1770_v2 }
 0x41c   : > { %5569 = vpow2.f32 %v1772_v31 }
 0x41d   : > { %v6897_v61 = vpop.eup %5563  ;;  %v973_v10 = vpop.permute.xlu0 %972 }
 0x41e   : > { %8114 = vst [vmem:[#allocation40_spill] sm:$0xff] %v6897_v61  ;;  %v6899_v15 = vpop.eup %5565  ;;  %4871 = vmatprep.mubr.f32.mxu1 %v6897_v61  ;;  %v1117_v40 = vadd.f32 %v6712_v43, %v973_v10  ;;  %v4282_v61 = vld [vmem:[%s6429_s2 + $0x100] sm:$0xff] }
 0x41f   : > { %8115 = vst [vmem:[#allocation41_spill] sm:$0xff] %v6899_v15  ;;  %4872 = vmatmul.mubr.f32.gmra.mrb[44].mxu1 %v6899_v15 }
 0x421   : > { %v978_v37 = vpop.permute.xlu0 %977 }
 0x422   : > { %v1122_v59 = vadd.f32 %v6710_v42, %v978_v37 }
 0x424   : > { %v5269_v18 = vpack.c.bf16 %v1122_v59, %v1117_v40 }
 0x425   : > { %v6905_v24 = vpop.eup %5567  ;;  %v983_v26 = vpop.permute.xlu0 %982 }
 0x426   : > { %8116 = vst [vmem:[#allocation42_spill] sm:$0xff] %v6905_v24  ;;  %v6907_v21 = vpop.eup %5569  ;;  %4874 = vmatprep.mubr.f32.mxu1 %v6905_v24  ;;  %v1127_v56 = vadd.f32 %v6716_v45, %v983_v26  ;;  %v4315_v24 = vld [vmem:[%s6429_s2 + $0x188] sm:$0xff] }
 0x427   : > { %8117 = vst [vmem:[#allocation43_spill] sm:$0xff] %v6907_v21  ;;  %4875 = vmatmul.mubr.f32.gmra.mrb[46].mxu1 %v6907_v21 }
 0x429   : > { %v988_v30 = vpop.permute.xlu0 %987 }
 0x42a   : > { %v1132_v58 = vadd.f32 %v6714_v44, %v988_v30 }
 0x42c   : > { %v5273_v25 = vpack.c.bf16 %v1132_v58, %v1127_v56 }
 0x43c   : > { %v2028_v60 = vpop.trf.xlu1 }
 0x43d   : > { %4885 = vmatprep.mubr.msk.f32.mxu0 %vm1500_vm0, %v2028_v60 }
 0x440   : > { %v2029_v42 = vpop.trf.xlu1 }
 0x441   : > { %4886 = vmatmul.mubr.msk.f32.vlgmr.msra.gmra.mrb[32].mxu0 %vm1500_vm0, %v2029_v42 }
 0x442   : > { %5256 = vmatpush3.bf16.msra.mxu0 %v6734_v17 }
 0x443   : > { %5258 = vmatprep.subr.bf16.mxu0 %v6741_v22 }
 0x444   : > { %v2030_v43 = vpop.trf.xlu1 }
 0x445   : > { %4888 = vmatprep.mubr.msk.f32.mxu0 %vm1500_vm0, %v2030_v43 }
 0x446   : > { %5260 = vmatpush3.bf16.msra.mxu0 %v6741_v22 }
 0x447   : > { %5270 = vmatprep.subr.bf16.mxu0 %v5269_v18 }
 0x448   : > { %v2031_v45 = vpop.trf.xlu1  ;;  %v2571_v33 = vpop.trf.xlu0 }
 0x449   : > { %4889 = vmatmul.mubr.msk.f32.gmra.mrb[34].mxu0 %vm1500_vm0, %v2031_v45 }
 0x44a   : > { %v6945_v38 = vpop.f32.mrb[20].mxu0 }
 0x44b   : > { %v6948_v23 = vpop.f32.mrb[21].mxu0 }
 0x44c   : > { %v2032_v44 = vpop.trf.xlu1  ;;  %v2572_v47 = vpop.trf.xlu0 }
 0x44d   : > { %4891 = vmatprep.mubr.msk.f32.mxu0 %vm1500_vm0, %v2032_v44 }
 0x44e   : > { %v6951_v57 = vpop.f32.mrb[22].mxu0 }
 0x44f   : > { %v6953_v31 = vpop.f32.mrb[23].mxu0 }
 0x450   : > { %v2033_v29 = vpop.trf.xlu1  ;;  %v2573_v36 = vpop.trf.xlu0 }
 0x451   : > { %4892 = vmatmul.mubr.msk.f32.gmra.mrb[36].mxu0 %vm1500_vm0, %v2033_v29 }
 0x452   : > { %v6956_v37 = vpop.f32.mrb[24].mxu0 }
 0x453   : > { %v6959_v40 = vpop.f32.mrb[25].mxu0 }
 0x454   : > { %v2034_v17 = vpop.trf.xlu1  ;;  %v2574_v55 = vpop.trf.xlu0 }
 0x455   : > { %4894 = vmatprep.mubr.msk.f32.mxu0 %vm1500_vm0, %v2034_v17 }
 0x458   : > { %v2035_v63 = vpop.trf.xlu1  ;;  %v2575_v3 = vpop.trf.xlu0 }
 0x459   : > { %4895 = vmatmul.mubr.msk.f32.gmra.mrb[38].mxu0 %vm1500_vm0, %v2035_v63 }
 0x45a   : > { %4949 = vmatprep.mubr.msk.f32.mxu0 %vm1500_vm0, %v2571_v33 }
 0x45c   : > { %v2576_v22 = vpop.trf.xlu0  ;;  %v2036_v48 = vpop.trf.xlu1 }
 0x45d   : > { %4950 = vmatmul.mubr.msk.f32.vlgmr.msra.gmra.mrb[40].mxu0 %vm1500_vm0, %v2572_v47  ;;  %4897 = vmatprep.mubr.msk.f32.mxu1 %vm1500_vm0, %v2036_v48 }
 0x45e   : > { %5272 = vmatpush3.bf16.msra.mxu0 %v5269_v18  ;;  %4952 = vmatprep.mubr.msk.f32.mxu0 %vm1500_vm0, %v2573_v36  ;;  %v6961_v18 = vpop.f32.mrb[26].mxu0 }
 0x45f   : > { %5274 = vmatprep.subr.bf16.mxu0 %v5273_v25  ;;  %v6964_v26 = vpop.f32.mrb[27].mxu0 }
 0x460   : > { %v2577_v35 = vpop.trf.xlu0  ;;  %v2037_v39 = vpop.trf.xlu1 }
 0x461   : > { %4953 = vmatmul.mubr.msk.f32.gmra.mrb[42].mxu0 %vm1500_vm0, %v2574_v55  ;;  %4898 = vmatmul.mubr.msk.f32.vlgmr.msra.gmra.mrb[48].mxu1 %vm1500_vm0, %v2037_v39  ;;  %v6967_v56 = vpop.f32.mrb[28].mxu0 }
 0x462   : > { %5276 = vmatpush3.bf16.msra.mxu0 %v5273_v25  ;;  %4955 = vmatprep.mubr.msk.f32.mxu0 %vm1500_vm0, %v2575_v3  ;;  %v6970_v58 = vpop.f32.mrb[29].mxu0 }
 0x463   : > { %v6973_v60 = vpop.f32.mrb[30].mxu0 }
 0x464   : > { %v2578_v62 = vpop.trf.xlu0  ;;  %v2038_v9 = vpop.trf.xlu1  ;;  %8118 = vst [vmem:[#allocation44_spill] sm:$0xff] %v6973_v60 }
 0x465   : > { %4956 = vmatmul.mubr.msk.f32.gmra.mrb[44].mxu0 %vm1500_vm0, %v2576_v22  ;;  %4900 = vmatprep.mubr.msk.f32.mxu1 %vm1500_vm0, %v2038_v9  ;;  %v6976_v42 = vpop.f32.mrb[31].mxu0 }
 0x466   : > { %4958 = vmatprep.mubr.msk.f32.mxu0 %vm1500_vm0, %v2577_v35  ;;  %8119 = vst [vmem:[#allocation45_spill] sm:$0xff] %v6976_v42 }
 0x468   : > { %v2579_v50 = vpop.trf.xlu0  ;;  %v2039_v1 = vpop.trf.xlu1 }
 0x469   : > { %4959 = vmatmul.mubr.msk.f32.gmra.mrb[46].mxu0 %vm1500_vm0, %v2578_v62  ;;  %4901 = vmatmul.mubr.msk.f32.gmra.mrb[50].mxu1 %vm1500_vm0, %v2039_v1 }
 0x46a   : > { %4961 = vmatprep.mubr.msk.f32.mxu0 %vm1500_vm0, %v2579_v50 }
 0x46c   : > { %v2580_v11 = vpop.trf.xlu0  ;;  %v2040_v8 = vpop.trf.xlu1 }
 0x46d   : > { %4962 = vmatmul.mubr.msk.f32.gmra.mrb[48].mxu0 %vm1500_vm0, %v2580_v11  ;;  %4903 = vmatprep.mubr.msk.f32.mxu1 %vm1500_vm0, %v2040_v8 }
 0x470   : > { %v2581_v12 = vpop.trf.xlu0  ;;  %v2041_v0 = vpop.trf.xlu1 }
 0x471   : > { %4964 = vmatprep.mubr.msk.f32.mxu0 %vm1500_vm0, %v2581_v12  ;;  %4904 = vmatmul.mubr.msk.f32.gmra.mrb[52].mxu1 %vm1500_vm0, %v2041_v0 }
 0x474   : > { %v2582_v14 = vpop.trf.xlu0  ;;  %v2042_v4 = vpop.trf.xlu1 }
 0x475   : > { %4965 = vmatmul.mubr.msk.f32.gmra.mrb[50].mxu0 %vm1500_vm0, %v2582_v14  ;;  %4906 = vmatprep.mubr.msk.f32.mxu1 %vm1500_vm0, %v2042_v4 }
 0x478   : > { %v2583_v5 = vpop.trf.xlu0  ;;  %v2043_v6 = vpop.trf.xlu1 }
 0x479   : > { %4967 = vmatprep.mubr.msk.f32.mxu0 %vm1500_vm0, %v2583_v5  ;;  %4907 = vmatmul.mubr.msk.f32.gmra.mrb[54].mxu1 %vm1500_vm0, %v2043_v6  ;;  %v4251_v6 = vld [vmem:[%s6429_s2 + $0x88] sm:$0xff] }
 0x47c   : > { %v2584_v7 = vpop.trf.xlu0  ;;  %v3114_v20 = vpop.trf.xlu1 }
 0x47d   : > { %4968 = vmatmul.mubr.msk.f32.gmra.mrb[52].mxu0 %vm1500_vm0, %v2584_v7  ;;  %v4250_v7 = vld [vmem:[%s6429_s2 + $0x80] sm:$0xff] }
 0x480   : > { %v2585_v49 = vpop.trf.xlu0  ;;  %v3115_v28 = vpop.trf.xlu1 }
 0x481   : > { %4970 = vmatprep.mubr.msk.f32.mxu0 %vm1500_vm0, %v2585_v49 }
 0x484   : > { %v2586_v2 = vpop.trf.xlu0  ;;  %v3116_v10 = vpop.trf.xlu1 }
 0x485   : > { %4971 = vmatmul.mubr.msk.f32.gmra.mrb[54].mxu0 %vm1500_vm0, %v2586_v2 }
 0x486   : > { %5013 = vmatprep.mubr.msk.f32.mxu0 %vm1500_vm0, %v3114_v20 }
 0x488   : > { %v3117_v59 = vpop.trf.xlu1 }
 0x489   : > { %5014 = vmatmul.mubr.msk.f32.vlgmr.msra.gmra.mrb[56].mxu0 %vm1500_vm0, %v3115_v28 }
 0x48a   : > { %5016 = vmatprep.mubr.msk.f32.mxu0 %vm1500_vm0, %v3116_v10  ;;  %v4253_v10 = vld [vmem:[%s6429_s2 + $0x98] sm:$0xff] }
 0x48c   : > { %v3118_v30 = vpop.trf.xlu1 }
 0x48d   : > { %5017 = vmatmul.mubr.msk.f32.gmra.mrb[58].mxu0 %vm1500_vm0, %v3117_v59  ;;  %v4252_v59 = vld [vmem:[%s6429_s2 + $0x90] sm:$0xff] }
 0x48e   : > { %5019 = vmatprep.mubr.msk.f32.mxu0 %vm1500_vm0, %v3118_v30 }
 0x490   : > { %v3119_v25 = vpop.trf.xlu1 }
 0x491   : > { %5020 = vmatmul.mubr.msk.f32.gmra.mrb[60].mxu0 %vm1500_vm0, %v3119_v25 }
 0x494   : > { %v3120_v43 = vpop.trf.xlu1 }
 0x495   : > { %5022 = vmatprep.mubr.msk.f32.mxu0 %vm1500_vm0, %v3120_v43 }
 0x498   : > { %v3121_v45 = vpop.trf.xlu1 }
 0x499   : > { %5023 = vmatmul.mubr.msk.f32.gmra.mrb[62].mxu0 %vm1500_vm0, %v3121_v45 }
 0x49c   : > { %v3122_v33 = vpop.trf.xlu1 }
 0x49d   : > { %5025 = vmatprep.mubr.msk.f32.mxu0 %vm1500_vm0, %v3122_v33  ;;  %v4254_v33 = vld [vmem:[%s6429_s2 + $0xa0] sm:$0xff] }
 0x4a0   : > { %v3123_v44 = vpop.trf.xlu1 }
 0x4a1   : > { %5026 = vmatmul.mubr.msk.f32.gmra.mrb[64].mxu0 %vm1500_vm0, %v3123_v44 }
 0x4a4   : > { %v3124_v47 = vpop.trf.xlu1 }
 0x4a5   : > { %5028 = vmatprep.mubr.msk.f32.mxu0 %vm1500_vm0, %v3124_v47  ;;  %v4255_v47 = vld [vmem:[%s6429_s2 + $0xa8] sm:$0xff] }
 0x4a8   : > { %v3125_v29 = vpop.trf.xlu1 }
 0x4a9   : > { %5029 = vmatmul.mubr.msk.f32.gmra.mrb[66].mxu0 %vm1500_vm0, %v3125_v29 }
 0x4ac   : > { %v3126_v36 = vpop.trf.xlu1 }
 0x4ad   : > { %5031 = vmatprep.mubr.msk.f32.mxu0 %vm1500_vm0, %v3126_v36 }
 0x4b0   : > { %v3127_v17 = vpop.trf.xlu1 }
 0x4b1   : > { %5032 = vmatmul.mubr.msk.f32.gmra.mrb[68].mxu0 %vm1500_vm0, %v3127_v17 }
 0x4b4   : > { %v3128_v55 = vpop.trf.xlu1 }
 0x4b5   : > { %5034 = vmatprep.mubr.msk.f32.mxu0 %vm1500_vm0, %v3128_v55  ;;  %v4256_v55 = vld [vmem:[%s6429_s2 + $0xb0] sm:$0xff] }
 0x4b8   : > { %v3129_v63 = vpop.trf.xlu1 }
 0x4b9   : > { %5035 = vmatmul.mubr.msk.f32.gmra.mrb[70].mxu0 %vm1500_vm0, %v3129_v63 }
 0x4c2   : > { %v6988_v3 = vpop.f32.mrb[32].mxu1 }
 0x4c3   : > { %8120 = vst [vmem:[#allocation46_spill] sm:$0xff] %v6988_v3  ;;  %v6990_v22 = vpop.f32.mrb[33].mxu1  ;;  %v4297_v3 = vld [vmem:[%s6429_s2 + $0x178] sm:$0xff] }
 0x4c4   : > { %8121 = vst [vmem:[#allocation47_spill] sm:$0xff] %v6990_v22  ;;  %v4257_v22 = vld [vmem:[%s6429_s2 + $0xb8] sm:$0xff] }
 0x4cd   : > { %v6992_v48 = vpop.f32.mrb[34].mxu1 }
 0x4ce   : > { %8122 = vst [vmem:[#allocation48_spill] sm:$0xff] %v6992_v48  ;;  %v6994_v35 = vpop.f32.mrb[35].mxu1 }
 0x4cf   : > { %8123 = vst [vmem:[#allocation49_spill] sm:$0xff] %v6994_v35 }
 0x4d5   : > { %v6996_v39 = vpop.f32.mrb[36].mxu1 }
 0x4d6   : > { %8124 = vst [vmem:[#allocation50_spill] sm:$0xff] %v6996_v39  ;;  %v6998_v62 = vpop.f32.mrb[37].mxu1  ;;  %v4295_v39 = vld [vmem:[%s6429_s2 + $0x168] sm:$0xff] }
 0x4d7   : > { %8125 = vst [vmem:[#allocation51_spill] sm:$0xff] %v6998_v62 }
 0x4da   : > { %v7000_v9 = vpop.f32.mrb[38].mxu1 }
 0x4db   : > { %8126 = vst [vmem:[#allocation52_spill] sm:$0xff] %v7000_v9  ;;  %v7002_v50 = vpop.f32.mrb[39].mxu1 }
 0x4dc   : > { %8127 = vst [vmem:[#allocation53_spill] sm:$0xff] %v7002_v50  ;;  %v4293_v50 = vld [vmem:[%s6429_s2 + $0x158] sm:$0xff] }
 0x4e5   : > { %v7004_v1 = vpop.f32.mrb[40].mxu1 }
 0x4e6   : > { %8128 = vst [vmem:[#allocation54_spill] sm:$0xff] %v7004_v1  ;;  %v7006_v11 = vpop.f32.mrb[41].mxu1 }
 0x4e7   : > { %8129 = vst [vmem:[#allocation55_spill] sm:$0xff] %v7006_v11 }
 0x4ed   : > { %v7008_v8 = vpop.f32.mrb[42].mxu1 }
 0x4ee   : > { %8130 = vst [vmem:[#allocation56_spill] sm:$0xff] %v7008_v8  ;;  %v7010_v12 = vpop.f32.mrb[43].mxu1 }
 0x4ef   : > { %8131 = vst [vmem:[#allocation57_spill] sm:$0xff] %v7010_v12 }
 0x4f2   : > { %v7012_v0 = vpop.f32.mrb[44].mxu1 }
 0x4f3   : > { %8132 = vst [vmem:[#allocation58_spill] sm:$0xff] %v7012_v0  ;;  %v7014_v14 = vpop.f32.mrb[45].mxu1  ;;  %v4288_v0 = vld [vmem:[%s6429_s2 + $0x130] sm:$0xff] }
 0x4f4   : > { %8133 = vst [vmem:[#allocation59_spill] sm:$0xff] %v7014_v14 }
 0x4fa   : > { %v7016_v4 = vpop.f32.mrb[46].mxu1 }
 0x4fb   : > { %8134 = vst [vmem:[#allocation60_spill] sm:$0xff] %v7016_v4  ;;  %v7018_v5 = vpop.f32.mrb[47].mxu1 }
 0x4fc   : > { %8135 = vst [vmem:[#allocation61_spill] sm:$0xff] %v7018_v5 }
 0x514   : > { %v4887_v20 = vpop.f32.mrb[32].mxu0 }
 0x515   : > { %v7022_v49 = vadd.f32 %v4887_v20, %v4251_v6  ;;  %v2158_v28 = vpop.f32.mrb[33].mxu0  ;;  %v4283_v20 = vld [vmem:[%s6429_s2 + $0x108] sm:$0xff] }
 0x516   : > { %v7024_v2 = vadd.f32 %v4250_v7, %v2158_v28 }
 0x517   : > { %2239 = vmax.xlane.f32.xlu1 %v7022_v49 }
 0x518   : > { %2237 = vmax.xlane.f32.xlu0 %v7024_v2 }
 0x51c   : > { %v4890_v30 = vpop.f32.mrb[34].mxu0 }
 0x51d   : > { %v7030_v25 = vadd.f32 %v4890_v30, %v4253_v10  ;;  %v2168_v43 = vpop.f32.mrb[35].mxu0  ;;  %v4284_v30 = vld [vmem:[%s6429_s2 + $0x110] sm:$0xff] }
 0x51e   : > { %v7032_v45 = vadd.f32 %v4252_v59, %v2168_v43  ;;  %v1187_v43 = vld [vmem:[%s8101_s6 + $0x20] sm:$0xff] }
 0x51f   : > { %2243 = vmax.xlane.f32.xlu1 %v7030_v25 }
 0x520   : > { %2241 = vmax.xlane.f32.xlu0 %v7032_v45 }
 0x524   : > { %v4893_v44 = vpop.f32.mrb[36].mxu0 }
 0x525   : > { %v2178_v29 = vpop.f32.mrb[37].mxu0  ;;  %v7040_v17 = vadd.f32 %v4893_v44, %v4255_v47 }
 0x526   : > { %v7038_v36 = vadd.f32 %v4254_v33, %v2178_v29 }
 0x528   : > { %2245 = vmax.xlane.f32.xlu1 %v7038_v36 }
 0x52c   : > { %v4896_v63 = vpop.f32.mrb[38].mxu0  ;;  %2247 = vmax.xlane.f32.xlu1 %v7040_v17 }
 0x52d   : > { %v2188_v6 = vpop.f32.mrb[39].mxu0  ;;  %v7106_v15 = vadd.f32 %v4896_v63, %v4257_v22 }
 0x52e   : > { %v7045_v7 = vadd.f32 %v4256_v55, %v2188_v6  ;;  %v4287_v6 = vld [vmem:[%s6429_s2 + $0x128] sm:$0xff] }
 0x530   : > { %2249 = vmax.xlane.f32.xlu1 %v7045_v7  ;;  %v4951_v28 = vpop.f32.mrb[40].mxu0 }
 0x531   : > { %v7049_v10 = vadd.f32 %v4951_v28, %v4283_v20  ;;  %v2701_v59 = vpop.f32.mrb[41].mxu0  ;;  %v1188_v20 = vld [vmem:[%s8101_s6 + $0x28] sm:$0xff] }
 0x532   : > { %v7113_v53 = vadd.f32 %v4282_v61, %v2701_v59  ;;  %v4289_v59 = vld [vmem:[%s6429_s2 + $0x138] sm:$0xff] }
 0x534   : > { %2782 = vmax.xlane.f32.xlu1 %v7049_v10  ;;  %v4954_v33 = vpop.f32.mrb[42].mxu0  ;;  %v7056_v44 = vpop.f32.mrb[48].mxu1 }
 0x535   : > { %v2711_v47 = vpop.f32.mrb[43].mxu0  ;;  %v7058_v29 = vpop.f32.mrb[49].mxu1 }
 0x536   : > { %v7060_v55 = vadd.f32 %v4284_v30, %v2711_v47  ;;  %1221 = vperm.xlu0 %5417, %v1187_v43   ;;  %v1189_v30 = vld [vmem:[%s8101_s6 + $0x30] sm:$0xff] }
 0x538   : > { %2784 = vmax.xlane.f32.xlu1 %v7060_v55  ;;  %v4957_v28 = vpop.f32.mrb[44].mxu0 }
 0x539   : > { %v7067_v4 = vadd.f32 %v4957_v28, %v4287_v6  ;;  %v2721_v5 = vpop.f32.mrb[45].mxu0  ;;  %v4291_v6 = vld [vmem:[%s6429_s2 + $0x148] sm:$0xff] }
 0x53a   : > { %1226 = vperm.xlu0 %5417, %v1188_v20   ;;  %v7126_v61 = vadd.f32 %v4286_v46, %v2721_v5  ;;  %v4292_v46 = vld [vmem:[%s6429_s2 + $0x150] sm:$0xff]  ;;  %v1192_v5 = vld [vmem:[%s8101_s6 + $0x48] sm:$0xff] }
 0x53c   : > { %2790 = vmax.xlane.f32.xlu1 %v7067_v4  ;;  %v4960_v43 = vpop.f32.mrb[46].mxu0  ;;  %v7074_v47 = vpop.f32.mrb[50].mxu1 }
 0x53d   : > { %v2731_v14 = vpop.f32.mrb[47].mxu0  ;;  %v7076_v8 = vpop.f32.mrb[51].mxu1  ;;  %v7130_v41 = vadd.f32 %v4960_v43, %v4289_v59  ;;  %v4294_v59 = vld [vmem:[%s6429_s2 + $0x160] sm:$0xff] }
 0x53e   : > { %v7078_v12 = vadd.f32 %v4288_v0, %v2731_v14  ;;  %1231 = vperm.xlu0 %5417, %v1189_v30  }
 0x53f   : > { %8140 = vst [vmem:[#allocation66_spill] sm:$0xff] %v7130_v41 }
 0x540   : > { %2792 = vmax.xlane.f32.xlu1 %v7078_v12  ;;  %v4963_v20 = vpop.f32.mrb[48].mxu0 }
 0x541   : > { %v7082_v28 = vadd.f32 %v4963_v20, %v4291_v6  ;;  %v2741_v1 = vpop.f32.mrb[49].mxu0 }
 0x542   : > { %v7141_v34 = vadd.f32 %v4290_v16, %v2741_v1  ;;  %v1194_v16 = vld [vmem:[%s8101_s6 + $0x58] sm:$0xff] }
 0x543   : > { %8136 = vst [vmem:[#allocation62_spill] sm:$0xff] %v7082_v28 }
 0x544   : > { %2798 = vmax.xlane.f32.xlu1 %v7082_v28  ;;  %v7085_v11 = vpop.f32.mrb[52].mxu1  ;;  %8141 = vst [vmem:[#allocation67_spill] sm:$0xff] %v7141_v34 }
 0x545   : > { %v7087_v9 = vpop.f32.mrb[53].mxu1 }
 0x548   : > { %v4966_v0 = vpop.f32.mrb[50].mxu0 }
 0x549   : > { %v7090_v14 = vadd.f32 %v4966_v0, %v4293_v50  ;;  %v2751_v30 = vpop.f32.mrb[51].mxu0 }
 0x54a   : > { %v7148_v43 = vadd.f32 %v4292_v46, %v2751_v30  ;;  %v1196_v30 = vld [vmem:[%s8101_s6 + $0x68] sm:$0xff] }
 0x54b   : > { %8137 = vst [vmem:[#allocation63_spill] sm:$0xff] %v7090_v14  ;;  %2802 = vmax.xlane.f32.xlu1 %v7090_v14 }
 0x54c   : > { %v7093_v6 = vpop.f32.mrb[54].mxu1  ;;  %8142 = vst [vmem:[#allocation68_spill] sm:$0xff] %v7148_v43 }
 0x54d   : > { %v7095_v20 = vpop.f32.mrb[55].mxu1 }
 0x550   : > { %v4969_v62 = vpop.f32.mrb[52].mxu0 }
 0x551   : > { %v7098_v48 = vadd.f32 %v4969_v62, %v4295_v39  ;;  %v2761_v35 = vpop.f32.mrb[53].mxu0 }
 0x553   : > { %8138 = vst [vmem:[#allocation64_spill] sm:$0xff] %v7098_v48  ;;  %2806 = vmax.xlane.f32.xlu1 %v7098_v48 }
 0x558   : > { %v4972_v50 = vpop.f32.mrb[54].mxu0 }
 0x559   : > { %v7103_v0 = vadd.f32 %v4972_v50, %v4297_v3  ;;  %v2771_v21 = vpop.f32.mrb[55].mxu0  ;;  %v4285_v3 = vld [vmem:[%s6429_s2 + $0x118] sm:$0xff] }
 0x55a   : > { %v7120_v63 = vadd.f32 %v4954_v33, %v4285_v3  ;;  %v1190_v33 = vld [vmem:[%s8101_s6 + $0x38] sm:$0xff]  ;;  %v7166_v46 = vadd.f32 %v4296_v32, %v2771_v21 }
 0x55b   : > { %8139 = vst [vmem:[#allocation65_spill] sm:$0xff] %v7103_v0  ;;  %2810 = vmax.xlane.f32.xlu1 %v7103_v0  ;;  %v1195_v0 = vld [vmem:[%s8101_s6 + $0x60] sm:$0xff] }
 0x55c   : > { %v5015_v54 = vpop.f32.mrb[56].mxu0  ;;  %8144 = vst [vmem:[#allocation70_spill] sm:$0xff] %v7166_v46 }
 0x55d   : > { %v7110_v39 = vadd.f32 %v5015_v54, %v4315_v24  ;;  %2251 = vmax.xlane.f32.xlu0 %v7106_v15  ;;  %v3244_v62 = vpop.f32.mrb[57].mxu0 }
 0x55f   : > { %3325 = vmax.xlane.f32.xlu1 %v7110_v39 }
 0x560   : > { %v7117_v50 = vpop.f32.mrb[58].mxu0 }
 0x561   : > { %2780 = vmax.xlane.f32.xlu0 %v7113_v53  ;;  %v3254_v22 = vpop.f32.mrb[59].mxu0 }
 0x564   : > { %v5021_v54 = vpop.f32.mrb[60].mxu0 }
 0x565   : > { %2786 = vmax.xlane.f32.xlu0 %v7120_v63  ;;  %v7124_v24 = vpop.f32.mrb[61].mxu0 }
 0x569   : > { %2788 = vmax.xlane.f32.xlu0 %v7126_v61 }
 0x56c   : > { %v7133_v52 = vpop.f32.mrb[62].mxu0 }
 0x56d   : > { %2794 = vmax.xlane.f32.xlu0 %v7130_v41  ;;  %v7139_v3 = vpop.f32.mrb[63].mxu0  ;;  %v4258_v41 = vld [vmem:[%s6429_s2 + $0xc0] sm:$0xff] }
 0x570   : > { %1236 = vperm.xlu1 %5418, %v1190_v33   ;;  %v7159_v33 = vadd.f32 %v4294_v59, %v2761_v35 }
 0x571   : > { %2796 = vmax.xlane.f32.xlu0 %v7141_v34 }
 0x572   : > { %8143 = vst [vmem:[#allocation69_spill] sm:$0xff] %v7159_v33 }
 0x574   : > { %1246 = vperm.xlu1 %5418, %v1192_v5   ;;  %v7151_v51 = vpop.f32.mrb[64].mxu0  ;;  %v4314_v5 = vld [vmem:[%s6429_s2 + $0x180] sm:$0xff] }
 0x575   : > { %2800 = vmax.xlane.f32.xlu0 %v7148_v43  ;;  %v7157_v1 = vpop.f32.mrb[65].mxu0  ;;  %v7174_v59 = vadd.f32 %v4314_v5, %v3244_v62  ;;  %v1193_v62 = vld [vmem:[%s8101_s6 + $0x50] sm:$0xff] }
 0x576   : > { %v4316_v5 = vld [vmem:[%s6429_s2 + $0x190] sm:$0xff] }
 0x577   : > { %v7192_v13 = vadd.f32 %v4316_v5, %v3254_v22  ;;  %v4261_v5 = vld [vmem:[%s6429_s2 + $0xd8] sm:$0xff] }
 0x578   : > { %1256 = vperm.xlu1 %5418, %v1194_v16  }
 0x579   : > { %2804 = vmax.xlane.f32.xlu0 %v7159_v33 }
 0x57c   : > { %1266 = vperm.xlu1 %5418, %v1196_v30   ;;  %v7169_v27 = vpop.f32.mrb[66].mxu0  ;;  %v1191_v30 = vld [vmem:[%s8101_s6 + $0x40] sm:$0xff] }
 0x57d   : > { %2808 = vmax.xlane.f32.xlu0 %v7166_v46  ;;  %v7172_v35 = vpop.f32.mrb[67].mxu0  ;;  %v4319_v46 = vld [vmem:[%s6429_s2 + $0x1a8] sm:$0xff] }
 0x57e   : > { %v7199_v48 = vadd.f32 %v5021_v54, %v4319_v46  ;;  %v4263_v54 = vld [vmem:[%s6429_s2 + $0xe8] sm:$0xff] }
 0x57f   : > { %v7217_v43 = vadd.f32 %v7085_v11, %v4263_v54 }
 0x581   : > { %3323 = vmax.xlane.f32.xlu0 %v7174_v59  ;;  %8145 = vst [vmem:[#allocation71_spill] sm:$0xff] %v7217_v43 }
 0x584   : > { %v7177_v16 = vpop.f32.mrb[68].mxu0 }
 0x585   : > { %v7179_v19 = vpop.f32.mrb[69].mxu0 }
 0x58c   : > { %v7181_v32 = vpop.f32.mrb[70].mxu0 }
 0x58d   : > { %v7183_v21 = vpop.f32.mrb[71].mxu0 }
 0x597   : > { %1241 = vperm.xlu0 %5417, %v1191_v30   ;;  %v4259_v30 = vld [vmem:[%s6429_s2 + $0xc8] sm:$0xff] }
 0x59b   : > { %1251 = vperm.xlu0 %5417, %v1193_v62   ;;  %v7204_v62 = vadd.f32 %v7056_v44, %v4259_v30  ;;  %v4265_v44 = vld [vmem:[%s6429_s2 + $0xf8] sm:$0xff] }
 0x59f   : > { %1261 = vperm.xlu0 %5417, %v1195_v0   ;;  %v7210_v0 = vadd.f32 %v7074_v47, %v4261_v5  ;;  %v7226_v47 = vadd.f32 %v7093_v6, %v4265_v44  ;;  %v4318_v44 = vld [vmem:[%s6429_s2 + $0x1a0] sm:$0xff] }
 0x5a0   : > { %3327 = vmax.xlane.f32.xlu1 %v7192_v13 }
 0x5a1   : > { %8146 = vst [vmem:[#allocation72_spill] sm:$0xff] %v7226_v47 }
 0x5a4   : > { %3333 = vmax.xlane.f32.xlu1 %v7199_v48  ;;  %v7214_v46 = vpop.xlane.xlu1 %2239 }
 0x5a5   : > { %v2238_v33 = vpop.xlane.xlu0 %2237 }
 0x5a6   : > { %v2269_v22 = vsub.f32 %v7024_v2, %v2238_v33 }
 0x5a8   : > { %v2285_v14 = vmul.f32 1.442695, %v2269_v22  ;;  %2255 = vmax.xlane.f32.xlu1 %v7204_v62  ;;  %v4317_v22 = vld [vmem:[%s6429_s2 + $0x198] sm:$0xff] }
 0x5a9   : > { %v7241_v34 = vadd.f32 %v7117_v50, %v4317_v22  ;;  %v4260_v50 = vld [vmem:[%s6429_s2 + $0xd0] sm:$0xff] }
 0x5aa   : > { %5571 = vpow2.f32 %v2285_v14 }
 0x5ac   : > { %2259 = vmax.xlane.f32.xlu1 %v7210_v0  ;;  %v7221_v2 = vpop.xlane.xlu1 %2243 }
 0x5ad   : > { %v7223_v33 = vpop.xlane.xlu0 %2241 }
 0x5b0   : > { %2263 = vmax.xlane.f32.xlu1 %v7217_v43  ;;  %v2272_v43 = vsub.f32 %v7030_v25, %v7221_v2 }
 0x5b2   : > { %v2291_v25 = vmul.f32 1.442695, %v2272_v43 }
 0x5b4   : > { %v7228_v14 = vpop.eup %5571  ;;  %2267 = vmax.xlane.f32.xlu1 %v7226_v47  ;;  %v7246_v47 = vadd.f32 %v4318_v44, %v7124_v24  ;;  %v7260_v24 = vadd.f32 %v4260_v50, %v7076_v8 }
 0x5b5   : > { %v7231_v30 = vpop.xlane.xlu1 %2245  ;;  %4917 = vmatprep.mubr.f32.mxu1 %v7228_v14  ;;  %v1222_v11 = vpop.permute.xlu0 %1221 }
 0x5b6   : > { %v1366_v28 = vadd.f32 %v6948_v23, %v1222_v11  ;;  %v7255_v23 = vadd.f32 %v4258_v41, %v7058_v29  ;;  %v4264_v41 = vld [vmem:[%s6429_s2 + $0xf0] sm:$0xff] }
 0x5b7   : > { %v7272_v29 = vadd.f32 %v4264_v41, %v7095_v20  ;;  %v1197_v20 = vld [vmem:[%s8101_s6 + $0x70] sm:$0xff]  ;;  %v4323_v41 = vld [vmem:[%s6429_s2 + $0x1c8] sm:$0xff] }
 0x5b9   : > { %v7235_v5 = vpop.xlane.xlu1 %2247  ;;  %v1227_v54 = vpop.permute.xlu0 %1226  ;;  %8148 = vst [vmem:[#allocation74_spill] sm:$0xff] %v7272_v29 }
 0x5ba   : > { %v1371_v6 = vadd.f32 %v6945_v38, %v1227_v54  ;;  %v1198_v38 = vld [vmem:[%s8101_s6 + $0x78] sm:$0xff] }
 0x5bc   : > { %v5245_v42 = vpack.c.bf16 %v1371_v6, %v1366_v28 }
 0x5bd   : > { %v7243_v60 = vpop.xlane.xlu1 %2249 }
 0x5be   : > { %3329 = vmax.xlane.f32.xlu0 %v7241_v34  ;;  %5246 = vmatprep.subr.bf16.mxu1 %v5245_v42  ;;  %v2275_v43 = vsub.f32 %v7045_v7, %v7243_v60 }
 0x5bf   : > { %5248 = vmatpush3.bf16.xpose.msra.mxu1 %v5245_v42  ;;  %v4262_v42 = vld [vmem:[%s6429_s2 + $0xe0] sm:$0xff] }
 0x5c0   : > { %v7267_v22 = vadd.f32 %v4262_v42, %v7087_v9  ;;  %v1232_v42 = vpop.permute.xlu0 %1231 }
 0x5c1   : > { %v2783_v28 = vpop.xlane.xlu1 %2782  ;;  %v1376_v2 = vadd.f32 %v6953_v31, %v1232_v42 }
 0x5c2   : > { %3331 = vmax.xlane.f32.xlu0 %v7246_v47  ;;  %8147 = vst [vmem:[#allocation73_spill] sm:$0xff] %v7267_v22 }
 0x5c5   : > { %1276 = vperm.xlu1 %5418, %v1198_v38   ;;  %v7263_v11 = vpop.xlane.xlu1 %2784  ;;  %v4320_v38 = vld [vmem:[%s6429_s2 + $0x1b0] sm:$0xff] }
 0x5c6   : > { %2253 = vmax.xlane.f32.xlu0 %v7255_v23  ;;  %v7287_v50 = vadd.f32 %v4320_v38, %v7139_v3  ;;  %v4325_v38 = vld [vmem:[%s6429_s2 + $0x1d8] sm:$0xff] }
 0x5c8   : > { %8152 = vst [vmem:[#allocation78_spill] sm:$0xff] %v7287_v50 }
 0x5c9   : > { %v7274_v54 = vpop.xlane.xlu1 %2790 }
 0x5ca   : > { %2257 = vmax.xlane.f32.xlu0 %v7260_v24 }
 0x5cd   : > { %v7277_v8 = vpop.xlane.xlu1 %2792 }
 0x5ce   : > { %2261 = vmax.xlane.f32.xlu0 %v7267_v22 }
 0x5d1   : > { %v7279_v6 = vpop.xlane.xlu1 %2798 }
 0x5d2   : > { %2265 = vmax.xlane.f32.xlu0 %v7272_v29  ;;  %8149 = vst [vmem:[#allocation75_spill] sm:$0xff] %v7279_v6  ;;  %v2271_v6 = vsub.f32 %v7032_v45, %v7223_v33  ;;  %v2273_v45 = vsub.f32 %v7038_v36, %v7231_v30  ;;  %v4329_v36 = vld [vmem:[%s6429_s2 + $0x1f8] sm:$0xff] }
 0x5d4   : > { %v2293_v30 = vmul.f32 1.442695, %v2273_v45 }
 0x5d8   : > { %v7281_v44 = vpop.xlane.xlu1 %2802 }
 0x5d9   : > { %8150 = vst [vmem:[#allocation76_spill] sm:$0xff] %v7281_v44  ;;  %v7297_v44 = vadd.f32 %v7151_v51, %v4323_v41  ;;  %v2813_v41 = vsub.f32 %v7049_v10, %v2783_v28 }
 0x5db   : > { %v2830_v10 = vmul.f32 1.442695, %v2813_v41  ;;  %v4321_v41 = vld [vmem:[%s6429_s2 + $0x1b8] sm:$0xff] }
 0x5e0   : > { %v7284_v9 = vpop.xlane.xlu1 %2806 }
 0x5e1   : > { %8151 = vst [vmem:[#allocation77_spill] sm:$0xff] %v7284_v9  ;;  %v2270_v9 = vsub.f32 %v7022_v49, %v7214_v46  ;;  %v2289_v46 = vmul.f32 1.442695, %v2271_v6 }
 0x5e3   : > { %v2287_v51 = vmul.f32 1.442695, %v2270_v9 }
 0x5e5   : > { %5573 = vpow2.f32 %v2287_v51 }
 0x5e6   : > { %5575 = vpow2.f32 %v2289_v46 }
 0x5e7   : > { %5577 = vpow2.f32 %v2291_v25 }
 0x5e8   : > { %v7293_v29 = vpop.xlane.xlu1 %2810  ;;  %1271 = vperm.xlu0 %5417, %v1197_v20   ;;  %v7308_v20 = vadd.f32 %v7169_v27, %v4325_v38  ;;  %v2274_v27 = vsub.f32 %v7040_v17, %v7235_v5  ;;  %5579 = vpow2.f32 %v2830_v10 }
 0x5e9   : > { %8153 = vst [vmem:[#allocation79_spill] sm:$0xff] %v7293_v29  ;;  %3335 = vmax.xlane.f32.xlu1 %v7287_v50  ;;  %v4327_v29 = vld [vmem:[%s6429_s2 + $0x1e8] sm:$0xff]  ;;  %5581 = vpow2.f32 %v2293_v30 }
 0x5ea   : > { %v2252_v3 = vpop.xlane.xlu0 %2251  ;;  %v7317_v50 = vadd.f32 %v7177_v16, %v4327_v29  ;;  %v2295_v17 = vmul.f32 1.442695, %v2274_v27  ;;  %v4322_v27 = vld [vmem:[%s6429_s2 + $0x1c0] sm:$0xff] }
 0x5eb   : > { %v2276_v31 = vsub.f32 %v7106_v15, %v2252_v3  ;;  %v7369_v10 = vadd.f32 %v4322_v27, %v7157_v1 }
 0x5ec   : > { %v3326_v22 = vpop.xlane.xlu1 %3325  ;;  %5583 = vpow2.f32 %v2295_v17 }
 0x5ed   : > { %3341 = vmax.xlane.f32.xlu1 %v7297_v44  ;;  %v3356_v28 = vsub.f32 %v7110_v39, %v3326_v22  ;;  %v2297_v22 = vmul.f32 1.442695, %v2275_v43  ;;  %v2299_v60 = vmul.f32 1.442695, %v2276_v31  ;;  %v4326_v43 = vld [vmem:[%s6429_s2 + $0x1e0] sm:$0xff] }
 0x5ee   : > { %v7312_v49 = vpop.xlane.xlu0 %2780  ;;  %v7389_v17 = vadd.f32 %v4326_v43, %v7179_v19 }
 0x5ef   : > { %v3373_v39 = vmul.f32 1.442695, %v3356_v28  ;;  %v4324_v28 = vld [vmem:[%s6429_s2 + $0x1d0] sm:$0xff]  ;;  %v2812_v1 = vsub.f32 %v7113_v53, %v7312_v49 }
 0x5f0   : > { %v1237_v33 = vpop.permute.xlu1 %1236 }
 0x5f1   : > { %v1381_v9 = vadd.f32 %v6951_v57, %v1237_v33  ;;  %3345 = vmax.xlane.f32.xlu1 %v7308_v20  ;;  %v7330_v57 = vadd.f32 %v7181_v32, %v4329_v36  ;;  %5585 = vpow2.f32 %v3373_v39  ;;  %v5574_v32 = vpop.eup %5573  ;;  %v7356_v33 = vadd.f32 %v7133_v52, %v4321_v41 }
 0x5f2   : > { %v2787_v6 = vpop.xlane.xlu0 %2786  ;;  %5587 = vpow2.f32 %v2297_v22  ;;  %v7339_v42 = vpop.eup %5575  ;;  %v7379_v36 = vadd.f32 %v4324_v28, %v7172_v35  ;;  %v2828_v31 = vmul.f32 1.442695, %v2812_v1  ;;  %v4328_v22 = vld [vmem:[%s6429_s2 + $0x1f0] sm:$0xff]  ;;  %s6058_s2 = smov 32  }
 0x5f3   : > { %v5249_v16 = vpack.c.bf16 %v1381_v9, %v1376_v2  ;;  %v2815_v7 = vsub.f32 %v7120_v63, %v2787_v6  ;;  %5589 = vpow2.f32 %v2299_v60  ;;  %v5578_v38 = vpop.eup %5577  ;;  %v7396_v60 = vadd.f32 %v4328_v22, %v7183_v21 }
 0x5f4   : > { %v7344_v51 = vpop.eup %5579  ;;  %v1247_v39 = vpop.permute.xlu1 %1246 }
 0x5f5   : > { %3349 = vmax.xlane.f32.xlu1 %v7317_v50  ;;  %5250 = vmatprep.subr.bf16.mxu1 %v5249_v16  ;;  %v2834_v15 = vmul.f32 1.442695, %v2815_v7  ;;  %v7347_v63 = vpop.eup %5581 }
 0x5f6   : > { %5252 = vmatpush3.bf16.xpose.msra.mxu1 %v5249_v16  ;;  %v7333_v5 = vpop.xlane.xlu0 %2788  ;;  %v7353_v45 = vpop.eup %5583 }
 0x5f7   : > { %5591 = vpow2.f32 %v2834_v15  ;;  %v2814_v15 = vsub.f32 %v7060_v55, %v7263_v11 }
 0x5f8   : > { %5593 = vpow2.f32 %v2828_v31  ;;  %v1257_v49 = vpop.permute.xlu1 %1256 }
 0x5f9   : > { %3353 = vmax.xlane.f32.xlu1 %v7330_v57  ;;  %v1401_v41 = vadd.f32 %v6961_v18, %v1257_v49  ;;  %v2832_v27 = vmul.f32 1.442695, %v2814_v15 }
 0x5fa   : > { %v7337_v29 = vpop.xlane.xlu0 %2794 }
 0x5fb   : > { %v7358_v25 = vpop.eup %5585 }
 0x5fc   : > { %v7361_v2 = vpop.eup %5587  ;;  %v1267_v28 = vpop.permute.xlu1 %1266 }
 0x5fd   : > { %2319 = vadd.xlane.f32.xlu1 %v5574_v32  ;;  %4918 = vmatmul.mubr.f32.vlgmr.msra.gmra.mrb[56].mxu1 %v5574_v32  ;;  %v7372_v52 = vpop.eup %5589  ;;  %v1391_v32 = vadd.f32 %v6956_v37, %v1247_v39  ;;  %v1411_v43 = vadd.f32 %v6967_v56, %v1267_v28 }
 0x5fe   : > { %4920 = vmatprep.mubr.f32.mxu1 %v7339_v42  ;;  %v7342_v3 = vpop.xlane.xlu0 %2796 }
 0x601   : > { %2862 = vadd.xlane.f32.xlu1 %v7344_v51  ;;  %4921 = vmatmul.mubr.f32.gmra.mrb[58].mxu1 %v5578_v38  ;;  %v7382_v30 = vpop.eup %5591 }
 0x602   : > { %4923 = vmatprep.mubr.f32.mxu1 %v7347_v63  ;;  %v7351_v46 = vpop.xlane.xlu0 %2800 }
 0x605   : > { %3405 = vadd.xlane.f32.xlu1 %v7358_v25  ;;  %4924 = vmatmul.mubr.f32.gmra.mrb[60].mxu1 %v7353_v45 }
 0x606   : > { %4926 = vmatprep.mubr.f32.mxu1 %v7361_v2  ;;  %v7366_v9 = vpop.xlane.xlu0 %2804 }
 0x607   : > { %3337 = vmax.xlane.f32.xlu0 %v7356_v33 }
 0x609   : > { %2323 = vadd.xlane.f32.xlu1 %v5578_v38  ;;  %4927 = vmatmul.mubr.f32.gmra.mrb[62].mxu1 %v7372_v52 }
 0x60a   : > { %v7376_v6 = vpop.xlane.xlu0 %2808 }
 0x60b   : > { %3339 = vmax.xlane.f32.xlu0 %v7369_v10 }
 0x60d   : > { %2866 = vadd.xlane.f32.xlu1 %v7382_v30 }
 0x60e   : > { %v3324_v16 = vpop.xlane.xlu0 %3323 }
 0x60f   : > { %3343 = vmax.xlane.f32.xlu0 %v7379_v36  ;;  %v3355_v35 = vsub.f32 %v7174_v59, %v3324_v16  ;;  %v2816_v16 = vsub.f32 %v7126_v61, %v7333_v5  ;;  %v2817_v61 = vsub.f32 %v7067_v4, %v7274_v54 }
 0x611   : > { %v3371_v53 = vmul.f32 1.442695, %v3355_v35  ;;  %v2836_v31 = vmul.f32 1.442695, %v2816_v16 }
 0x613   : > { %3347 = vmax.xlane.f32.xlu0 %v7389_v17  ;;  %5595 = vpow2.f32 %v3371_v53 }
 0x614   : > { %5597 = vpow2.f32 %v2832_v27 }
 0x616   : > { %v1242_v7 = vpop.permute.xlu0 %1241 }
 0x617   : > { %v1386_v19 = vadd.f32 %v6959_v40, %v1242_v7  ;;  %3351 = vmax.xlane.f32.xlu0 %v7396_v60  ;;  %v7406_v40 = vpop.eup %5593 }
 0x619   : > { %v5261_v59 = vpack.c.bf16 %v1391_v32, %v1386_v19 }
 0x61a   : > { %v1252_v38 = vpop.permute.xlu0 %1251 }
 0x61b   : > { %v1396_v21 = vadd.f32 %v6964_v26, %v1252_v38  ;;  %2317 = vadd.xlane.f32.xlu0 %v7228_v14  ;;  %5262 = vmatprep.subr.bf16.mxu1 %v5261_v59 }
 0x61c   : > { %5264 = vmatpush3.bf16.xpose.msra.mxu1 %v5261_v59  ;;  %v2838_v59 = vmul.f32 1.442695, %v2817_v61 }
 0x61d   : > { %v5265_v37 = vpack.c.bf16 %v1401_v41, %v1396_v21  ;;  %v7413_v26 = vpop.eup %5595 }
 0x61e   : > { %v1262_v1 = vpop.permute.xlu0 %1261  ;;  %v7418_v14 = vpop.eup %5597 }
 0x61f   : > { %v1406_v55 = vadd.f32 %v6970_v58, %v1262_v1  ;;  %2860 = vadd.xlane.f32.xlu0 %v7406_v40  ;;  %5266 = vmatprep.subr.bf16.mxu1 %v5265_v37 }
 0x621   : > { %v7411_v18 = vpack.c.bf16 %v1411_v43, %v1406_v55  ;;  %v8155_v43 = vld [vmem:[#allocation66_spill] sm:$0xff] }
 0x622   : > { %v2819_v55 = vsub.f32 %v8155_v43, %v7337_v29  ;;  %v8164_v43 = vld [vmem:[#allocation68_spill] sm:$0xff] }
 0x623   : > { %3403 = vadd.xlane.f32.xlu0 %v7413_v26 }
 0x624   : > { %5268 = vmatpush3.bf16.xpose.msra.mxu1 %v5265_v37 }
 0x625   : > { %5278 = vmatprep.subr.bf16.mxu1 %v7411_v18 }
 0x627   : > { %2321 = vadd.xlane.f32.xlu0 %v7339_v42 }
 0x62b   : > { %2864 = vadd.xlane.f32.xlu0 %v7418_v14 }
 0x62d   : > { %v3328_v56 = vpop.xlane.xlu1 %3327 }
 0x62e   : > { %v3357_v58 = vsub.f32 %v7192_v13, %v3328_v56 }
 0x630   : > { %v3375_v11 = vmul.f32 1.442695, %v3357_v58  ;;  %v8156_v58 = vld [vmem:[#allocation73_spill] sm:$0xff] }
 0x631   : > { %v3334_v42 = vpop.xlane.xlu1 %3333 }
 0x632   : > { %5599 = vpow2.f32 %v3375_v11  ;;  %v3360_v38 = vsub.f32 %v7199_v48, %v3334_v42 }
 0x633   : > { %5601 = vpow2.f32 %v2836_v31  ;;  %v8157_v31 = vld [vmem:[#allocation72_spill] sm:$0xff] }
 0x635   : > { %v2256_v22 = vpop.xlane.xlu1 %2255 }
 0x636   : > { %v2278_v19 = vsub.f32 %v7204_v62, %v2256_v22 }
 0x638   : > { %v2303_v54 = vmul.f32 1.442695, %v2278_v19 }
 0x639   : > { %v2260_v5 = vpop.xlane.xlu1 %2259 }
 0x63a   : > { %v2280_v27 = vsub.f32 %v7210_v0, %v2260_v5 }
 0x63c   : > { %v7424_v39 = vpop.eup %5599  ;;  %v2307_v48 = vmul.f32 1.442695, %v2280_v27 }
 0x63d   : > { %3407 = vadd.xlane.f32.xlu0 %v7424_v39  ;;  %v7428_v35 = vpop.eup %5601  ;;  %v2264_v4 = vpop.xlane.xlu1 %2263 }
 0x641   : > { %2325 = vadd.xlane.f32.xlu0 %v7347_v63  ;;  %v2818_v63 = vsub.f32 %v7078_v12, %v7277_v8  ;;  %v8154_v8 = vld [vmem:[#allocation71_spill] sm:$0xff]  ;;  %v2268_v0 = vpop.xlane.xlu1 %2267 }
 0x642   : > { %v2282_v1 = vsub.f32 %v8154_v8, %v2264_v4  ;;  %v2284_v42 = vsub.f32 %v8157_v31, %v2268_v0 }
 0x643   : > { %v2840_v21 = vmul.f32 1.442695, %v2818_v63 }
 0x644   : > { %v2311_v16 = vmul.f32 1.442695, %v2282_v1  ;;  %v8162_v1 = vld [vmem:[#allocation75_spill] sm:$0xff] }
 0x645   : > { %2868 = vadd.xlane.f32.xlu0 %v7428_v35 }
 0x64b   : > { %v3330_v13 = vpop.xlane.xlu0 %3329 }
 0x64c   : > { %v3358_v53 = vsub.f32 %v7241_v34, %v3330_v13  ;;  %v2842_v13 = vmul.f32 1.442695, %v2819_v55  ;;  %v2822_v55 = vsub.f32 %v8164_v43, %v7351_v46  ;;  %v8168_v46 = vld [vmem:[#allocation78_spill] sm:$0xff] }
 0x64e   : > { %v3377_v49 = vmul.f32 1.442695, %v3358_v53  ;;  %v8158_v53 = vld [vmem:[#allocation74_spill] sm:$0xff] }
 0x64f   : > { %v3332_v7 = vpop.xlane.xlu0 %3331 }
 0x650   : > { %5603 = vpow2.f32 %v3377_v49  ;;  %v3359_v32 = vsub.f32 %v7246_v47, %v3332_v7  ;;  %v3381_v47 = vmul.f32 1.442695, %v3360_v38  ;;  %v2315_v7 = vmul.f32 1.442695, %v2284_v42  ;;  %v8167_v42 = vld [vmem:[#allocation69_spill] sm:$0xff] }
 0x652   : > { %v3379_v15 = vmul.f32 1.442695, %v3359_v32 }
 0x653   : > { %v2254_v41 = vpop.xlane.xlu0 %2253 }
 0x654   : > { %5605 = vpow2.f32 %v3379_v15  ;;  %v2277_v34 = vsub.f32 %v7255_v23, %v2254_v41  ;;  %v1277_v15 = vpop.permute.xlu1 %1276 }
 0x655   : > { %5607 = vpow2.f32 %v2838_v59 }
 0x656   : > { %v2301_v28 = vmul.f32 1.442695, %v2277_v34 }
 0x657   : > { %v2258_v37 = vpop.xlane.xlu0 %2257 }
 0x658   : > { %5609 = vpow2.f32 %v2301_v28  ;;  %v2279_v12 = vsub.f32 %v7260_v24, %v2258_v37 }
 0x659   : > { %5611 = vpow2.f32 %v2840_v21  ;;  %v8160_v21 = vld [vmem:[#allocation45_spill] sm:$0xff] }
 0x65a   : > { %v7442_v62 = vpop.eup %5603  ;;  %5613 = vpow2.f32 %v2303_v54  ;;  %v2305_v23 = vmul.f32 1.442695, %v2279_v12  ;;  %v8161_v12 = vld [vmem:[#allocation67_spill] sm:$0xff] }
 0x65b   : > { %5615 = vpow2.f32 %v3381_v47  ;;  %3409 = vadd.xlane.f32.xlu1 %v7442_v62  ;;  %v2262_v56 = vpop.xlane.xlu0 %2261 }
 0x65c   : > { %5617 = vpow2.f32 %v2305_v23  ;;  %v2281_v11 = vsub.f32 %v8156_v58, %v2262_v56  ;;  %v8163_v23 = vld [vmem:[#allocation62_spill] sm:$0xff]  ;;  %v8166_v58 = vld [vmem:[#allocation63_spill] sm:$0xff] }
 0x65d   : > { %5619 = vpow2.f32 %v2307_v48  ;;  %v2820_v48 = vsub.f32 %v8161_v12, %v7342_v3  ;;  %v8165_v3 = vld [vmem:[#allocation76_spill] sm:$0xff] }
 0x65e   : > { %v7449_v24 = vpop.eup %5605  ;;  %v2309_v22 = vmul.f32 1.442695, %v2281_v11  ;;  %v2823_v11 = vsub.f32 %v8166_v58, %v8165_v3 }
 0x65f   : > { %2327 = vadd.xlane.f32.xlu1 %v7353_v45  ;;  %3411 = vadd.xlane.f32.xlu0 %v7449_v24  ;;  %v2266_v29 = vpop.xlane.xlu0 %2265  ;;  %v5608_v61 = vpop.eup %5607  ;;  %v2844_v0 = vmul.f32 1.442695, %v2820_v48 }
 0x660   : > { %5621 = vpow2.f32 %v2309_v22  ;;  %v2283_v49 = vsub.f32 %v8158_v53, %v2266_v29  ;;  %v2824_v22 = vsub.f32 %v8167_v42, %v7366_v9  ;;  %v8169_v29 = vld [vmem:[#allocation77_spill] sm:$0xff]  ;;  %v8170_v53 = vld [vmem:[#allocation64_spill] sm:$0xff] }
 0x661   : > { %5623 = vpow2.f32 %v2311_v16  ;;  %v2848_v16 = vmul.f32 1.442695, %v2822_v55 }
 0x662   : > { %v7455_v5 = vpop.eup %5609  ;;  %v2313_v32 = vmul.f32 1.442695, %v2283_v49  ;;  %5625 = vpow2.f32 %v2842_v13  ;;  %v2825_v49 = vsub.f32 %v8170_v53, %v8169_v29 }
 0x663   : > { %v5612_v63 = vpop.eup %5611  ;;  %2870 = vadd.xlane.f32.xlu1 %v5608_v61  ;;  %2329 = vadd.xlane.f32.xlu0 %v7361_v2  ;;  %v8159_v2 = vld [vmem:[#allocation44_spill] sm:$0xff] }
 0x664   : > { %v7458_v19 = vpop.eup %5613  ;;  %5627 = vpow2.f32 %v2313_v32  ;;  %4929 = vmatprep.mubr.f32.mxu1 %v7455_v5  ;;  %v1421_v34 = vadd.f32 %v8159_v2, %v1277_v15  ;;  %v2854_v9 = vmul.f32 1.442695, %v2825_v49  ;;  %v8172_v32 = vld [vmem:[#allocation79_spill] sm:$0xff]  ;;  %v8173_v15 = vld [vmem:[#allocation65_spill] sm:$0xff] }
 0x665   : > { %v7461_v45 = vpop.eup %5615  ;;  %4930 = vmatmul.mubr.f32.gmra.mrb[64].mxu1 %v7458_v19  ;;  %5629 = vpow2.f32 %v2315_v7 }
 0x666   : > { %v7464_v59 = vpop.eup %5617  ;;  %5631 = vpow2.f32 %v2844_v0 }
 0x667   : > { %3413 = vadd.xlane.f32.xlu1 %v7461_v45  ;;  %2872 = vadd.xlane.f32.xlu0 %v5612_v63  ;;  %v1272_v38 = vpop.permute.xlu0 %1271  ;;  %v7467_v41 = vpop.eup %5619 }
 0x668   : > { %4932 = vmatprep.mubr.f32.mxu1 %v7464_v59  ;;  %v1416_v4 = vadd.f32 %v8160_v21, %v1272_v38  ;;  %v2827_v38 = vsub.f32 %v8173_v15, %v8172_v32  ;;  %v8174_v32 = vld [vmem:[#allocation28_spill] sm:$0xff] }
 0x669   : > { %4933 = vmatmul.mubr.f32.gmra.mrb[66].mxu1 %v7467_v41 }
 0x66a   : > { %v7473_v54 = vpop.eup %5621  ;;  %v5281_v27 = vpack.c.bf16 %v1421_v34, %v1416_v4  ;;  %v2858_v34 = vmul.f32 1.442695, %v2827_v38 }
 0x66b   : > { %2331 = vadd.xlane.f32.xlu1 %v7372_v52  ;;  %4935 = vmatprep.mubr.f32.mxu1 %v7473_v54  ;;  %v7477_v28 = vpop.eup %5623  ;;  %v2821_v52 = vsub.f32 %v8163_v23, %v8162_v1 }
 0x66c   : > { %v5626_v47 = vpop.eup %5625 }
 0x66d   : > { %4936 = vmatmul.mubr.f32.gmra.mrb[68].mxu1 %v7477_v28  ;;  %v2846_v56 = vmul.f32 1.442695, %v2821_v52 }
 0x66e   : > { %v7480_v37 = vpop.eup %5627 }
 0x66f   : > { %2874 = vadd.xlane.f32.xlu1 %v5626_v47  ;;  %4938 = vmatprep.mubr.f32.mxu1 %v7480_v37  ;;  %v7485_v8 = vpop.eup %5629  ;;  %5633 = vpow2.f32 %v2846_v56 }
 0x670   : > { %5635 = vpow2.f32 %v2848_v16  ;;  %v5632_v2 = vpop.eup %5631 }
 0x671   : > { %4939 = vmatmul.mubr.f32.gmra.mrb[70].mxu1 %v7485_v8 }
 0x672   : > { %4981 = vmatprep.mubr.f32.mxu1 %v7406_v40 }
 0x675   : > { %4982 = vmatmul.mubr.f32.vlgmr.msra.gmra.mrb[72].mxu1 %v7344_v51  ;;  %v2850_v51 = vmul.f32 1.442695, %v2823_v11 }
 0x676   : > { %5280 = vmatpush3.bf16.xpose.msra.mxu1 %v7411_v18  ;;  %4984 = vmatprep.mubr.f32.mxu1 %v7418_v14  ;;  %v3336_v31 = vpop.xlane.xlu1 %3335  ;;  %v2852_v18 = vmul.f32 1.442695, %v2824_v22  ;;  %v8171_v14 = vld [vmem:[#allocation70_spill] sm:$0xff] }
 0x677   : > { %5282 = vmatprep.subr.bf16.mxu1 %v5281_v27  ;;  %v3361_v40 = vsub.f32 %v8168_v46, %v3336_v31  ;;  %v2826_v7 = vsub.f32 %v8171_v14, %v7376_v6 }
 0x679   : > { %v3383_v13 = vmul.f32 1.442695, %v3361_v40  ;;  %4985 = vmatmul.mubr.f32.gmra.mrb[74].mxu1 %v7382_v30  ;;  %v2856_v30 = vmul.f32 1.442695, %v2826_v7 }
 0x67a   : > { %4987 = vmatprep.mubr.f32.mxu1 %v7428_v35  ;;  %v7509_v35 = vpop.eup %5633 }
 0x67b   : > { %5637 = vpow2.f32 %v3383_v13  ;;  %v7511_v6 = vpop.eup %5635 }
 0x67c   : > { %5639 = vpow2.f32 %v2850_v51 }
 0x67d   : > { %4988 = vmatmul.mubr.f32.gmra.mrb[76].mxu1 %v5608_v61  ;;  %5641 = vpow2.f32 %v2852_v18 }
 0x67e   : > { %5284 = vmatpush3.bf16.xpose.msra.mxu1 %v5281_v27  ;;  %4990 = vmatprep.mubr.f32.mxu1 %v5612_v63  ;;  %5643 = vpow2.f32 %v2854_v9 }
 0x67f   : > { %5645 = vpow2.f32 %v2856_v30  ;;  %v8175_v30 = vld [vmem:[#allocation29_spill] sm:$0xff] }
 0x680   : > { %5647 = vpow2.f32 %v2858_v34  ;;  %v8177_v34 = vld [vmem:[#allocation31_spill] sm:$0xff] }
 0x681   : > { %4991 = vmatmul.mubr.f32.gmra.mrb[78].mxu1 %v5626_v47  ;;  %v3342_v47 = vpop.xlane.xlu1 %3341 }
 0x682   : > { %4993 = vmatprep.mubr.f32.mxu1 %v5632_v2  ;;  %v3364_v52 = vsub.f32 %v7297_v44, %v3342_v47 }
 0x685   : > { %v5638_v61 = vpop.eup %5637  ;;  %4994 = vmatmul.mubr.f32.gmra.mrb[80].mxu1 %v7509_v35  ;;  %v3346_v48 = vpop.xlane.xlu1 %3345 }
 0x686   : > { %4996 = vmatprep.mubr.f32.mxu1 %v7511_v6  ;;  %3415 = vadd.xlane.f32.xlu0 %v5638_v61  ;;  %v7515_v63 = vpop.eup %5639  ;;  %v3366_v3 = vsub.f32 %v7308_v20, %v3346_v48 }
 0x687   : > { %v7517_v21 = vpop.eup %5641 }
 0x688   : > { %v7521_v4 = vpop.eup %5643 }
 0x689   : > { %4997 = vmatmul.mubr.f32.gmra.mrb[82].mxu1 %v7515_v63  ;;  %v7523_v27 = vpop.eup %5645  ;;  %v3350_v56 = vpop.xlane.xlu1 %3349 }
 0x68a   : > { %4999 = vmatprep.mubr.f32.mxu1 %v7517_v21  ;;  %2876 = vadd.xlane.f32.xlu0 %v5632_v2  ;;  %v7527_v12 = vpop.eup %5647  ;;  %v8176_v2 = vld [vmem:[#allocation30_spill] sm:$0xff] }
 0x68d   : > { %5000 = vmatmul.mubr.f32.gmra.mrb[84].mxu1 %v7521_v4 }
 0x68e   : > { %5002 = vmatprep.mubr.f32.mxu1 %v7523_v27 }
 0x691   : > { %5003 = vmatmul.mubr.f32.gmra.mrb[86].mxu1 %v7527_v12 }
 0x692   : > { %5045 = vmatprep.mubr.f32.mxu1 %v7413_v26  ;;  %v3389_v26 = vmul.f32 1.442695, %v3364_v52  ;;  %v8181_v52 = vld [vmem:[#allocation35_spill] sm:$0xff] }
 0x694   : > { %v3338_v1 = vpop.xlane.xlu0 %3337 }
 0x695   : > { %5046 = vmatmul.mubr.f32.vlgmr.msra.gmra.mrb[88].mxu1 %v7358_v25  ;;  %v3362_v23 = vsub.f32 %v7356_v33, %v3338_v1  ;;  %v3393_v33 = vmul.f32 1.442695, %v3366_v3 }
 0x696   : > { %5048 = vmatprep.mubr.f32.mxu1 %v7424_v39  ;;  %v3368_v39 = vsub.f32 %v7317_v50, %v3350_v56 }
 0x697   : > { %v3385_v43 = vmul.f32 1.442695, %v3362_v23 }
 0x698   : > { %v3340_v55 = vpop.xlane.xlu0 %3339  ;;  %v3397_v20 = vmul.f32 1.442695, %v3368_v39 }
 0x699   : > { %5649 = vpow2.f32 %v3385_v43  ;;  %5049 = vmatmul.mubr.f32.gmra.mrb[90].mxu1 %v7442_v62  ;;  %v3363_v0 = vsub.f32 %v7369_v10, %v3340_v55  ;;  %v3354_v10 = vpop.xlane.xlu1 %3353  ;;  %v8182_v43 = vld [vmem:[#allocation36_spill] sm:$0xff] }
 0x69a   : > { %5051 = vmatprep.mubr.f32.mxu1 %v7449_v24  ;;  %v3370_v31 = vsub.f32 %v7330_v57, %v3354_v10  ;;  %v8185_v10 = vld [vmem:[#allocation39_spill] sm:$0xff] }
 0x69b   : > { %v3387_v25 = vmul.f32 1.442695, %v3363_v0 }
 0x69c   : > { %v3344_v58 = vpop.xlane.xlu0 %3343  ;;  %v3401_v50 = vmul.f32 1.442695, %v3370_v31 }
 0x69d   : > { %5651 = vpow2.f32 %v3387_v25  ;;  %5052 = vmatmul.mubr.f32.gmra.mrb[92].mxu1 %v7461_v45  ;;  %v3365_v44 = vsub.f32 %v7379_v36, %v3344_v58  ;;  %v2320_v53 = vpop.xlane.xlu1 %2319  ;;  %v8183_v58 = vld [vmem:[#allocation37_spill] sm:$0xff] }
 0x69e   : > { %5054 = vmatprep.mubr.f32.mxu1 %v5638_v61  ;;  %5653 = vpow2.f32 %v3389_v26 }
 0x69f   : > { %v3391_v62 = vmul.f32 1.442695, %v3365_v44  ;;  %v8184_v44 = vld [vmem:[#allocation38_spill] sm:$0xff] }
 0x6a0   : > { %v3348_v11 = vpop.xlane.xlu0 %3347 }
 0x6a1   : > { %5655 = vpow2.f32 %v3391_v62  ;;  %v3367_v24 = vsub.f32 %v7389_v17, %v3348_v11  ;;  %v7550_v18 = vpop.xlane.xlu1 %2862  ;;  %v8186_v11 = vld [vmem:[#allocation40_spill] sm:$0xff] }
 0x6a2   : > { %5657 = vpow2.f32 %v3393_v33 }
 0x6a3   : > { %v5650_v16 = vpop.eup %5649  ;;  %v3395_v42 = vmul.f32 1.442695, %v3367_v24 }
 0x6a4   : > { %3417 = vadd.xlane.f32.xlu1 %v5650_v16  ;;  %5055 = vmatmul.mubr.f32.gmra.mrb[94].mxu1 %v5650_v16  ;;  %v3352_v36 = vpop.xlane.xlu0 %3351 }
 0x6a5   : > { %5659 = vpow2.f32 %v3395_v42  ;;  %v3369_v45 = vsub.f32 %v7396_v60, %v3352_v36  ;;  %v7556_v7 = vpop.xlane.xlu1 %3405 }
 0x6a6   : > { %5661 = vpow2.f32 %v3397_v20  ;;  %v8187_v20 = vld [vmem:[#allocation41_spill] sm:$0xff] }
 0x6a7   : > { %v5652_v22 = vpop.eup %5651  ;;  %v3399_v46 = vmul.f32 1.442695, %v3369_v45 }
 0x6a8   : > { %2878 = vadd.xlane.f32.xlu1 %v7509_v35  ;;  %3419 = vadd.xlane.f32.xlu0 %v5652_v22  ;;  %v5654_v17 = vpop.eup %5653  ;;  %v2318_v49 = vpop.xlane.xlu0 %2317  ;;  %v8178_v35 = vld [vmem:[#allocation32_spill] sm:$0xff] }
 0x6a9   : > { %5663 = vpow2.f32 %v3399_v46  ;;  %5057 = vmatprep.mubr.f32.mxu1 %v5652_v22  ;;  %v2324_v15 = vpop.xlane.xlu1 %2323  ;;  %v8188_v46 = vld [vmem:[#allocation42_spill] sm:$0xff] }
 0x6aa   : > { %5058 = vmatmul.mubr.f32.gmra.mrb[96].mxu1 %v5654_v17  ;;  %5665 = vpow2.f32 %v3401_v50 }
 0x6ab   : > { %v5656_v40 = vpop.eup %5655  ;;  %5667 = vrcp.f32 %v2320_v53 }
 0x6ac   : > { %3421 = vadd.xlane.f32.xlu1 %v5654_v17  ;;  %2880 = vadd.xlane.f32.xlu0 %v7511_v6  ;;  %v5658_v57 = vpop.eup %5657  ;;  %v7552_v14 = vpop.xlane.xlu0 %2860  ;;  %5669 = vrcp.f32 %v2318_v49 }
 0x6ad   : > { %5060 = vmatprep.mubr.f32.mxu1 %v5656_v40  ;;  %5671 = vrcp.f32 %v2324_v15  ;;  %v2867_v31 = vpop.xlane.xlu1 %2866 }
 0x6ae   : > { %5061 = vmatmul.mubr.f32.gmra.mrb[98].mxu1 %v5658_v57 }
 0x6af   : > { %v5660_v60 = vpop.eup %5659 }
 0x6b0   : > { %2882 = vadd.xlane.f32.xlu1 %v7515_v63  ;;  %3423 = vadd.xlane.f32.xlu0 %v5656_v40  ;;  %v5662_v13 = vpop.eup %5661  ;;  %v7558_v9 = vpop.xlane.xlu0 %3403  ;;  %v8179_v63 = vld [vmem:[#allocation33_spill] sm:$0xff] }
 0x6b1   : > { %5063 = vmatprep.mubr.f32.mxu1 %v5660_v60 }
 0x6b2   : > { %5064 = vmatmul.mubr.f32.gmra.mrb[100].mxu1 %v5662_v13 }
 0x6b3   : > { %v5664_v51 = vpop.eup %5663 }
 0x6b4   : > { %3425 = vadd.xlane.f32.xlu1 %v5658_v57  ;;  %2884 = vadd.xlane.f32.xlu0 %v7517_v21  ;;  %v5666_v29 = vpop.eup %5665  ;;  %v2322_v38 = vpop.xlane.xlu0 %2321  ;;  %v8180_v21 = vld [vmem:[#allocation34_spill] sm:$0xff] }
 0x6b5   : > { %5066 = vmatprep.mubr.f32.mxu1 %v5664_v51  ;;  %5673 = vrcp.f32 %v2322_v38  ;;  %v5668_v6 = vpop.eup %5667 }
 0x6b6   : > { %5067 = vmatmul.mubr.f32.gmra.mrb[102].mxu1 %v5666_v29 }
 0x6b8   : > { %2886 = vadd.xlane.f32.xlu1 %v7521_v4  ;;  %3427 = vadd.xlane.f32.xlu0 %v5660_v60  ;;  %v5670_v4 = vpop.eup %5669  ;;  %v7571_v39 = vpop.xlane.xlu0 %2864 }
 0x6b9   : > { %v5672_v48 = vpop.eup %5671 }
 0x6bc   : > { %3429 = vadd.xlane.f32.xlu1 %v5662_v13  ;;  %2888 = vadd.xlane.f32.xlu0 %v7523_v27 }
 0x6bf   : > { %v5674_v55 = vpop.eup %5673 }
 0x6c0   : > { %2890 = vadd.xlane.f32.xlu1 %v7527_v12  ;;  %3431 = vadd.xlane.f32.xlu0 %v5664_v51 }
 0x6c4   : > { %3433 = vadd.xlane.f32.xlu1 %v5666_v29  ;;  %1774 = vadd.xlane.f32.xlu0 %v8174_v32  ;;  %v8189_v29 = vld [vmem:[#allocation43_spill] sm:$0xff] }
 0x6c8   : > { %1776 = vadd.xlane.f32.xlu1 %v8175_v30  ;;  %1778 = vadd.xlane.f32.xlu0 %v8176_v2 }
 0x6ca   : > { %v7575_v16 = vpop.xlane.xlu0 %3407 }
 0x6cc   : > { %1780 = vadd.xlane.f32.xlu1 %v8177_v34  ;;  %1782 = vadd.xlane.f32.xlu0 %v8178_v35 }
 0x6ce   : > { %v2326_v42 = vpop.xlane.xlu0 %2325 }
 0x6cf   : > { %5675 = vrcp.f32 %v2326_v42 }
 0x6d0   : > { %v4919_v61 = vpop.f32.mrb[56].mxu1  ;;  %1784 = vadd.xlane.f32.xlu1 %v8179_v63  ;;  %1786 = vadd.xlane.f32.xlu0 %v8180_v21 }
 0x6d1   : > { %v2511_v27 = vmul.f32 %v5668_v6, %v4919_v61  ;;  %v2415_v47 = vpop.f32.mrb[57].mxu1 }
 0x6d2   : > { %v2510_v12 = vmul.f32 %v5670_v4, %v2415_v47  ;;  %v2869_v45 = vpop.xlane.xlu0 %2868 }
 0x6d4   : > { %v5419_v1 = vpack.i.bf16 %v2511_v27, %v2510_v12  ;;  %v4922_v23 = vpop.f32.mrb[58].mxu1  ;;  %1788 = vadd.xlane.f32.xlu1 %v8181_v52  ;;  %1790 = vadd.xlane.f32.xlu0 %v8182_v43 }
 0x6d5   : > { %v2513_v0 = vmul.f32 %v5672_v48, %v4922_v23  ;;  %v2425_v56 = vpop.f32.mrb[59].mxu1 }
 0x6d6   : > { %v2512_v26 = vmul.f32 %v5674_v55, %v2425_v56 }
 0x6d8   : > { %v5424_v3 = vpack.i.bf16 %v2513_v0, %v2512_v26  ;;  %v4925_v25 = vpop.f32.mrb[60].mxu1  ;;  %1792 = vadd.xlane.f32.xlu1 %v8183_v58  ;;  %1794 = vadd.xlane.f32.xlu0 %v8184_v44 }
 0x6d9   : > { %v2435_v33 = vpop.f32.mrb[61].mxu1 }
 0x6dc   : > { %v4928_v62 = vpop.f32.mrb[62].mxu1  ;;  %1796 = vadd.xlane.f32.xlu1 %v8185_v10  ;;  %1798 = vadd.xlane.f32.xlu0 %v8186_v11 }
 0x6dd   : > { %v2445_v24 = vpop.f32.mrb[63].mxu1 }
 0x6e0   : > { %1800 = vadd.xlane.f32.xlu1 %v8187_v20  ;;  %2333 = vadd.xlane.f32.xlu0 %v7455_v5  ;;  %v3854_v20 = vld [vmem:[#allocation14] sm:$0xff] }
 0x6e4   : > { %2335 = vadd.xlane.f32.xlu1 %v7458_v19  ;;  %2337 = vadd.xlane.f32.xlu0 %v7464_v59 }
 0x6e8   : > { %v7581_v36 = vpop.xlane.xlu1 %3409  ;;  %2339 = vadd.xlane.f32.xlu1 %v7467_v41  ;;  %2341 = vadd.xlane.f32.xlu0 %v7473_v54  ;;  %v5676_v41 = vpop.eup %5675 }
 0x6e9   : > { %v2514_v17 = vmul.f32 %v5676_v41, %v2435_v33 }
 0x6ec   : > { %v2328_v22 = vpop.xlane.xlu1 %2327  ;;  %2343 = vadd.xlane.f32.xlu1 %v7477_v28  ;;  %2345 = vadd.xlane.f32.xlu0 %v7480_v37  ;;  %v7587_v5 = vpop.xlane.xlu0 %3411 }
 0x6ed   : > { %5677 = vrcp.f32 %v2328_v22 }
 0x6f0   : > { %v2871_v50 = vpop.xlane.xlu1 %2870  ;;  %2347 = vadd.xlane.f32.xlu1 %v7485_v8  ;;  %v2330_v19 = vpop.xlane.xlu0 %2329 }
 0x6f1   : > { %5679 = vrcp.f32 %v2330_v19 }
 0x6f4   : > { %v7590_v59 = vpop.xlane.xlu1 %3413  ;;  %1802 = vadd.xlane.f32.xlu1 %v8188_v46  ;;  %v2873_v53 = vpop.xlane.xlu0 %2872 }
 0x6f7   : > { %v5678_v54 = vpop.eup %5677 }
 0x6f8   : > { %v2332_v40 = vpop.xlane.xlu1 %2331  ;;  %v2515_v57 = vmul.f32 %v5678_v54, %v4925_v25 }
 0x6f9   : > { %5681 = vrcp.f32 %v2332_v40 }
 0x6fa   : > { %v5429_v28 = vpack.i.bf16 %v2515_v57, %v2514_v17  ;;  %5683 = vrcp.f32 %v7550_v18 }
 0x6fb   : > { %v5680_v37 = vpop.eup %5679  ;;  %5685 = vrcp.f32 %v7552_v14 }
 0x6fc   : > { %v2516_v13 = vmul.f32 %v5680_v37, %v2445_v24  ;;  %v2875_v32 = vpop.xlane.xlu1 %2874  ;;  %5687 = vrcp.f32 %v2867_v31  ;;  %v3855_v31 = vld [vmem:[#allocation14 + $0x8] sm:$0xff] }
 0x6fd   : > { %5689 = vrcp.f32 %v7571_v39  ;;  %v5285_v22 = vpack.c.bf16 %v3855_v31, %v3854_v20 }
 0x6fe   : > { %5691 = vrcp.f32 %v2871_v50 }
 0x6ff   : > { %5693 = vrcp.f32 %v2869_v45  ;;  %5286 = vmatprep.subr.bf16.mxu0 %v5285_v22 }
 0x700   : > { %5695 = vrcp.f32 %v2875_v32  ;;  %5288 = vmatpush3.bf16.msra.mxu0 %v5285_v22 }
 0x701   : > { %5697 = vrcp.f32 %v2873_v53 }
 0x702   : > { %5420 = vrot.lane.b32.xlu0 %v5419_v1, %s6058_s2 }
 0x703   : > { %v5682_v60 = vpop.eup %5681 }
 0x704   : > { %v2517_v8 = vmul.f32 %v5682_v60, %v4928_v62  ;;  %v5684_v14 = vpop.eup %5683 }
 0x705   : > { %5425 = vrot.lane.b32.xlu1 %v5424_v3, %s6058_s2  ;;  %v5686_v0 = vpop.eup %5685 }
 0x706   : > { %v5434_v51 = vpack.i.bf16 %v2517_v8, %v2516_v13  ;;  %v5688_v44 = vpop.eup %5687 }
 0x707   : > { %v5690_v62 = vpop.eup %5689 }
 0x708   : > { %v5692_v50 = vpop.eup %5691 }
 0x709   : > { %5430 = vrot.lane.b32.xlu1 %v5429_v28, %s6058_s2  ;;  %v5694_v41 = vpop.eup %5693 }
 0x70a   : > { %v5696_v37 = vpop.eup %5695 }
 0x70b   : > { %v5698_v8 = vpop.eup %5697 }
 0x70d   : > { %5435 = vrot.lane.b32.xlu1 %v5434_v51, %s6058_s2 }
 0x713   : > { %v7598_v49 = vpop.xlane.xlu0 %3415 }
 0x717   : > { %v2877_v15 = vpop.xlane.xlu0 %2876 }
 0x721   : > { %1804 = vadd.xlane.f32.xlu0 %v8189_v29 }
 0x731   : > { %v7600_v38 = vpop.xlane.xlu1 %3417 }
 0x735   : > { %v2879_v30 = vpop.xlane.xlu1 %2878  ;;  %v7602_v2 = vpop.xlane.xlu0 %3419 }
 0x736   : > { %5699 = vrcp.f32 %v2879_v30 }
 0x737   : > { %5701 = vrcp.f32 %v2877_v15 }
 0x738   : > { %v7604_v34 = vpop.f32.mrb[64].mxu1 }
 0x739   : > { %v7606_v35 = vpop.f32.mrb[65].mxu1  ;;  %v7608_v6 = vpop.xlane.xlu1 %3421 }
 0x73a   : > { %v2881_v61 = vpop.xlane.xlu0 %2880 }
 0x73b   : > { %5703 = vrcp.f32 %v2881_v61 }
 0x73c   : > { %v7610_v63 = vpop.f32.mrb[66].mxu1 }
 0x73d   : > { %v7612_v21 = vpop.f32.mrb[67].mxu1  ;;  %v2883_v4 = vpop.xlane.xlu1 %2882 }
 0x73e   : > { %v7615_v27 = vpop.xlane.xlu0 %3423  ;;  %5705 = vrcp.f32 %v2883_v4 }
 0x740   : > { %v7618_v47 = vpop.f32.mrb[68].mxu1  ;;  %v5700_v30 = vpop.eup %5699 }
 0x741   : > { %v7620_v12 = vpop.f32.mrb[69].mxu1  ;;  %v7622_v48 = vpop.xlane.xlu1 %3425 }
 0x742   : > { %v2885_v1 = vpop.xlane.xlu0 %2884 }
 0x744   : > { %v7625_v23 = vpop.f32.mrb[70].mxu1 }
 0x745   : > { %v7627_v52 = vpop.f32.mrb[71].mxu1  ;;  %v2887_v43 = vpop.xlane.xlu1 %2886 }
 0x746   : > { %v7629_v18 = vpop.xlane.xlu0 %3427 }
 0x748   : > { %v4983_v55 = vpop.f32.mrb[72].mxu1 }
 0x749   : > { %v7631_v56 = vmul.f32 %v5684_v14, %v4983_v55  ;;  %v2958_v26 = vpop.f32.mrb[73].mxu1  ;;  %v7633_v3 = vpop.xlane.xlu1 %3429 }
 0x74a   : > { %v7635_v25 = vmul.f32 %v5686_v0, %v2958_v26  ;;  %v2889_v58 = vpop.xlane.xlu0 %2888  ;;  %v5702_v14 = vpop.eup %5701 }
 0x74c   : > { %v4986_v39 = vpop.f32.mrb[74].mxu1 }
 0x74d   : > { %v7639_v10 = vmul.f32 %v5688_v44, %v4986_v39  ;;  %v2968_v11 = vpop.f32.mrb[75].mxu1  ;;  %v2891_v24 = vpop.xlane.xlu1 %2890 }
 0x74e   : > { %v7641_v42 = vmul.f32 %v5690_v62, %v2968_v11  ;;  %v7643_v45 = vpop.xlane.xlu0 %3431  ;;  %v5704_v44 = vpop.eup %5703 }
 0x74f   : > { %v5706_v39 = vpop.eup %5705 }
 0x750   : > { %v4989_v46 = vpop.f32.mrb[76].mxu1 }
 0x751   : > { %v7647_v54 = vmul.f32 %v5692_v50, %v4989_v46  ;;  %v2978_v17 = vpop.f32.mrb[77].mxu1  ;;  %v7649_v40 = vpop.xlane.xlu1 %3433 }
 0x752   : > { %v7651_v57 = vmul.f32 %v5694_v41, %v2978_v17  ;;  %v1775_v28 = vpop.xlane.xlu0 %1774  ;;  %v8190_v41 = vld [vmem:[#allocation47_spill] sm:$0xff] }
 0x753   : > { %5707 = vrcp.f32 %v1775_v28 }
 0x754   : > { %5709 = vrcp.f32 %v2885_v1  ;;  %v4992_v13 = vpop.f32.mrb[78].mxu1 }
 0x755   : > { %5711 = vrcp.f32 %v2887_v43  ;;  %v3060_v51 = vmul.f32 %v5696_v37, %v4992_v13  ;;  %v2988_v29 = vpop.f32.mrb[79].mxu1  ;;  %v1777_v53 = vpop.xlane.xlu1 %1776 }
 0x756   : > { %v3059_v32 = vmul.f32 %v5698_v8, %v2988_v29  ;;  %5713 = vrcp.f32 %v1777_v53  ;;  %v1779_v15 = vpop.xlane.xlu0 %1778  ;;  %v8191_v53 = vld [vmem:[#allocation46_spill] sm:$0xff] }
 0x757   : > { %5715 = vrcp.f32 %v1779_v15 }
 0x758   : > { %5717 = vrcp.f32 %v2889_v58  ;;  %v5464_v61 = vpack.i.bf16 %v3060_v51, %v3059_v32  ;;  %v4995_v4 = vpop.f32.mrb[80].mxu1 }
 0x759   : > { %5719 = vrcp.f32 %v2891_v24  ;;  %v7655_v1 = vmul.f32 %v5700_v30, %v4995_v4  ;;  %v2998_v55 = vpop.f32.mrb[81].mxu1  ;;  %v1781_v0 = vpop.xlane.xlu1 %1780 }
 0x75a   : > { %v7657_v26 = vmul.f32 %v5702_v14, %v2998_v55  ;;  %5721 = vrcp.f32 %v1781_v0  ;;  %5465 = vrot.lane.b32.xlu0 %v5464_v61, %s6059_s5  ;;  %v1783_v43 = vpop.xlane.xlu0 %1782 }
 0x75b   : > { %5723 = vrcp.f32 %v1783_v43 }
 0x75c   : > { %5725 = vrcp.f32 %v7556_v7  ;;  %v4998_v62 = vpop.f32.mrb[82].mxu1 }
 0x75d   : > { %v5708_v11 = vpop.eup %5707  ;;  %5727 = vrcp.f32 %v7558_v9  ;;  %v7664_v24 = vmul.f32 %v5706_v39, %v4998_v62  ;;  %v3008_v20 = vpop.f32.mrb[83].mxu1 }
 0x75e   : > { %v1785_v31 = vpop.xlane.xlu1 %1784  ;;  %v5710_v22 = vpop.eup %5709  ;;  %v7666_v50 = vmul.f32 %v5704_v44, %v3008_v20  ;;  %v7669_v17 = vmul.f32 %v5708_v11, %v8190_v41  ;;  %v8193_v11 = vld [vmem:[#allocation48_spill] sm:$0xff] }
 0x75f   : > { %5729 = vrcp.f32 %v1785_v31  ;;  %v1787_v46 = vpop.xlane.xlu0 %1786  ;;  %v5712_v7 = vpop.eup %5711 }
 0x760   : > { %5731 = vrcp.f32 %v1787_v46  ;;  %v5714_v28 = vpop.eup %5713  ;;  %v5001_v37 = vpop.f32.mrb[84].mxu1 }
 0x761   : > { %5733 = vrcp.f32 %v7575_v16  ;;  %v5716_v13 = vpop.eup %5715  ;;  %v7675_v8 = vmul.f32 %v5712_v7, %v5001_v37  ;;  %v3018_v51 = vpop.f32.mrb[85].mxu1  ;;  %v7678_v32 = vmul.f32 %v5714_v28, %v8191_v53  ;;  %v8192_v16 = vld [vmem:[#allocation49_spill] sm:$0xff] }
 0x762   : > { %5735 = vrcp.f32 %v7581_v36  ;;  %v1789_v29 = vpop.xlane.xlu1 %1788  ;;  %v5718_v15 = vpop.eup %5717  ;;  %v7680_v30 = vmul.f32 %v5710_v22, %v3018_v51  ;;  %v7683_v4 = vmul.f32 %v5716_v13, %v8192_v16 }
 0x763   : > { %5737 = vrcp.f32 %v1789_v29  ;;  %v1791_v61 = vpop.xlane.xlu0 %1790  ;;  %v5720_v14 = vpop.eup %5719 }
 0x764   : > { %5739 = vrcp.f32 %v1791_v61  ;;  %v5722_v55 = vpop.eup %5721  ;;  %v5004_v0 = vpop.f32.mrb[86].mxu1  ;;  %v8195_v61 = vld [vmem:[#allocation50_spill] sm:$0xff] }
 0x765   : > { %5741 = vrcp.f32 %v7587_v5  ;;  %v5724_v43 = vpop.eup %5723  ;;  %v7689_v44 = vmul.f32 %v5720_v14, %v5004_v0  ;;  %v3028_v39 = vpop.f32.mrb[87].mxu1  ;;  %v7692_v20 = vmul.f32 %v5722_v55, %v8193_v11  ;;  %v8194_v5 = vld [vmem:[#allocation51_spill] sm:$0xff]  ;;  %v8196_v0 = vld [vmem:[#allocation53_spill] sm:$0xff] }
 0x766   : > { %5743 = vrcp.f32 %v7590_v59  ;;  %v1793_v62 = vpop.xlane.xlu1 %1792  ;;  %v5726_v31 = vpop.eup %5725  ;;  %v7694_v22 = vmul.f32 %v5718_v15, %v3028_v39  ;;  %v7697_v41 = vmul.f32 %v5724_v43, %v8194_v5 }
 0x767   : > { %5745 = vrcp.f32 %v1793_v62  ;;  %v1795_v46 = vpop.xlane.xlu0 %1794  ;;  %v5728_v7 = vpop.eup %5727 }
 0x768   : > { %5747 = vrcp.f32 %v1795_v46  ;;  %v5047_v37 = vpop.f32.mrb[88].mxu1 }
 0x769   : > { %v5730_v28 = vpop.eup %5729  ;;  %v7701_v51 = vmul.f32 %v5726_v31, %v5047_v37  ;;  %v3501_v29 = vpop.f32.mrb[89].mxu1  ;;  %v8197_v37 = vld [vmem:[#allocation52_spill] sm:$0xff] }
 0x76a   : > { %v5732_v13 = vpop.eup %5731  ;;  %v1797_v53 = vpop.xlane.xlu1 %1796  ;;  %v7704_v15 = vmul.f32 %v5730_v28, %v8195_v61  ;;  %v7706_v14 = vmul.f32 %v5728_v7, %v3501_v29 }
 0x76b   : > { %v5734_v16 = vpop.eup %5733  ;;  %5749 = vrcp.f32 %v1797_v53  ;;  %v1799_v55 = vpop.xlane.xlu0 %1798  ;;  %v7709_v43 = vmul.f32 %v5732_v13, %v8196_v0 }
 0x76c   : > { %v5736_v39 = vpop.eup %5735  ;;  %5751 = vrcp.f32 %v1799_v55  ;;  %v5050_v31 = vpop.f32.mrb[90].mxu1 }
 0x76d   : > { %v5738_v62 = vpop.eup %5737  ;;  %5753 = vrcp.f32 %v7598_v49  ;;  %v7715_v5 = vmul.f32 %v5736_v39, %v5050_v31  ;;  %v3511_v7 = vpop.f32.mrb[91].mxu1  ;;  %v8198_v49 = vld [vmem:[#allocation55_spill] sm:$0xff] }
 0x76e   : > { %v5740_v46 = vpop.eup %5739  ;;  %5755 = vrcp.f32 %v7600_v38  ;;  %v1801_v28 = vpop.xlane.xlu1 %1800  ;;  %v7718_v29 = vmul.f32 %v5738_v62, %v8197_v37  ;;  %v7720_v53 = vmul.f32 %v5734_v16, %v3511_v7  ;;  %v8199_v7 = vld [vmem:[#allocation54_spill] sm:$0xff] }
 0x76f   : > { %v5742_v13 = vpop.eup %5741  ;;  %5757 = vrcp.f32 %v1801_v28  ;;  %v2334_v61 = vpop.xlane.xlu0 %2333  ;;  %v7723_v55 = vmul.f32 %v5740_v46, %v8198_v49  ;;  %v8200_v49 = vld [vmem:[#allocation57_spill] sm:$0xff] }
 0x770   : > { %v5744_v0 = vpop.eup %5743  ;;  %5759 = vrcp.f32 %v2334_v61  ;;  %v5053_v39 = vpop.f32.mrb[92].mxu1 }
 0x771   : > { %v5746_v11 = vpop.eup %5745  ;;  %5761 = vrcp.f32 %v7602_v2  ;;  %v7728_v62 = vmul.f32 %v5744_v0, %v5053_v39  ;;  %v3521_v37 = vpop.f32.mrb[93].mxu1  ;;  %v3856_v0 = vld [vmem:[#allocation14 + $0x10] sm:$0xff]  ;;  %v3857_v39 = vld [vmem:[#allocation14 + $0x18] sm:$0xff] }
 0x772   : > { %v5748_v31 = vpop.eup %5747  ;;  %v2336_v16 = vpop.xlane.xlu1 %2335  ;;  %v7731_v28 = vmul.f32 %v5746_v11, %v8199_v7  ;;  %v7733_v36 = vmul.f32 %v5742_v13, %v3521_v37  ;;  %v5289_v13 = vpack.c.bf16 %v3857_v39, %v3856_v0  ;;  %v8201_v37 = vld [vmem:[#allocation56_spill] sm:$0xff] }
 0x773   : > { %5763 = vrcp.f32 %v2336_v16  ;;  %v2338_v46 = vpop.xlane.xlu0 %2337  ;;  %v7736_v59 = vmul.f32 %v5748_v31, %v8200_v49  ;;  %v8202_v49 = vld [vmem:[#allocation59_spill] sm:$0xff]  ;;  %v3858_v0 = vld [vmem:[#allocation14 + $0x20] sm:$0xff] }
 0x774   : > { %5765 = vrcp.f32 %v7608_v6  ;;  %5290 = vmatprep.subr.bf16.mxu0 %v5289_v13 }
 0x775   : > { %v5750_v61 = vpop.eup %5749  ;;  %5767 = vrcp.f32 %v2338_v46  ;;  %5292 = vmatpush3.bf16.msra.mxu0 %v5289_v13 }
 0x776   : > { %v5752_v38 = vpop.eup %5751  ;;  %5769 = vrcp.f32 %v7615_v27  ;;  %v2340_v11 = vpop.xlane.xlu1 %2339  ;;  %v7743_v16 = vmul.f32 %v5750_v61, %v8201_v37  ;;  %v3859_v61 = vld [vmem:[#allocation14 + $0x28] sm:$0xff]  ;;  %v8204_v37 = vld [vmem:[#allocation58_spill] sm:$0xff] }
 0x777   : > { %v5754_v7 = vpop.eup %5753  ;;  %5771 = vrcp.f32 %v2340_v11  ;;  %v2342_v31 = vpop.xlane.xlu0 %2341  ;;  %v7746_v6 = vmul.f32 %v5752_v38, %v8202_v49  ;;  %v5293_v38 = vpack.c.bf16 %v3859_v61, %v3858_v0 }
 0x778   : > { %v5756_v58 = vpop.eup %5755  ;;  %5773 = vrcp.f32 %v7622_v48  ;;  %v5056_v46 = vpop.f32.mrb[94].mxu1 }
 0x779   : > { %8203 = vst [vmem:[#allocation71_spill] sm:$0xff] %v7746_v6  ;;  %v5758_v2 = vpop.eup %5757  ;;  %5775 = vrcp.f32 %v2342_v31  ;;  %v7749_v60 = vmul.f32 %v5756_v58, %v5056_v46  ;;  %v3531_v27 = vpop.f32.mrb[95].mxu1  ;;  %5294 = vmatprep.subr.bf16.mxu0 %v5293_v38 }
 0x77a   : > { %5777 = vrcp.f32 %v7633_v3  ;;  %v7752_v39 = vmul.f32 %v5754_v7, %v3531_v27  ;;  %v2344_v11 = vpop.xlane.xlu1 %2343  ;;  %v7755_v49 = vmul.f32 %v5758_v2, %v8204_v37  ;;  %v5760_v48 = vpop.eup %5759  ;;  %5296 = vmatpush3.bf16.msra.mxu0 %v5293_v38  ;;  %v3861_v37 = vld [vmem:[#allocation14 + $0x38] sm:$0xff] }
 0x77b   : > { %5779 = vrcp.f32 %v2344_v11  ;;  %v2346_v9 = vpop.xlane.xlu0 %2345  ;;  %v5762_v19 = vpop.eup %5761  ;;  %v2518_v46 = vmul.f32 %v5760_v48, %v7606_v35  ;;  %v3860_v11 = vld [vmem:[#allocation14 + $0x30] sm:$0xff]  ;;  %v3862_v35 = vld [vmem:[#allocation14 + $0x40] sm:$0xff]  ;;  %v3863_v48 = vld [vmem:[#allocation14 + $0x48] sm:$0xff] }
 0x77c   : > { %8205 = vst [vmem:[#allocation66_spill] sm:$0xff] %v7755_v49  ;;  %5781 = vrcp.f32 %v2346_v9  ;;  %v5297_v33 = vpack.c.bf16 %v3861_v37, %v3860_v11  ;;  %v3865_v49 = vld [vmem:[#allocation14 + $0x58] sm:$0xff] }
 0x77d   : > { %v5764_v13 = vpop.eup %5763  ;;  %5783 = vrcp.f32 %v7629_v18  ;;  %v5059_v7 = vpop.f32.mrb[96].mxu1 }
 0x77e   : > { %v5766_v3 = vpop.eup %5765  ;;  %v2348_v31 = vpop.xlane.xlu1 %2347  ;;  %v2519_v2 = vmul.f32 %v5764_v13, %v7604_v34  ;;  %5298 = vmatprep.subr.bf16.mxu0 %v5297_v33  ;;  %v3864_v13 = vld [vmem:[#allocation14 + $0x50] sm:$0xff] }
 0x77f   : > { %v5768_v27 = vpop.eup %5767  ;;  %v7762_v0 = vmul.f32 %v5766_v3, %v5059_v7  ;;  %5785 = vrcp.f32 %v2348_v31  ;;  %v3541_v61 = vpop.f32.mrb[97].mxu1  ;;  %5300 = vmatpush3.bf16.msra.mxu0 %v5297_v33 }
 0x780   : > { %v5770_v9 = vpop.eup %5769  ;;  %5787 = vrcp.f32 %v7649_v40  ;;  %v7765_v58 = vmul.f32 %v5762_v19, %v3541_v61  ;;  %v5439_v18 = vpack.i.bf16 %v2519_v2, %v2518_v46  ;;  %v2520_v7 = vmul.f32 %v5768_v27, %v7612_v21 }
 0x781   : > { %v5772_v38 = vpop.eup %5771  ;;  %5789 = vrcp.f32 %v7643_v45  ;;  %v5062_v3 = vpop.f32.mrb[98].mxu1  ;;  %v5301_v19 = vpack.c.bf16 %v3863_v48, %v3862_v35 }
 0x782   : > { %v5774_v34 = vpop.eup %5773  ;;  %5440 = vrot.lane.b32.xlu1 %v5439_v18, %s6058_s2  ;;  %v2521_v40 = vmul.f32 %v5772_v38, %v7610_v63  ;;  %v3551_v2 = vpop.f32.mrb[99].mxu1  ;;  %v5305_v38 = vpack.c.bf16 %v3865_v49, %v3864_v13 }
 0x783   : > { %v5776_v31 = vpop.eup %5775  ;;  %v7773_v46 = vmul.f32 %v5774_v34, %v5062_v3  ;;  %v3606_v61 = vmul.f32 %v5770_v9, %v3551_v2  ;;  %5302 = vmatprep.subr.bf16.mxu0 %v5301_v19 }
 0x784   : > { %v5778_v45 = vpop.eup %5777  ;;  %v5444_v11 = vpack.i.bf16 %v2521_v40, %v2520_v7  ;;  %v2522_v63 = vmul.f32 %v5776_v31, %v7620_v12  ;;  %5304 = vmatpush3.bf16.msra.mxu0 %v5301_v19  ;;  %v3866_v40 = vld [vmem:[#allocation14 + $0x60] sm:$0xff] }
 0x785   : > { %v5780_v37 = vpop.eup %5779  ;;  %v5514_v18 = vpack.i.bf16 %v7773_v46, %v3606_v61  ;;  %v5065_v21 = vpop.f32.mrb[100].mxu1  ;;  %5306 = vmatprep.subr.bf16.mxu0 %v5305_v38  ;;  %v3867_v46 = vld [vmem:[#allocation14 + $0x68] sm:$0xff] }
 0x786   : > { %v5782_v6 = vpop.eup %5781  ;;  %5445 = vrot.lane.b32.xlu1 %v5444_v11, %s6058_s2  ;;  %v2523_v27 = vmul.f32 %v5780_v37, %v7618_v47  ;;  %v3609_v48 = vmul.f32 %v5778_v45, %v5065_v21  ;;  %v3561_v9 = vpop.f32.mrb[101].mxu1  ;;  %v8206_v47 = vpack.i.bf16 %v7631_v56, %v7635_v25  ;;  %v5309_v49 = vpack.c.bf16 %v3867_v46, %v3866_v40  ;;  %v3868_v45 = vld [vmem:[#allocation14 + $0x70] sm:$0xff]  ;;  %v3869_v37 = vld [vmem:[#allocation14 + $0x78] sm:$0xff] }
 0x787   : > { %v5784_v35 = vpop.eup %5783  ;;  %v2524_v7 = vmul.f32 %v5782_v6, %v7627_v52  ;;  %v8207_v56 = vpack.i.bf16 %v7639_v10, %v7641_v42  ;;  %v5313_v25 = vpack.c.bf16 %v3869_v37, %v3868_v45  ;;  %v8210_v10 = vpack.i.bf16 %v7655_v1, %v7657_v26 }
 0x788   : > { %v3608_v34 = vmul.f32 %v5784_v35, %v3561_v9  ;;  %v5469_v33 = vpack.i.bf16 %v2523_v27, %v2522_v63  ;;  %5308 = vmatpush3.bf16.msra.mxu0 %v5305_v38  ;;  %v8209_v63 = vpack.i.bf16 %v7647_v54, %v7651_v57  ;;  %v8211_v42 = vpack.i.bf16 %v7689_v44, %v7694_v22 }
 0x789   : > { %v5786_v3 = vpop.eup %5785  ;;  %v5068_v11 = vpop.f32.mrb[102].mxu1  ;;  %5310 = vmatprep.subr.bf16.mxu0 %v5309_v49  ;;  %v8213_v54 = vpack.i.bf16 %v7701_v51, %v7706_v14  ;;  %v8214_v57 = vpack.i.bf16 %v7715_v5, %v7720_v53  ;;  %v8215_v1 = vpack.i.bf16 %v7728_v62, %v7733_v36  ;;  %v8216_v26 = vpack.i.bf16 %v7749_v60, %v7752_v39 }
 0x78a   : > { %v5788_v2 = vpop.eup %5787  ;;  %v5524_v61 = vpack.i.bf16 %v3609_v48, %v3608_v34  ;;  %5450 = vrot.lane.b32.xlu1 %v8206_v47, %s6059_s5  ;;  %5470 = vrot.lane.b32.xlu0 %v5469_v33, %s6058_s2  ;;  %v2525_v12 = vmul.f32 %v5786_v3, %v7625_v23  ;;  %v3571_v31 = vpop.f32.mrb[103].mxu1  ;;  %v8208_v23 = vpack.i.bf16 %v7664_v24, %v7666_v50 }
 0x78b   : > { %v5790_v13 = vpop.eup %5789  ;;  %v3611_v19 = vmul.f32 %v5788_v2, %v5068_v11  ;;  %v8212_v24 = vpack.i.bf16 %v7675_v8, %v7680_v30  ;;  %v8217_v50 = vpack.i.bf16 %v7762_v0, %v7765_v58  ;;  %v1803_v8 = vpop.xlane.xlu1 %1802 }
 0x78c   : > { %v3610_v52 = vmul.f32 %v5790_v13, %v3571_v31  ;;  %v5519_v6 = vpack.i.bf16 %v2525_v12, %v2524_v7  ;;  %5312 = vmatpush3.bf16.msra.mxu0 %v5309_v49  ;;  %v5421_v62 = vpop.permute.xlu0 %5420  ;;  %5791 = vrcp.f32 %v1803_v8 }
 0x78d   : > { %5314 = vmatprep.subr.bf16.mxu0 %v5313_v25  ;;  %v5423_v39 = vunpack.i.h.bf16 %v5421_v62  ;;  %v5422_v58 = vunpack.i.l.bf16 %v5421_v62 }
 0x78e   : > { %v5534_v21 = vpack.i.bf16 %v3611_v19, %v3610_v52  ;;  %5455 = vrot.lane.b32.xlu1 %v8207_v56, %s6059_s5  ;;  %5480 = vrot.lane.b32.xlu0 %v8208_v23, %s6059_s5 }
 0x78f   : > { %v5426_v30 = vpop.permute.xlu1 %5425  ;;  %v3805_v35 = vsel %vm1500_vm0, %v7678_v32, %v5423_v39  ;;  %v3804_v34 = vsel %vm1500_vm0, %v7669_v17, %v5422_v58 }
 0x790   : > { %5316 = vmatpush3.bf16.msra.mxu0 %v5313_v25  ;;  %v5428_v48 = vunpack.i.h.bf16 %v5426_v30  ;;  %v5427_v33 = vunpack.i.l.bf16 %v5426_v30 }
 0x792   : > { %5460 = vrot.lane.b32.xlu1 %v8209_v63, %s6059_s5  ;;  %5525 = vrot.lane.b32.xlu0 %v5524_v61, %s6060_s7  ;;  %v3806_v31 = vsel %vm1500_vm0, %v7683_v4, %v5427_v33  ;;  %v3807_v52 = vsel %vm1500_vm0, %v7692_v20, %v5428_v48 }
 0x793   : > { %v5431_v44 = vpop.permute.xlu1 %5430 }
 0x794   : > { %v5433_v12 = vunpack.i.h.bf16 %v5431_v44  ;;  %v5432_v49 = vunpack.i.l.bf16 %v5431_v44 }
 0x796   : > { %5475 = vrot.lane.b32.xlu1 %v8210_v10, %s6059_s5  ;;  %5530 = vrot.lane.b32.xlu0 %v8211_v42, %s6059_s5  ;;  %v3808_v4 = vsel %vm1500_vm0, %v7697_v41, %v5432_v49  ;;  %v3809_v20 = vsel %vm1500_vm0, %v7704_v15, %v5433_v12 }
 0x797   : > { %v7826_v22 = vpop.permute.xlu1 %5435 }
 0x798   : > { %v5438_v10 = vunpack.i.h.bf16 %v7826_v22  ;;  %v5437_v42 = vunpack.i.l.bf16 %v7826_v22 }
 0x79a   : > { %5485 = vrot.lane.b32.xlu1 %v8212_v24, %s6059_s5  ;;  %v3811_v62 = vsel %vm1500_vm0, %v7718_v29, %v5438_v10 }
 0x79e   : > { %5490 = vrot.lane.b32.xlu1 %v8213_v54, %s6060_s7 }
 0x7a2   : > { %5495 = vrot.lane.b32.xlu1 %v8214_v57, %s6060_s7 }
 0x7a6   : > { %5500 = vrot.lane.b32.xlu1 %v8215_v1, %s6060_s7 }
 0x7aa   : > { %5505 = vrot.lane.b32.xlu1 %v8216_v26, %s6060_s7 }
 0x7ae   : > { %5510 = vrot.lane.b32.xlu1 %v8217_v50, %s6060_s7  ;;  %v1805_v38 = vpop.xlane.xlu0 %1804 }
 0x7af   : > { %5793 = vrcp.f32 %v1805_v38 }
 0x7b2   : > { %5515 = vrot.lane.b32.xlu1 %v5514_v18, %s6060_s7 }
 0x7b6   : > { %5520 = vrot.lane.b32.xlu1 %v5519_v6, %s6058_s2 }
 0x7ba   : > { %5535 = vrot.lane.b32.xlu1 %v5534_v21, %s6060_s7 }
 0x7cc   : > { %v5466_v11 = vpop.permute.xlu0 %5465 }
 0x7cd   : > { %v5468_v57 = vunpack.i.h.bf16 %v5466_v11  ;;  %v5467_v1 = vunpack.i.l.bf16 %v5466_v11 }
 0x7f4   : > { %v7828_v51 = vpop.permute.xlu1 %5440 }
 0x7f5   : > { %v5443_v15 = vunpack.i.h.bf16 %v7828_v51  ;;  %v5442_v30 = vunpack.i.l.bf16 %v7828_v51  ;;  %v3828_v51 = vsel %vm3820_vm1, %v3811_v62, %v5468_v57 }
 0x7f7   : > { %v3812_v29 = vsel %vm1500_vm0, %v7723_v55, %v5442_v30 }
 0x7f8   : > { %v7830_v36 = vpop.permute.xlu1 %5445 }
 0x7f9   : > { %v5447_v48 = vunpack.i.l.bf16 %v7830_v36 }
 0x7fc   : > { %v5451_v14 = vpop.permute.xlu1 %5450  ;;  %v7850_v56 = vpop.permute.xlu0 %5470 }
 0x7fd   : > { %v5453_v18 = vunpack.i.h.bf16 %v5451_v14  ;;  %v5452_v27 = vunpack.i.l.bf16 %v5451_v14 }
 0x7ff   : > { %v3822_v40 = vsel %vm3820_vm1, %v3805_v35, %v5453_v18  ;;  %v3821_v61 = vsel %vm3820_vm1, %v3804_v34, %v5452_v27  ;;  %v5448_v35 = vunpack.i.h.bf16 %v7830_v36 }
 0x800   : > { %v5456_v60 = vpop.permute.xlu1 %5455  ;;  %v5481_v22 = vpop.permute.xlu0 %5480 }
 0x801   : > { %v5458_v46 = vunpack.i.h.bf16 %v5456_v60  ;;  %v5457_v2 = vunpack.i.l.bf16 %v5456_v60  ;;  %v5483_v34 = vunpack.i.h.bf16 %v5481_v22  ;;  %v3815_v12 = vsel %vm1500_vm0, %v7743_v16, %v5448_v35 }
 0x803   : > { %v3823_v37 = vsel %vm3820_vm1, %v3806_v31, %v5457_v2  ;;  %v3824_v21 = vsel %vm3820_vm1, %v3807_v52, %v5458_v46  ;;  %v8218_v31 = vld [vmem:[#allocation71_spill] sm:$0xff] }
 0x804   : > { %v5461_v5 = vpop.permute.xlu1 %5460 }
 0x805   : > { %v5463_v6 = vunpack.i.h.bf16 %v5461_v5  ;;  %v5462_v45 = vunpack.i.l.bf16 %v5461_v5  ;;  %v3810_v5 = vsel %vm1500_vm0, %v7709_v43, %v5437_v42 }
 0x806   : > { %v3827_v18 = vsel %vm3820_vm1, %v3810_v5, %v5467_v1 }
 0x807   : > { %v3825_v26 = vsel %vm3820_vm1, %v3808_v4, %v5462_v45  ;;  %v3826_v50 = vsel %vm3820_vm1, %v3809_v20, %v5463_v6  ;;  %v3832_v45 = vsel %vm3820_vm1, %v3815_v12, %v5483_v34  ;;  %v8221_v4 = vld [vmem:[#allocation60_spill] sm:$0xff] }
 0x808   : > { %v7832_v53 = vpop.permute.xlu1 %5475 }
 0x809   : > { %v5478_v39 = vunpack.i.h.bf16 %v7832_v53  ;;  %v5477_v58 = vunpack.i.l.bf16 %v7832_v53  ;;  %v3813_v53 = vsel %vm1500_vm0, %v7731_v28, %v5443_v15  ;;  %v5473_v28 = vunpack.i.h.bf16 %v7850_v56 }
 0x80b   : > { %v3829_v36 = vsel %vm3820_vm1, %v3812_v29, %v5477_v58  ;;  %v3830_v2 = vsel %vm3820_vm1, %v3813_v53, %v5478_v39  ;;  %v4346_v39 = vld [vmem:[%s8222_s27] ss:$0 sm:$0xff] }
 0x80c   : > { %v7834_v0 = vpop.permute.xlu1 %5485 }
 0x80d   : > { %v5487_v46 = vunpack.i.l.bf16 %v7834_v0 }
 0x810   : > { %v5491_v9 = vpop.permute.xlu1 %5490 }
 0x811   : > { %v5493_v3 = vunpack.i.h.bf16 %v5491_v9  ;;  %v5492_v7 = vunpack.i.l.bf16 %v5491_v9  ;;  %v5472_v9 = vunpack.i.l.bf16 %v7850_v56 }
 0x813   : > { %v3838_v47 = vsel %vm3837_vm2, %v3821_v61, %v5492_v7  ;;  %v3839_v32 = vsel %vm3837_vm2, %v3822_v40, %v5493_v3  ;;  %v5792_v7 = vpop.eup %5791  ;;  %v5482_v40 = vunpack.i.l.bf16 %v5481_v22  ;;  %v5526_v61 = vpop.permute.xlu0 %5525  ;;  %v3816_v52 = vsel %vm1500_vm0, %v8218_v31, %v5472_v9 }
 0x814   : > { %v5496_v13 = vpop.permute.xlu1 %5495  ;;  %5101 = vmatprep.mubr.f32.mxu0 %v3838_v47  ;;  %v5794_v49 = vpop.eup %5793  ;;  %v5528_v1 = vunpack.i.h.bf16 %v5526_v61 }
 0x815   : > { %v5498_v17 = vunpack.i.h.bf16 %v5496_v13  ;;  %v5497_v19 = vunpack.i.l.bf16 %v5496_v13  ;;  %5102 = vmatmul.mubr.f32.vlgmr.msra.gmra.mrb[72].mxu0 %v3839_v32  ;;  %v3814_v32 = vsel %vm1500_vm0, %v7736_v59, %v5447_v48  ;;  %v5488_v13 = vunpack.i.h.bf16 %v7834_v0  ;;  %v8219_v0 = vld [vmem:[#allocation66_spill] sm:$0xff] }
 0x816   : > { %v3831_v6 = vsel %vm3820_vm1, %v3814_v32, %v5482_v40  ;;  %v1982_v20 = vmul.f32 %v5794_v49, %v8221_v4 }
 0x817   : > { %v3840_v23 = vsel %vm3837_vm2, %v3823_v37, %v5497_v19  ;;  %v3841_v25 = vsel %vm3837_vm2, %v3824_v21, %v5498_v17  ;;  %v3833_v37 = vsel %vm3820_vm1, %v3816_v52, %v5487_v46  ;;  %v5527_v21 = vunpack.i.l.bf16 %v5526_v61  ;;  %v5531_v10 = vpop.permute.xlu0 %5530 }
 0x818   : > { %v5501_v63 = vpop.permute.xlu1 %5500  ;;  %5104 = vmatprep.mubr.f32.mxu0 %v3840_v23  ;;  %v3817_v23 = vsel %vm1500_vm0, %v8219_v0, %v5473_v28 }
 0x819   : > { %v5503_v24 = vunpack.i.h.bf16 %v5501_v63  ;;  %v5502_v54 = vunpack.i.l.bf16 %v5501_v63  ;;  %5105 = vmatmul.mubr.f32.gmra.mrb[74].mxu0 %v3841_v25  ;;  %v8220_v25 = vld [vmem:[#allocation61_spill] sm:$0xff]  ;;  %v3834_v57 = vsel %vm3820_vm1, %v3817_v23, %v5488_v13 }
 0x81a   : > { %v1981_v63 = vmul.f32 %v5792_v7, %v8220_v25  ;;  %v3851_v30 = vsel %vm3837_vm2, %v3834_v57, %v5528_v1 }
 0x81b   : > { %v3842_v8 = vsel %vm3837_vm2, %v3825_v26, %v5502_v54  ;;  %v3843_v41 = vsel %vm3837_vm2, %v3826_v50, %v5503_v24  ;;  %v3850_v54 = vsel %vm3837_vm2, %v3833_v37, %v5527_v21 }
 0x81c   : > { %v5506_v44 = vpop.permute.xlu1 %5505  ;;  %5107 = vmatprep.mubr.f32.mxu0 %v3842_v8  ;;  %v5533_v8 = vunpack.i.h.bf16 %v5531_v10 }
 0x81d   : > { %v5508_v14 = vunpack.i.h.bf16 %v5506_v44  ;;  %v5507_v60 = vunpack.i.l.bf16 %v5506_v44  ;;  %5108 = vmatmul.mubr.f32.gmra.mrb[76].mxu0 %v3843_v41  ;;  %v5532_v41 = vunpack.i.l.bf16 %v5531_v10 }
 0x81f   : > { %v3844_v27 = vsel %vm3837_vm2, %v3827_v18, %v5507_v60  ;;  %v3845_v38 = vsel %vm3837_vm2, %v3828_v51, %v5508_v14 }
 0x820   : > { %v5511_v43 = vpop.permute.xlu1 %5510  ;;  %5110 = vmatprep.mubr.f32.mxu0 %v3844_v27 }
 0x821   : > { %v5513_v33 = vunpack.i.h.bf16 %v5511_v43  ;;  %v5512_v3 = vunpack.i.l.bf16 %v5511_v43  ;;  %5111 = vmatmul.mubr.f32.gmra.mrb[78].mxu0 %v3845_v38 }
 0x823   : > { %v3846_v55 = vsel %vm3837_vm2, %v3829_v36, %v5512_v3  ;;  %v3847_v11 = vsel %vm3837_vm2, %v3830_v2, %v5513_v33 }
 0x824   : > { %v5516_v47 = vpop.permute.xlu1 %5515  ;;  %5113 = vmatprep.mubr.f32.mxu0 %v3846_v55 }
 0x825   : > { %v5518_v17 = vunpack.i.h.bf16 %v5516_v47  ;;  %v5517_v19 = vunpack.i.l.bf16 %v5516_v47  ;;  %5114 = vmatmul.mubr.f32.gmra.mrb[80].mxu0 %v3847_v11 }
 0x827   : > { %v3848_v59 = vsel %vm3837_vm2, %v3831_v6, %v5517_v19  ;;  %v3849_v16 = vsel %vm3837_vm2, %v3832_v45, %v5518_v17 }
 0x828   : > { %v5521_v56 = vpop.permute.xlu1 %5520  ;;  %5116 = vmatprep.mubr.f32.mxu0 %v3848_v59 }
 0x829   : > { %v5523_v42 = vunpack.i.h.bf16 %v5521_v56  ;;  %v5522_v24 = vunpack.i.l.bf16 %v5521_v56  ;;  %5117 = vmatmul.mubr.f32.gmra.mrb[82].mxu0 %v3849_v16 }
 0x82a   : > { %5119 = vmatprep.mubr.f32.mxu0 %v3850_v54 }
 0x82b   : > { %v3818_v26 = vsel %vm1500_vm0, %v1981_v63, %v5522_v24  ;;  %v3819_v50 = vsel %vm1500_vm0, %v1982_v20, %v5523_v42 }
 0x82c   : > { %v5536_v15 = vpop.permute.xlu1 %5535  ;;  %v3835_v14 = vsel %vm3820_vm1, %v3818_v26, %v5532_v41  ;;  %v3836_v60 = vsel %vm3820_vm1, %v3819_v50, %v5533_v8 }
 0x82d   : > { %v5538_v44 = vunpack.i.h.bf16 %v5536_v15  ;;  %v5537_v22 = vunpack.i.l.bf16 %v5536_v15  ;;  %5120 = vmatmul.mubr.f32.gmra.mrb[84].mxu0 %v3851_v30 }
 0x82f   : > { %v3852_v5 = vsel %vm3837_vm2, %v3835_v14, %v5537_v22  ;;  %v3853_v62 = vsel %vm3837_vm2, %v3836_v60, %v5538_v44 }
 0x830   : > { %5122 = vmatprep.mubr.f32.mxu0 %v3852_v5 }
 0x831   : > { %5123 = vmatmul.mubr.f32.gmra.mrb[86].mxu0 %v3853_v62 }
 0x8e8   : > { %v5103_v58 = vpop.f32.mrb[72].mxu0 }
 0x8e9   : > { %v3949_v18 = vadd.f32 %v5103_v58, %v4346_v39  ;;  %v3943_v51 = vpop.f32.mrb[73].mxu0 }
 0x8ea   : > { %v3944_v27 = vadd.f32 %v4346_v39, %v3943_v51 }
 0x8eb   : > { %4023 = vst [vmem:[%s7918_s14 + $0x8] sm:$0xff] %v3949_v18 }
 0x8ec   : > { %4022 = vst [vmem:[%s7918_s14] sm:$0xff] %v3944_v27  ;;  %v5106_v38 = vpop.f32.mrb[74].mxu0 }
 0x8ed   : > { %v3959_v35 = vadd.f32 %v5106_v38, %v4346_v39  ;;  %v3953_v48 = vpop.f32.mrb[75].mxu0 }
 0x8ee   : > { %v3954_v43 = vadd.f32 %v4346_v39, %v3953_v48 }
 0x8ef   : > { %4025 = vst [vmem:[%s7918_s14 + $0x18] sm:$0xff] %v3959_v35 }
 0x8f0   : > { %4024 = vst [vmem:[%s7918_s14 + $0x10] sm:$0xff] %v3954_v43  ;;  %v5109_v29 = vpop.f32.mrb[76].mxu0 }
 0x8f1   : > { %v3969_v53 = vadd.f32 %v5109_v29, %v4346_v39  ;;  %v3963_v9 = vpop.f32.mrb[77].mxu0 }
 0x8f2   : > { %v3964_v34 = vadd.f32 %v4346_v39, %v3963_v9 }
 0x8f3   : > { %4027 = vst [vmem:[%s7918_s14 + $0x28] sm:$0xff] %v3969_v53 }
 0x8f4   : > { %4026 = vst [vmem:[%s7918_s14 + $0x20] sm:$0xff] %v3964_v34  ;;  %v5112_v33 = vpop.f32.mrb[78].mxu0 }
 0x8f5   : > { %v3979_v3 = vadd.f32 %v5112_v33, %v4346_v39  ;;  %v3973_v7 = vpop.f32.mrb[79].mxu0 }
 0x8f6   : > { %v3974_v40 = vadd.f32 %v4346_v39, %v3973_v7 }
 0x8f7   : > { %4029 = vst [vmem:[%s7918_s14 + $0x38] sm:$0xff] %v3979_v3 }
 0x8f8   : > { %4028 = vst [vmem:[%s7918_s14 + $0x30] sm:$0xff] %v3974_v40  ;;  %v5115_v46 = vpop.f32.mrb[80].mxu0 }
 0x8f9   : > { %v3989_v36 = vadd.f32 %v5115_v46, %v4346_v39  ;;  %v3983_v2 = vpop.f32.mrb[81].mxu0 }
 0x8fa   : > { %v3984_v61 = vadd.f32 %v4346_v39, %v3983_v2 }
 0x8fb   : > { %4031 = vst [vmem:[%s7918_s14 + $0x48] sm:$0xff] %v3989_v36 }
 0x8fc   : > { %4030 = vst [vmem:[%s7918_s14 + $0x40] sm:$0xff] %v3984_v61  ;;  %v5118_v55 = vpop.f32.mrb[82].mxu0 }
 0x8fd   : > { %v3999_v11 = vadd.f32 %v5118_v55, %v4346_v39  ;;  %v3993_v28 = vpop.f32.mrb[83].mxu0 }
 0x8fe   : > { %v3994_v47 = vadd.f32 %v4346_v39, %v3993_v28 }
 0x8ff   : > { %4033 = vst [vmem:[%s7918_s14 + $0x58] sm:$0xff] %v3999_v11 }
 0x900   : > { %4032 = vst [vmem:[%s7918_s14 + $0x50] sm:$0xff] %v3994_v47  ;;  %v5121_v32 = vpop.f32.mrb[84].mxu0 }
 0x901   : > { %v4009_v12 = vadd.f32 %v5121_v32, %v4346_v39  ;;  %v4003_v49 = vpop.f32.mrb[85].mxu0 }
 0x902   : > { %v4004_v13 = vadd.f32 %v4346_v39, %v4003_v49 }
 0x903   : > { %4035 = vst [vmem:[%s7918_s14 + $0x68] sm:$0xff] %v4009_v12 }
 0x904   : > { %4034 = vst [vmem:[%s7918_s14 + $0x60] sm:$0xff] %v4004_v13  ;;  %v5124_v17 = vpop.f32.mrb[86].mxu0 }
 0x905   : > { %v4019_v19 = vadd.f32 %v5124_v17, %v4346_v39  ;;  %v4013_v31 = vpop.f32.mrb[87].mxu0 }
 0x906   : > { %v4014_v52 = vadd.f32 %v4346_v39, %v4013_v31 }
 0x907   : > { %4037 = vst [vmem:[%s7918_s14 + $0x78] sm:$0xff] %v4019_v19 }
 0x908   : > { %4036 = vst [vmem:[%s7918_s14 + $0x70] sm:$0xff] %v4014_v52 }
 0x909   : > { %5982 = shalt.err (!%p5979_p8)
}
 0x90a   : > { %s5983_s2 = scalar_lea.hbm %s7939_s26, 2048  ;;  %s5987_s29 = scalar_lea.hbm %s8224_s11, 4096 }
 0x90b   : > { %p5984_p1 = scmp.ne.s32.totalorder %s7939_s26, %s5983_s2  ;;  %p5988_p13 = scmp.lt.u32.totalorder %s7939_s26, %s8224_s11 }
 0x90c   : > { %p5989_p3 = scmp.lt.u32.totalorder %s5987_s29, %s5983_s2  ;;  %p5991_p12 = scmp.lt.u32.totalorder %s5983_s2, %s7939_s26 }
 0x90d   : > { %p5985_p0 = pnand %p5984_p1, %p8225_p2 }
 0x90e   : > { %p5990_p7 = por %p5989_p3, %p5988_p13 }
 0x90f   : > { %p5986_p11 = pneg %p5985_p0 }
 0x910   : > { %p5992_p6 = por %p5991_p12, %p5990_p7 }
 0x912   : > { %p5993_p9 = pnand %p5992_p6, %p5986_p11 }
 0x914   : > { %5996 = shalt.err (!%p5993_p9)
}
 0x915   : > { %s6062_s14 = smov 128   ;;  %s6063_s30 = smov 8  }
 0x916   : > { %5339 = dma.vmem_to_hbm [thread:$0]  (%p8225_p2), %s7941_s16, 2048, %s7939_s26, %s4039_s25, %s6062_s14, %s6062_s14, %s6063_s30  }
 0x917 PF: > { %s8226_s19 = sld [smem:[#allocation22_spill]]  ;;  %s8227_s28 = sld [smem:[#allocation27_spill]] }
 0x918   : > { %p8229_p4 = scmp.ge.s32.totalorder %s6047_s24, 2 }
 0x91d   : > { %s4067_s9 = sand.u32 1, %s8226_s19   ;;  %p8228_p10 = scmp.ne.s32.totalorder %s8227_s28, 0 }
 0x91e   : > { %s4068_s15 = scalar_lea.sflag [#allocation7], %s4067_s9 }
 0x91f   : > { %p5362_p5 = pnand %p8229_p4, %p8228_p10 }
 0x921   : > { %6030 = dma.done.wait (!%p5362_p5), %s4068_s15, 2048  }
 0x922   : > { %6032 = vsyncadd (!%p5362_p5), %s4068_s15, 4294965248  ;;  %s8230_s24 = sld [smem:[#allocation24_spill]]  ;;  %s8231_s23 = sld [smem:[#allocation23_spill]] }
 0x923   : > { %s8232_s4 = sld [smem:[#allocation25_spill]]  ;;  %s8233_s21 = smov %s6039_s22 }
 0x928   : > { %p30_p8 = scmp.ge.s32.totalorder %s8230_s24, 4   ;;  %s8234_s22 = smov %s8231_s23 }
 0x929   : > { %s8235_s23 = smov %s8232_s4 }
 0x92a   :  { %32 = sbr.rel (!%p30_p8) target bundleno = 18 (0x12), region = 155 }
 0x931   :  { %4073 = vsyncpa [#allocation6], 1 }
 0x932   :  { %4075 = vsyncpa [#allocation6 + $0x1], 1 }
 0x933   :  { %4076 = vsyncpa [#allocation9], 1 }
 0x934   :  { %4078 = vsyncpa [#allocation9 + $0x1], 1 }
 0x935   :  { %4079 = vsyncpa [#allocation12], 1 }
 0x936   :  { %4080 = vsyncpa [#allocation15], 1 }
 0x937   :  { %4081 = vsyncpa [#allocation7], 1 }
 0x938   :  { %4083 = vsyncpa [#allocation7 + $0x1], 1 }

</bundles_post_ra>
